<compile_context>
chip_gen: v7x
topology: tpu7x:2x2x1
jax: 0.10.0
libtpu: 0.0.40
codegen_flags: <defaults>
</compile_context>

<pallas_src>
import numpy as np
import jax
import jax.numpy as jnp
from jax.experimental import pallas as pl
from jax.experimental.pallas import tpu as pltpu

LANES = 128


def _round_up(x, m):
    return (x + m - 1) // m * m


def init_params(key, D_in, H, D_out):
    """Deterministic synthetic init mirroring the module's normal_() calls."""
    ks = jax.random.split(key, 10)

    def nrm(k, shape, std):
        return (std * jax.random.normal(k, shape)).astype(jnp.float32)

    return {
        # weights stored as (in, out) == PyTorch weight.T
        "w1": nrm(ks[0], (D_in, H), np.sqrt(2.0 / (D_in + H))),
        "b1": nrm(ks[1], (1, H), 1.0),
        "w2": nrm(ks[2], (H, H), np.sqrt(2.0 / (H + H))),
        "b2": nrm(ks[3], (1, H), 1.0),
        "w3": nrm(ks[4], (H, H), np.sqrt(2.0 / (H + H))),
        "b3": nrm(ks[5], (1, H), 1.0),
        "w4": nrm(ks[6], (H, H), np.sqrt(2.0 / (H + H))),
        "b4": nrm(ks[7], (1, H), 1.0),
        "w5": nrm(ks[8], (H, D_out), np.sqrt(2.0 / (H + D_out))),
        "b5": nrm(ks[9], (1, D_out), 1.0),
    }


def pack_params(params, scale):
    """One-time prep (outside the kernel):
       * fold scale into W1..W4 / b1..b4:  s*(x@W+b) == x@(s*W) + (s*b)
       * zero-pad H -> Hp (multiple of 128) so L2..L4 present full-lane MXU shapes
       * lay out W5 for a lane-dense output (row vector when D_out == 1)."""
    D_in, H = params["w1"].shape
    D_out = params["w5"].shape[1]
    Hp = _round_up(H, LANES)
    s = jnp.asarray(scale, jnp.float32).reshape(())

    def pad2(w, shape):
        return jnp.zeros(shape, jnp.float32).at[: w.shape[0], : w.shape[1]].set(w)

    packed = {
        "w1": pad2(s * params["w1"], (D_in, Hp)),
        "b1": pad2(s * params["b1"], (1, Hp)),
        "w2": pad2(s * params["w2"], (Hp, Hp)),
        "b2": pad2(s * params["b2"], (1, Hp)),
        "w3": pad2(s * params["w3"], (Hp, Hp)),
        "b3": pad2(s * params["b3"], (1, Hp)),
        "w4": pad2(s * params["w4"], (Hp, Hp)),
        "b4": pad2(s * params["b4"], (1, Hp)),
    }
    if D_out == 1:
        packed["w5"] = pad2(params["w5"].T, (1, Hp))              # VPU+XLU path
        packed["b5"] = params["b5"].reshape(1, 1).astype(jnp.float32)
        out_lanes = LANES
    else:
        DOp = _round_up(D_out, LANES)
        packed["w5"] = pad2(params["w5"], (Hp, DOp))              # MXU path, lane-dense out
        packed["b5"] = pad2(params["b5"], (1, DOp))
        out_lanes = DOp
    packed["meta"] = (D_in, H, D_out, Hp, out_lanes)              # static python ints
    return packed


def _make_kernel(d_in, d_out):
    def kernel(x_ref, w1_ref, b1_ref, w2_ref, b2_ref, w3_ref, b3_ref,
               w4_ref, b4_ref, w5_ref, b5_ref, out_ref):
        x = x_ref[...]                                            # (tm, d_in)

        # L1 on the VPU: K == d_in (tiny). A K=2 vmatmul would pay full MXU push/pop
        # for ~2% utilization; broadcast MACs use otherwise-idle VALU slots.
        pre = b1_ref[...]                                         # (1, Hp)
        for k in range(d_in):                                     # static unroll
            pre = pre + x[:, k:k + 1] * w1_ref[k:k + 1, :]
        y1 = jnp.tanh(pre)                                        # (tm, Hp)

        # L2..L4 on the MXU: full-lane (K=N=Hp=128) f32 matmuls, f32 accumulation.
        def lin(h, w_ref, b_ref):
            return jnp.dot(h, w_ref[...],
                           preferred_element_type=jnp.float32,
                           precision=jax.lax.Precision.HIGHEST) + b_ref[...]

        y2 = jnp.tanh(lin(y1, w2_ref, b2_ref))
        y3 = jnp.tanh(lin(y2, w3_ref, b3_ref)) + y1
        y4 = jnp.tanh(lin(y3, w4_ref, b4_ref)) + y2

        # L5 + lane-dense store (no masked single-lane vst).
        if d_out == 1:
            # elementwise multiply (VPU) + lane reduce (XLU); broadcast across lanes.
            r = jnp.sum(y4 * w5_ref[...], axis=-1, keepdims=True) + b5_ref[...]
            out_ref[...] = jnp.broadcast_to(r, out_ref.shape).astype(out_ref.dtype)
        else:
            out_ref[...] = lin(y4, w5_ref, b5_ref).astype(out_ref.dtype)

    return kernel


def homo_forward(x, packed, *, tm=256):
    D_in, H, D_out, Hp, out_lanes = packed["meta"]
    N = x.shape[0]
    assert x.shape[1] == D_in

    # Batch tiling: tm in the 256 range -> >=2 grid steps once N grows (DMA pipelining,
    # v7x megacore sharding); tiny N falls back to a single full-batch block.
    tm_eff = min(tm, _round_up(N, 8))
    n_pad = _round_up(N, tm_eff)
    if n_pad != N:
        x = jnp.pad(x, ((0, n_pad - N), (0, 0)))
    grid = (n_pad // tm_eff,)

    def resident(shape):
        # weights / biases: same (only) block every grid step -> stay VMEM-resident
        return pl.BlockSpec(shape, lambda i: (0, 0))

    in_specs = [
        pl.BlockSpec((tm_eff, D_in), lambda i: (i, 0)),           # x, tiled over batch
        resident(packed["w1"].shape), resident(packed["b1"].shape),
        resident(packed["w2"].shape), resident(packed["b2"].shape),
        resident(packed["w3"].shape), resident(packed["b3"].shape),
        resident(packed["w4"].shape), resident(packed["b4"].shape),
        resident(packed["w5"].shape), resident(packed["b5"].shape),
    ]
    out_specs = pl.BlockSpec((tm_eff, out_lanes), lambda i: (i, 0))

    out = pl.pallas_call(
        _make_kernel(D_in, D_out),
        out_shape=jax.ShapeDtypeStruct((n_pad, out_lanes), jnp.float32),
        grid_spec=pltpu.PrefetchScalarGridSpec(
            num_scalar_prefetch=0,
            grid=grid,
            in_specs=in_specs,
            out_specs=out_specs,
        ),
        compiler_params=pltpu.CompilerParams(
            dimension_semantics=("parallel",)),
    )(x,
      packed["w1"], packed["b1"], packed["w2"], packed["b2"],
      packed["w3"], packed["b3"], packed["w4"], packed["b4"],
      packed["w5"], packed["b5"])

    return out[:N, :D_out]


def homo_reference(x, p, scale):
    """Pure-JAX reference matching the PyTorch module math (scale kept explicit)."""
    s = jnp.asarray(scale, jnp.float32).reshape(())
    lin = lambda h, w, b: jnp.dot(h, w, precision=jax.lax.Precision.HIGHEST) + b
    y1 = jnp.tanh(s * lin(x, p["w1"], p["b1"]))
    y2 = jnp.tanh(s * lin(y1, p["w2"], p["b2"]))
    y3 = jnp.tanh(s * lin(y2, p["w3"], p["b3"])) + y1
    y4 = jnp.tanh(s * lin(y3, p["w4"], p["b4"])) + y2
    return lin(y4, p["w5"], p["b5"])


if __name__ == "__main__":
    # Shapes consistent with the module: coordinate input D_in=2, hidden H=32, D_out=1.
    # N=512 keeps the demo small while giving a 2-step grid (pipelining / megacore).
    N, D_in, H, D_out = 512, 2, 32, 1

    key = jax.random.PRNGKey(0)
    kx, kp = jax.random.split(key)

    x = jax.random.normal(kx, (N, D_in), dtype=jnp.float32)
    params = init_params(kp, D_in, H, D_out)

    a1 = jnp.float32(0.1)
    n = 1.0 / a1                       # self.n = 1 / self.a1.data
    scale = n * a1                     # kept as runtime value, folded into params at pack time

    packed = pack_params(params, scale)
    y = homo_forward(x, packed)
    y = jax.block_until_ready(y)

    y_ref = homo_reference(x, params, scale)
    assert y.shape == (N, D_out)
    np.testing.assert_allclose(np.asarray(y), np.asarray(y_ref), rtol=1e-5, atol=1e-5)

    print("KERNEL_OK")
</pallas_src>

<mosaic_0001>
module attributes {stable_mosaic.version = 11 : i64} {
  func.func @kernel(%arg0: i32, %arg1: memref<256x2xf32, #tpu.memory_space<vmem>>, %arg2: memref<2x128xf32, #tpu.memory_space<vmem>>, %arg3: memref<1x128xf32, #tpu.memory_space<vmem>>, %arg4: memref<128x128xf32, #tpu.memory_space<vmem>>, %arg5: memref<1x128xf32, #tpu.memory_space<vmem>>, %arg6: memref<128x128xf32, #tpu.memory_space<vmem>>, %arg7: memref<1x128xf32, #tpu.memory_space<vmem>>, %arg8: memref<128x128xf32, #tpu.memory_space<vmem>>, %arg9: memref<1x128xf32, #tpu.memory_space<vmem>>, %arg10: memref<1x128xf32, #tpu.memory_space<vmem>>, %arg11: memref<1x1xf32, #tpu.memory_space<vmem>>, %arg12: memref<256x128xf32, #tpu.memory_space<vmem>>) attributes {dimension_semantics = [#tpu.dimension_semantics<parallel>], iteration_bounds = array<i64: 2>, scalar_prefetch = 0 : i64, scratch_operands = 0 : i64, tpu.core_type = #tpu.core_type<tc>, window_params = [{transform_indices = @transform_0, window_bounds = array<i64: 256, 2>}, {pipeline_mode = #tpu.pipeline_mode<synchronous>, transform_indices = @transform_1, window_bounds = array<i64: 2, 128>}, {pipeline_mode = #tpu.pipeline_mode<synchronous>, transform_indices = @transform_2, window_bounds = array<i64: 1, 128>}, {pipeline_mode = #tpu.pipeline_mode<synchronous>, transform_indices = @transform_3, window_bounds = array<i64: 128, 128>}, {pipeline_mode = #tpu.pipeline_mode<synchronous>, transform_indices = @transform_4, window_bounds = array<i64: 1, 128>}, {pipeline_mode = #tpu.pipeline_mode<synchronous>, transform_indices = @transform_5, window_bounds = array<i64: 128, 128>}, {pipeline_mode = #tpu.pipeline_mode<synchronous>, transform_indices = @transform_6, window_bounds = array<i64: 1, 128>}, {pipeline_mode = #tpu.pipeline_mode<synchronous>, transform_indices = @transform_7, window_bounds = array<i64: 128, 128>}, {pipeline_mode = #tpu.pipeline_mode<synchronous>, transform_indices = @transform_8, window_bounds = array<i64: 1, 128>}, {pipeline_mode = #tpu.pipeline_mode<synchronous>, transform_indices = @transform_9, window_bounds = array<i64: 1, 128>}, {pipeline_mode = #tpu.pipeline_mode<synchronous>, transform_indices = @transform_10, window_bounds = array<i64: 1, 1>}, {transform_indices = @transform_11, window_bounds = array<i64: 256, 128>}]} {
    %c0 = arith.constant 0 : index
    %c0_0 = arith.constant 0 : index
    %0 = vector.load %arg1[%c0, %c0_0] : memref<256x2xf32, #tpu.memory_space<vmem>>, vector<256x2xf32>
    %c0_1 = arith.constant 0 : index
    %c0_2 = arith.constant 0 : index
    %1 = vector.load %arg3[%c0_1, %c0_2] : memref<1x128xf32, #tpu.memory_space<vmem>>, vector<1x128xf32>
    %2 = vector.extract_strided_slice %0 {offsets = [0, 0], sizes = [256, 1], strides = [1, 1]} : vector<256x2xf32> to vector<256x1xf32>
    %c0_3 = arith.constant 0 : index
    %c0_4 = arith.constant 0 : index
    %3 = vector.load %arg2[%c0_3, %c0_4] : memref<2x128xf32, #tpu.memory_space<vmem>>, vector<1x128xf32>
    %4 = vector.broadcast %2 : vector<256x1xf32> to vector<256x128xf32>
    %5 = vector.broadcast %3 : vector<1x128xf32> to vector<256x128xf32>
    %6 = arith.mulf %4, %5 : vector<256x128xf32>
    %7 = vector.broadcast %1 : vector<1x128xf32> to vector<256x128xf32>
    %8 = arith.addf %7, %6 : vector<256x128xf32>
    %9 = vector.extract_strided_slice %0 {offsets = [0, 1], sizes = [256, 1], strides = [1, 1]} : vector<256x2xf32> to vector<256x1xf32>
    %c1 = arith.constant 1 : index
    %c0_5 = arith.constant 0 : index
    %10 = vector.load %arg2[%c1, %c0_5] : memref<2x128xf32, #tpu.memory_space<vmem>>, vector<1x128xf32>
    %11 = vector.broadcast %9 : vector<256x1xf32> to vector<256x128xf32>
    %12 = vector.broadcast %10 : vector<1x128xf32> to vector<256x128xf32>
    %13 = arith.mulf %11, %12 : vector<256x128xf32>
    %14 = arith.addf %8, %13 : vector<256x128xf32>
    %15 = math.tanh %14 : vector<256x128xf32>
    %c0_6 = arith.constant 0 : index
    %c0_7 = arith.constant 0 : index
    %16 = vector.load %arg4[%c0_6, %c0_7] : memref<128x128xf32, #tpu.memory_space<vmem>>, vector<128x128xf32>
    %cst = arith.constant dense<0.000000e+00> : vector<256x128xf32>
    %17 = tpu.matmul %15, %16, %cst {dimension_numbers = #tpu.dot_dimension_numbers<[1], [0], [0], [1], [0, 0, 1, 1], [], []>, precision = #tpu.contract_precision<fp32>} : vector<256x128xf32>, vector<128x128xf32>, vector<256x128xf32> -> vector<256x128xf32>
    %c0_8 = arith.constant 0 : index
    %c0_9 = arith.constant 0 : index
    %18 = vector.load %arg5[%c0_8, %c0_9] : memref<1x128xf32, #tpu.memory_space<vmem>>, vector<1x128xf32>
    %19 = vector.broadcast %18 : vector<1x128xf32> to vector<256x128xf32>
    %20 = arith.addf %17, %19 : vector<256x128xf32>
    %21 = math.tanh %20 : vector<256x128xf32>
    %c0_10 = arith.constant 0 : index
    %c0_11 = arith.constant 0 : index
    %22 = vector.load %arg6[%c0_10, %c0_11] : memref<128x128xf32, #tpu.memory_space<vmem>>, vector<128x128xf32>
    %cst_12 = arith.constant dense<0.000000e+00> : vector<256x128xf32>
    %23 = tpu.matmul %21, %22, %cst_12 {dimension_numbers = #tpu.dot_dimension_numbers<[1], [0], [0], [1], [0, 0, 1, 1], [], []>, precision = #tpu.contract_precision<fp32>} : vector<256x128xf32>, vector<128x128xf32>, vector<256x128xf32> -> vector<256x128xf32>
    %c0_13 = arith.constant 0 : index
    %c0_14 = arith.constant 0 : index
    %24 = vector.load %arg7[%c0_13, %c0_14] : memref<1x128xf32, #tpu.memory_space<vmem>>, vector<1x128xf32>
    %25 = vector.broadcast %24 : vector<1x128xf32> to vector<256x128xf32>
    %26 = arith.addf %23, %25 : vector<256x128xf32>
    %27 = math.tanh %26 : vector<256x128xf32>
    %28 = arith.addf %27, %15 : vector<256x128xf32>
    %c0_15 = arith.constant 0 : index
    %c0_16 = arith.constant 0 : index
    %29 = vector.load %arg8[%c0_15, %c0_16] : memref<128x128xf32, #tpu.memory_space<vmem>>, vector<128x128xf32>
    %cst_17 = arith.constant dense<0.000000e+00> : vector<256x128xf32>
    %30 = tpu.matmul %28, %29, %cst_17 {dimension_numbers = #tpu.dot_dimension_numbers<[1], [0], [0], [1], [0, 0, 1, 1], [], []>, precision = #tpu.contract_precision<fp32>} : vector<256x128xf32>, vector<128x128xf32>, vector<256x128xf32> -> vector<256x128xf32>
    %c0_18 = arith.constant 0 : index
    %c0_19 = arith.constant 0 : index
    %31 = vector.load %arg9[%c0_18, %c0_19] : memref<1x128xf32, #tpu.memory_space<vmem>>, vector<1x128xf32>
    %32 = vector.broadcast %31 : vector<1x128xf32> to vector<256x128xf32>
    %33 = arith.addf %30, %32 : vector<256x128xf32>
    %34 = math.tanh %33 : vector<256x128xf32>
    %35 = arith.addf %34, %21 : vector<256x128xf32>
    %c0_20 = arith.constant 0 : index
    %c0_21 = arith.constant 0 : index
    %36 = vector.load %arg10[%c0_20, %c0_21] : memref<1x128xf32, #tpu.memory_space<vmem>>, vector<1x128xf32>
    %37 = vector.broadcast %36 : vector<1x128xf32> to vector<256x128xf32>
    %38 = arith.mulf %35, %37 : vector<256x128xf32>
    %cst_22 = arith.constant dense<0.000000e+00> : vector<256xf32>
    %39 = vector.multi_reduction <add>, %38, %cst_22 [1] : vector<256x128xf32> to vector<256xf32>
    %40 = vector.shape_cast %39 : vector<256xf32> to vector<256x1xf32>
    %c0_23 = arith.constant 0 : index
    %c0_24 = arith.constant 0 : index
    %41 = vector.load %arg11[%c0_23, %c0_24] : memref<1x1xf32, #tpu.memory_space<vmem>>, vector<1x1xf32>
    %42 = vector.broadcast %41 : vector<1x1xf32> to vector<256x1xf32>
    %43 = arith.addf %40, %42 : vector<256x1xf32>
    %44 = vector.shape_cast %43 : vector<256x1xf32> to vector<256x1xf32>
    %45 = vector.broadcast %44 : vector<256x1xf32> to vector<256x128xf32>
    %c0_25 = arith.constant 0 : index
    %c0_26 = arith.constant 0 : index
    %46 = vector.load %arg12[%c0_25, %c0_26] : memref<256x128xf32, #tpu.memory_space<vmem>>, vector<256x128xf32>
    tpu.vector_store %arg12[%c0_25, %c0_26], %45 {strides = array<i32>} : memref<256x128xf32, #tpu.memory_space<vmem>>, vector<256x128xf32>,
    return
  }
  func.func @transform_0(%arg0: i32) -> (i32, i32) {
    %c0_i32 = arith.constant 0 : i32
    %c0_i32_0 = arith.constant 0 : i32
    return %arg0, %c0_i32 : i32, i32
  }
  func.func @transform_1(%arg0: i32) -> (i32, i32) {
    %c0_i32 = arith.constant 0 : i32
    %c0_i32_0 = arith.constant 0 : i32
    %c0_i32_1 = arith.constant 0 : i32
    return %c0_i32, %c0_i32_0 : i32, i32
  }
  func.func @transform_2(%arg0: i32) -> (i32, i32) {
    %c0_i32 = arith.constant 0 : i32
    %c0_i32_0 = arith.constant 0 : i32
    %c0_i32_1 = arith.constant 0 : i32
    return %c0_i32, %c0_i32_0 : i32, i32
  }
  func.func @transform_3(%arg0: i32) -> (i32, i32) {
    %c0_i32 = arith.constant 0 : i32
    %c0_i32_0 = arith.constant 0 : i32
    %c0_i32_1 = arith.constant 0 : i32
    return %c0_i32, %c0_i32_0 : i32, i32
  }
  func.func @transform_4(%arg0: i32) -> (i32, i32) {
    %c0_i32 = arith.constant 0 : i32
    %c0_i32_0 = arith.constant 0 : i32
    %c0_i32_1 = arith.constant 0 : i32
    return %c0_i32, %c0_i32_0 : i32, i32
  }
  func.func @transform_5(%arg0: i32) -> (i32, i32) {
    %c0_i32 = arith.constant 0 : i32
    %c0_i32_0 = arith.constant 0 : i32
    %c0_i32_1 = arith.constant 0 : i32
    return %c0_i32, %c0_i32_0 : i32, i32
  }
  func.func @transform_6(%arg0: i32) -> (i32, i32) {
    %c0_i32 = arith.constant 0 : i32
    %c0_i32_0 = arith.constant 0 : i32
    %c0_i32_1 = arith.constant 0 : i32
    return %c0_i32, %c0_i32_0 : i32, i32
  }
  func.func @transform_7(%arg0: i32) -> (i32, i32) {
    %c0_i32 = arith.constant 0 : i32
    %c0_i32_0 = arith.constant 0 : i32
    %c0_i32_1 = arith.constant 0 : i32
    return %c0_i32, %c0_i32_0 : i32, i32
  }
  func.func @transform_8(%arg0: i32) -> (i32, i32) {
    %c0_i32 = arith.constant 0 : i32
    %c0_i32_0 = arith.constant 0 : i32
    %c0_i32_1 = arith.constant 0 : i32
    return %c0_i32, %c0_i32_0 : i32, i32
  }
  func.func @transform_9(%arg0: i32) -> (i32, i32) {
    %c0_i32 = arith.constant 0 : i32
    %c0_i32_0 = arith.constant 0 : i32
    %c0_i32_1 = arith.constant 0 : i32
    return %c0_i32, %c0_i32_0 : i32, i32
  }
  func.func @transform_10(%arg0: i32) -> (i32, i32) {
    %c0_i32 = arith.constant 0 : i32
    %c0_i32_0 = arith.constant 0 : i32
    %c0_i32_1 = arith.constant 0 : i32
    return %c0_i32, %c0_i32_0 : i32, i32
  }
  func.func @transform_11(%arg0: i32) -> (i32, i32) {
    %c0_i32 = arith.constant 0 : i32
    %c0_i32_0 = arith.constant 0 : i32
    return %arg0, %c0_i32 : i32, i32
  }
}

</mosaic_0001>

<bundles_post_ra>
// kernel: tpu_custom_call.1
= control target key start
LH: loop header
LB: loop body
LE: loop exit
PB: predicated region body
PF: predicated region fallthrough
CT: control target
= control target key end

     0   :  { %s14801_s0 = inlined_call_operand.vmem [shape: f32[512,2], index: 0, kind: input, shape index: {}]   ;;  %s14802_s1 = inlined_call_operand.vmem [shape: f32[2,128], index: 1, kind: input, shape index: {}]   ;;  %s14803_s2 = inlined_call_operand.vmem [shape: f32[1,128], index: 2, kind: input, shape index: {}]   ;;  %s14804_s3 = inlined_call_operand.vmem [shape: f32[128,128], index: 3, kind: input, shape index: {}]   ;;  %s14805_s4 = inlined_call_operand.vmem [shape: f32[1,128], index: 4, kind: input, shape index: {}]   ;;  %s14806_s5 = inlined_call_operand.vmem [shape: f32[128,128], index: 5, kind: input, shape index: {}]   ;;  %s14807_s6 = inlined_call_operand.vmem [shape: f32[1,128], index: 6, kind: input, shape index: {}]   ;;  %s14808_s7 = inlined_call_operand.vmem [shape: f32[128,128], index: 7, kind: input, shape index: {}]   ;;  %s14809_s8 = inlined_call_operand.vmem [shape: f32[1,128], index: 8, kind: input, shape index: {}]   ;;  %s14810_s9 = inlined_call_operand.vmem [shape: f32[1,128], index: 9, kind: input, shape index: {}]   ;;  %s14811_s10 = inlined_call_operand.<no memory space> [shape: f32[1,1], index: 10, kind: input, shape index: {}]   ;;  %s14812_s11 = inlined_call_operand.hbm [shape: f32[512,128], index: 11, kind: output, shape index: {}]  }
   0x1   :  { %v16_v0 = vstv %s14811_s10 }
   0x2   :  { %17 = vst [vmem:[#allocation2] sm:$0x1] %v16_v0 }
   0x3   :  { %18 = vsyncpa [#allocation4], 0 }
   0x4   :  { %20 = vsyncpa [#allocation4 + $0x1], 0  ;;  %s11395_s19 = smov 0   ;;  %s11397_s20 = smov 0  }
   0x5   :  { %s11399_s21 = smov 0   ;;  %s11401_s22 = smov 0  }
   0x6 LB: > { %s11416_s10 = sadd.s32 4294967295, %s11325_s22   ;;  %s7448_s23 = sadd.s32 4294967294, %s11325_s22   ;;  %s11325_s22 = sphi %s11401_s22, %s15820_s22   ;;  %s11321_s21 = sphi %s11399_s21, %s15819_s21   ;;  %s11317_s20 = sphi %s11397_s20, %s15818_s20   ;;  %s11313_s19 = sphi %s11395_s19, %s15817_s19  }
   0x7   : > { %s11420_s24 = sadd.s32 1, %s11325_s22   ;;  %s269_s25 = sadd.s32 1, %s11321_s21 }
   0x8   : > { %s266_s26 = ssub.s32 %s11325_s22, %s11420_s24  ;;  %p279_p0 = scmp.ne.s32.totalorder %s11321_s21, %s11317_s20 }
   0x9   : > { %p267_p1 = scmp.eq.s32.totalorder %s266_s26, 0  ;;  %p280_p2 = scmp.eq.s32.totalorder %s11416_s10, 1 }
   0xa   : > { %p285_p3 = scmp.ne.s32.totalorder %s11317_s20, %s11313_s19  ;;  %p286_p4 = scmp.eq.s32.totalorder %s7448_s23, 1 }
   0xb   : > { %s11431_s27 = scalar_select %p267_p1, %s11321_s21, %s269_s25  }
   0xc   : > { %p11433_p5 = por %p280_p2, %p279_p0  ;;  %p11437_p6 = por %p286_p4, %p285_p3 }
   0xd   : > { %p7451_p7 = scmp.ge.s32.totalorder %s11325_s22, 1  ;;  %p343_p8 = scmp.lt.s32.totalorder %s11325_s22, 3 }
   0xf   : > { %p344_p9 = pnand %p7451_p7, %p343_p8 }
  0x11   : > { %347 = sbr.rel (%p344_p9) target bundleno = 2147 (0x863), region = 64 }
  0x18   : > { %s7453_s30 = sshll.u32 %s11416_s10, 5  ;;  %v14823_v1 = vmov 1   ;;  %v14824_v8 = vmov 0   ;;  %v11484_v13 = vld [vmem:[%s14804_s3] sm:$0xff]  ;;  %v11489_v14 = vld [vmem:[%s14804_s3 + $0x8] sm:$0xff]  ;;  %v11507_v19 = vld [vmem:[%s14804_s3 + $0x10] sm:$0xff] }
  0x19   : > { %10970 = vset.pattern.permute.xlu0 %v14823_v1  ;;  %10968 = vset.pattern.permute.xlu1 %v14823_v1  ;;  %p384_p10 = scmp.lt.s32.totalorder %s7453_s30, 63  ;;  %v911_v15 = vand.u32 4294901760, %v11484_v13  ;;  %v914_v16 = vand.u32 4294901760, %v11489_v14  ;;  %v11512_v20 = vld [vmem:[%s14804_s3 + $0x18] sm:$0xff]  ;;  %v917_v21 = vand.u32 4294901760, %v11507_v19  ;;  %v11531_v25 = vld [vmem:[%s14804_s3 + $0x20] sm:$0xff] }
  0x1a   : > { %v920_v22 = vand.u32 4294901760, %v11512_v20  ;;  %v11536_v26 = vld [vmem:[%s14804_s3 + $0x28] sm:$0xff]  ;;  %v923_v27 = vand.u32 4294901760, %v11531_v25  ;;  %v11555_v31 = vld [vmem:[%s14804_s3 + $0x30] sm:$0xff]  ;;  %v11560_v32 = vld [vmem:[%s14804_s3 + $0x38] sm:$0xff]  ;;  %s380_s13 = sand.u32 1, %s11317_s20  }
  0x1b   : > { %s15822_s30 = smov (!%p384_p10, %s7453_s30), 63  ;;  %v11501_v18 = vpack.c.bf16 %v914_v16, %v911_v15  ;;  %v926_v28 = vand.u32 4294901760, %v11536_v26  ;;  %v14826_v33 = vand.u32 4294901760, %v11555_v31  ;;  %v14821_v34 = vand.u32 4294901760, %v11560_v32  ;;  %v11578_v36 = vld [vmem:[%s14804_s3 + $0x40] sm:$0xff]  ;;  %v11583_v37 = vld [vmem:[%s14804_s3 + $0x48] sm:$0xff] }
  0x1c   : > { %s7454_s12 = sshll.u32 %s15822_s30, 3  ;;  %v11525_v24 = vpack.c.bf16 %v920_v22, %v917_v21  ;;  %v14820_v38 = vand.u32 4294901760, %v11578_v36  ;;  %v14819_v39 = vand.u32 4294901760, %v11583_v37  ;;  %v11602_v41 = vld [vmem:[%s14804_s3 + $0x50] sm:$0xff]  ;;  %v11607_v42 = vld [vmem:[%s14804_s3 + $0x58] sm:$0xff]  ;;  %v11626_v47 = vld [vmem:[%s14804_s3 + $0x60] sm:$0xff] }
  0x1d   : > { %s11449_s15 = scalar_lea.vmem %s14801_s0, %s7454_s12  ;;  %9870 = vmatprep.subr.bf16.mxu0 %v11501_v18  ;;  %9774 = vmatprep.subr.bf16.mxu1 %v11501_v18  ;;  %v11549_v30 = vpack.c.bf16 %v926_v28, %v923_v27  ;;  %v11572_v35 = vpack.c.bf16 %v14821_v34, %v14826_v33  ;;  %v14818_v44 = vand.u32 4294901760, %v11602_v41  ;;  %v14817_v45 = vand.u32 4294901760, %v11607_v42  ;;  %v11631_v48 = vld [vmem:[%s14804_s3 + $0x68] sm:$0xff]  ;;  %v11651_v53 = vld [vmem:[%s14804_s3 + $0x70] sm:$0xff]  ;;  %v11656_v54 = vld [vmem:[%s14804_s3 + $0x78] sm:$0xff]  ;;  %s7452_s14 = sshll.u32 %s380_s13, 8 }
  0x1e   : > { %v11452_v2 = vld [vmem:[%s11449_s15 + $0x10] sm:$0xff]  ;;  %v390_v3 = vld [vmem:[%s11449_s15] sm:$0xff]  ;;  %v391_v5 = vld [vmem:[%s11449_s15 + $0x8] sm:$0xff]  ;;  %9872 = vmatpush3.bf16.msra.mxu0 %v11501_v18  ;;  %9776 = vmatpush3.bf16.msra.mxu1 %v11501_v18  ;;  %v11596_v40 = vpack.c.bf16 %v14819_v39, %v14820_v38  ;;  %v14816_v49 = vand.u32 4294901760, %v11626_v47  ;;  %v14815_v50 = vand.u32 4294901760, %v11631_v48  ;;  %v14814_v55 = vand.u32 4294901760, %v11651_v53 }
  0x1f   : > { %668 = vperm.xlu0 %10970, %v11452_v2   ;;  %660 = vperm.xlu1 %10968, %v390_v3   ;;  %v11457_v4 = vld [vmem:[%s11449_s15 + $0x30] sm:$0xff]  ;;  %v393_v7 = vld [vmem:[%s11449_s15 + $0x18] sm:$0xff]  ;;  %v394_v11 = vld [vmem:[%s11449_s15 + $0x20] sm:$0xff]  ;;  %15248 = vst [vmem:[#allocation6_spill] sm:$0xff] %v11572_v35  ;;  %v11620_v46 = vpack.c.bf16 %v14817_v45, %v14818_v44  ;;  %v14813_v56 = vand.u32 4294901760, %v11656_v54  ;;  %s14715_s16 = scalar_lea.vmem [#allocation3], %s7452_s14 }
  0x20   : > { %v11462_v6 = vld [vmem:[%s11449_s15 + $0x50] sm:$0xff]  ;;  %v395_v23 = vld [vmem:[%s11449_s15 + $0x28] sm:$0xff]  ;;  %9874 = vmatprep.subr.bf16.mxu0 %v11525_v24  ;;  %v397_v29 = vld [vmem:[%s11449_s15 + $0x38] sm:$0xff]  ;;  %9778 = vmatprep.subr.bf16.mxu1 %v11525_v24  ;;  %15249 = vst [vmem:[#allocation7_spill] sm:$0xff] %v11596_v40  ;;  %v11644_v52 = vpack.c.bf16 %v14815_v50, %v14816_v49  ;;  %s7468_s17 = sshll.u32 %s11416_s10, 12  ;;  %s7386_s18 = sshll.u32 %s14715_s16, 4  ;;  %s14755_s18 = int_to_ptr.vmem [resolvable:$true] %s7386_s18 }
  0x21   : > { %v11468_v9 = vld [vmem:[%s11449_s15 + $0x70] sm:$0xff]  ;;  %v398_v43 = vld [vmem:[%s11449_s15 + $0x40] sm:$0xff]  ;;  %15250 = vst [vmem:[#allocation8_spill] sm:$0xff] %v11620_v46  ;;  %v399_v51 = vld [vmem:[%s11449_s15 + $0x48] sm:$0xff]  ;;  %v11667_v57 = vpack.c.bf16 %v14813_v56, %v14814_v55  ;;  %s14753_s26 = scalar_lea.hbm %s14812_s11, %s7468_s17  ;;  %s14760_s30 = scalar_lea.sflag [#allocation4], %s380_s13 }
  0x22   : > { %v11473_v10 = vld [vmem:[%s11449_s15 + $0x90] sm:$0xff]  ;;  %9876 = vmatpush3.bf16.msra.mxu0 %v11525_v24  ;;  %9780 = vmatpush3.bf16.msra.mxu1 %v11525_v24  ;;  %15251 = vst [vmem:[#allocation9_spill] sm:$0xff] %v11644_v52  ;;  %v403_v58 = vld [vmem:[%s11449_s15 + $0x68] sm:$0xff]  ;;  %v401_v59 = vld [vmem:[%s11449_s15 + $0x58] sm:$0xff]  ;;  %s11263_s12 = scalar_lea.vmem %s14755_s18, 4096  ;;  %s11329_s10 = smov [#allocation3]  }
  0x23   : > { %684 = vperm.xlu0 %10970, %v11457_v4   ;;  %664 = vperm.xlu1 %10968, %v391_v5   ;;  %v11478_v12 = vld [vmem:[%s11449_s15 + $0xb0] sm:$0xff]  ;;  %15252 = vst [vmem:[#allocation10_spill] sm:$0xff] %v11667_v57  ;;  %v407_v60 = vld [vmem:[%s11449_s15 + $0x88] sm:$0xff]  ;;  %v402_v61 = vld [vmem:[%s11449_s15 + $0x60] sm:$0xff]  ;;  %p11264_p11 = scmp.ne.s32.totalorder %s14755_s18, %s11263_s12 }
  0x24   : > { %v11495_v17 = vld [vmem:[%s11449_s15 + $0xd0] sm:$0xff]  ;;  %9878 = vmatprep.subr.bf16.mxu0 %v11549_v30  ;;  %9782 = vmatprep.subr.bf16.mxu1 %v11549_v30  ;;  %v411_v62 = vld [vmem:[%s11449_s15 + $0xa8] sm:$0xff]  ;;  %v405_v0 = vld [vmem:[%s11449_s15 + $0x78] sm:$0xff] }
  0x25   : > { %v415_v63 = vld [vmem:[%s11449_s15 + $0xc8] sm:$0xff]  ;;  %p11265_p12 = pnand %p11264_p11, %p11433_p5 }
  0x26   : > { %9880 = vmatpush3.bf16.msra.mxu0 %v11549_v30  ;;  %9784 = vmatpush3.bf16.msra.mxu1 %v11549_v30 }
  0x27   : > { %700 = vperm.xlu0 %10970, %v11462_v6   ;;  %10969 = vset.pattern.permute.xlu1 %v14824_v8  ;;  %p11266_p13 = pneg %p11265_p12 }
  0x28   : > { %441 = vperm.xlu1 %10969, %v393_v7   ;;  %9882 = vmatprep.subr.bf16.mxu0 %v11572_v35 }
  0x29   : > { %9786 = vmatprep.subr.bf16.mxu1 %v11572_v35 }
  0x2a   : > { %9884 = vmatpush3.bf16.msra.mxu0 %v11572_v35  ;;  %9788 = vmatpush3.bf16.msra.mxu1 %v11572_v35 }
  0x2b   : > { %716 = vperm.xlu0 %10970, %v11468_v9   ;;  %9886 = vmatprep.subr.bf16.mxu0 %v11596_v40 }
  0x2c   : > { %10971 = vset.pattern.permute.xlu1 %v14823_v1  ;;  %9790 = vmatprep.subr.bf16.mxu1 %v11596_v40 }
  0x2d   : > { %672 = vperm.xlu1 %10971, %v393_v7   ;;  %v413_v7 = vld [vmem:[%s11449_s15 + $0xb8] sm:$0xff] }
  0x2e   : > { %9888 = vmatpush3.bf16.msra.mxu0 %v11596_v40  ;;  %9792 = vmatpush3.bf16.msra.mxu1 %v11596_v40 }
  0x2f   : > { %732 = vperm.xlu0 %10970, %v11473_v10   ;;  %9890 = vmatprep.subr.bf16.mxu0 %v11620_v46 }
  0x30   : > { %9794 = vmatprep.subr.bf16.mxu1 %v11620_v46 }
  0x31   : > { %10972 = vset.pattern.permute.xlu1 %v14824_v8 }
  0x32   : > { %446 = vperm.xlu1 %10972, %v394_v11   ;;  %9892 = vmatpush3.bf16.msra.mxu0 %v11620_v46 }
  0x33   : > { %748 = vperm.xlu0 %10970, %v11478_v12   ;;  %9796 = vmatpush3.bf16.msra.mxu1 %v11620_v46 }
  0x34   : > { %9894 = vmatprep.subr.bf16.mxu0 %v11644_v52  ;;  %9798 = vmatprep.subr.bf16.mxu1 %v11644_v52 }
  0x36   : > { %10973 = vset.pattern.permute.xlu1 %v14823_v1  ;;  %9896 = vmatpush3.bf16.msra.mxu0 %v11644_v52 }
  0x37   : > { %764 = vperm.xlu0 %10970, %v11495_v17   ;;  %676 = vperm.xlu1 %10973, %v394_v11  }
  0x38   : > { %9800 = vmatpush3.bf16.msra.mxu1 %v11644_v52  ;;  %9898 = vmatprep.subr.bf16.mxu0 %v11667_v57  ;;  %v15268_v52 = vmov 1  }
  0x39   : > { %9802 = vmatprep.subr.bf16.mxu1 %v11667_v57 }
  0x3a   : > { %9900 = vmatpush3.bf16.msra.mxu0 %v11667_v57 }
  0x3b   : > { %10995 = vset.pattern.permute.xlu0 %v14824_v8  ;;  %680 = vperm.xlu1 %10973, %v395_v23  }
  0x3c   : > { %426 = vperm.xlu0 %10995, %v390_v3   ;;  %9804 = vmatpush3.bf16.msra.mxu1 %v11667_v57  ;;  %v406_v3 = vld [vmem:[%s11449_s15 + $0x80] sm:$0xff] }
  0x3f   : > { %10974 = vset.pattern.permute.xlu1 %v14824_v8 }
  0x40   : > { %431 = vperm.xlu0 %10995, %v391_v5   ;;  %461 = vperm.xlu1 %10974, %v397_v29   ;;  %v409_v5 = vld [vmem:[%s11449_s15 + $0x98] sm:$0xff] }
  0x44   : > { %436 = vperm.xlu0 %10995, %v11452_v2   ;;  %10975 = vset.pattern.permute.xlu1 %v14823_v1  ;;  %v11693_v2 = vld [vmem:[%s11449_s15 + $0xe8] sm:$0xff] }
  0x45   : > { %688 = vperm.xlu1 %10975, %v397_v29  }
  0x48   : > { %451 = vperm.xlu0 %10995, %v395_v23   ;;  %v11722_v23 = vld [vmem:[%s14802_s1] ss:$0 sm:$0xff] }
  0x49   : > { %10976 = vset.pattern.permute.xlu1 %v14824_v8 }
  0x4a   : > { %466 = vperm.xlu1 %10976, %v398_v43  }
  0x4c   : > { %456 = vperm.xlu0 %10995, %v11457_v4   ;;  %v420_v4 = vld [vmem:[%s11449_s15 + $0xf0] sm:$0xff] }
  0x4e   : > { %10977 = vset.pattern.permute.xlu1 %v14823_v1 }
  0x4f   : > { %692 = vperm.xlu1 %10977, %v398_v43   ;;  %v414_v43 = vld [vmem:[%s11449_s15 + $0xc0] sm:$0xff] }
  0x50   : > { %471 = vperm.xlu0 %10995, %v399_v51  }
  0x53   : > { %696 = vperm.xlu1 %10977, %v399_v51  }
  0x54   : > { %476 = vperm.xlu0 %10995, %v11462_v6   ;;  %v410_v6 = vld [vmem:[%s11449_s15 + $0xa0] sm:$0xff] }
  0x57   : > { %10978 = vset.pattern.permute.xlu1 %v14824_v8 }
  0x58   : > { %491 = vperm.xlu0 %10995, %v403_v58   ;;  %481 = vperm.xlu1 %10978, %v401_v59  }
  0x5c   : > { %496 = vperm.xlu0 %10995, %v11468_v9   ;;  %10979 = vset.pattern.permute.xlu1 %v14823_v1 }
  0x5d   : > { %704 = vperm.xlu1 %10979, %v401_v59  }
  0x60   : > { %511 = vperm.xlu0 %10995, %v407_v60  }
  0x61   : > { %10980 = vset.pattern.permute.xlu1 %v14824_v8 }
  0x62   : > { %486 = vperm.xlu1 %10980, %v402_v61  }
  0x64   : > { %516 = vperm.xlu0 %10995, %v11473_v10  }
  0x66   : > { %10981 = vset.pattern.permute.xlu1 %v14823_v1 }
  0x67   : > { %708 = vperm.xlu1 %10981, %v402_v61  }
  0x68   : > { %531 = vperm.xlu0 %10995, %v411_v62  }
  0x6b   : > { %712 = vperm.xlu1 %10981, %v403_v58   ;;  %v11730_v58 = vld [vmem:[%s14803_s2] ss:$0 sm:$0xff] }
  0x6c   : > { %536 = vperm.xlu0 %10995, %v11478_v12  }
  0x6f   : > { %10982 = vset.pattern.permute.xlu1 %v14824_v8 }
  0x70   : > { %551 = vperm.xlu0 %10995, %v415_v63   ;;  %501 = vperm.xlu1 %10982, %v405_v0  }
  0x74   : > { %556 = vperm.xlu0 %10995, %v11495_v17   ;;  %10983 = vset.pattern.permute.xlu1 %v14823_v1 }
  0x75   : > { %720 = vperm.xlu1 %10983, %v405_v0  }
  0x78   : > { %571 = vperm.xlu0 %10995, %v11693_v2  }
  0x79   : > { %10984 = vset.pattern.permute.xlu1 %v14824_v8 }
  0x7a   : > { %506 = vperm.xlu1 %10984, %v406_v3  }
  0x7c   : > { %576 = vperm.xlu0 %10995, %v420_v4  }
  0x7e   : > { %10985 = vset.pattern.permute.xlu1 %v14823_v1 }
  0x7f   : > { %724 = vperm.xlu1 %10985, %v406_v3  }
  0x80   : > { %11000 = vset.pattern.permute.xlu0 %v14823_v1 }
  0x81   : > { %780 = vperm.xlu0 %11000, %v420_v4  }
  0x83   : > { %728 = vperm.xlu1 %10985, %v407_v60   ;;  %v11737_v60 = vld [vmem:[%s14802_s1 + $0x1] ss:$0 sm:$0xff] }
  0x85   : > { %11003 = vset.pattern.permute.xlu0 %v14824_v8 }
  0x87   : > { %10986 = vset.pattern.permute.xlu1 %v14824_v8 }
  0x88   : > { %521 = vperm.xlu1 %10986, %v409_v5  }
  0x8c   : > { %10987 = vset.pattern.permute.xlu1 %v14823_v1 }
  0x8d   : > { %736 = vperm.xlu1 %10987, %v409_v5  }
  0x91   : > { %10988 = vset.pattern.permute.xlu1 %v14824_v8 }
  0x92   : > { %526 = vperm.xlu1 %10988, %v410_v6  }
  0x96   : > { %10989 = vset.pattern.permute.xlu1 %v14823_v1 }
  0x97   : > { %740 = vperm.xlu1 %10989, %v410_v6  }
  0x9b   : > { %744 = vperm.xlu1 %10989, %v411_v62  }
  0x9e   : > { %v661_v9 = vpop.permute.xlu1 %660  ;;  %v11709_v10 = vpop.permute.xlu0 %668 }
  0x9f   : > { %10990 = vset.pattern.permute.xlu1 %v14824_v8 }
  0xa0   : > { %541 = vperm.xlu1 %10990, %v413_v7  }
  0xa2   : > { %v11712_v11 = vpop.permute.xlu1 %664  ;;  %v11714_v12 = vpop.permute.xlu0 %684 }
  0xa4   : > { %10991 = vset.pattern.permute.xlu1 %v14823_v1 }
  0xa5   : > { %752 = vperm.xlu1 %10991, %v413_v7  }
  0xa6   : > { %v11717_v17 = vpop.permute.xlu0 %700 }
  0xa7   : > { %v442_v29 = vpop.permute.xlu1 %441 }
  0xa8   : > { %v591_v51 = vmul.f32 %v11722_v23, %v442_v29  ;;  %v11750_v29 = vsub.f32 %v11484_v13, %v911_v15 }
  0xa9   : > { %10992 = vset.pattern.permute.xlu1 %v14824_v8 }
  0xaa   : > { %546 = vperm.xlu1 %10992, %v414_v43   ;;  %v11732_v59 = vpop.permute.xlu0 %716  ;;  %v629_v62 = vadd.f32 %v11730_v58, %v591_v51  ;;  %v11755_v51 = vsub.f32 %v11489_v14, %v914_v16 }
  0xac   : > { %v673_v61 = vpop.permute.xlu1 %672 }
  0xad   : > { %v794_v0 = vmul.f32 %v11737_v60, %v673_v61  ;;  %v417_v61 = vld [vmem:[%s11449_s15 + $0xd8] sm:$0xff] }
  0xae   : > { %10993 = vset.pattern.permute.xlu1 %v14823_v1  ;;  %v11742_v3 = vpop.permute.xlu0 %732 }
  0xaf   : > { %v826_v4 = vadd.f32 %v794_v0, %v629_v62  ;;  %756 = vperm.xlu1 %10993, %v414_v43   ;;  %v1314_v43 = vand.u32 4294901760, %v11750_v29  ;;  %v1321_v62 = vand.u32 4294901760, %v11755_v51 }
  0xb1   : > { %11004 = vtanh.f32 %v826_v4  ;;  %v447_v5 = vpop.permute.xlu1 %446  ;;  %v1315_v13 = vsub.f32 %v11750_v29, %v1314_v43  ;;  %v1322_v15 = vsub.f32 %v11755_v51, %v1321_v62  ;;  %v11767_v14 = vpack.c.bf16 %v1321_v62, %v1314_v43 }
  0xb2   : > { %v11744_v6 = vpop.permute.xlu0 %748  ;;  %v592_v7 = vmul.f32 %v11722_v23, %v447_v5  ;;  %v11779_v43 = vsub.f32 %v11507_v19, %v917_v21 }
  0xb3   : > { %760 = vperm.xlu1 %10993, %v415_v63   ;;  %v1316_v56 = vand.u32 4294901760, %v1315_v13  ;;  %v1323_v55 = vand.u32 4294901760, %v1322_v15  ;;  %9902 = vmatprep.subr.bf16.mxu0 %v11767_v14  ;;  %v418_v15 = vld [vmem:[%s11449_s15 + $0xe0] sm:$0xff] }
  0xb4   : > { %v630_v63 = vadd.f32 %v11730_v58, %v592_v7 }
  0xb6   : > { %v677_v0 = vpop.permute.xlu1 %676  ;;  %v11760_v4 = vpop.permute.xlu0 %764 }
  0xb7   : > { %v795_v5 = vmul.f32 %v11737_v60, %v677_v0  ;;  %10994 = vset.pattern.permute.xlu1 %v14824_v8  ;;  %v11772_v0 = vpack.c.bf16 %v1323_v55, %v1316_v56  ;;  %v11788_v55 = vsub.f32 %v11512_v20, %v920_v22  ;;  %v791_v56 = vmul.f32 %v11737_v60, %v661_v9 }
  0xb8   : > { %561 = vperm.xlu1 %10994, %v417_v61  }
  0xb9   : > { %v827_v16 = vadd.f32 %v795_v5, %v630_v63  ;;  %9806 = vmatprep.subr.bf16.mxu1 %v11772_v0  ;;  %v1335_v22 = vand.u32 4294901760, %v11788_v55 }
  0xba   : > { %v681_v50 = vpop.permute.xlu1 %680 }
  0xbb   : > { %v11770_v49 = vpop.eup %11004  ;;  %11006 = vtanh.f32 %v827_v16  ;;  %v427_v7 = vpop.permute.xlu0 %426 }
  0xbc   : > { %15253 = vst [vmem:[#allocation11_spill] sm:$0xff] %v11770_v49  ;;  %v588_v45 = vmul.f32 %v11722_v23, %v427_v7  ;;  %10996 = vset.pattern.permute.xlu1 %v14823_v1  ;;  %v11782_v62 = vand.u32 4294901760, %v11770_v49  ;;  %v793_v7 = vmul.f32 %v11737_v60, %v11709_v10 }
  0xbd   : > { %768 = vperm.xlu1 %10996, %v417_v61   ;;  %v1328_v61 = vand.u32 4294901760, %v11779_v43 }
  0xbe   : > { %v626_v63 = vadd.f32 %v11730_v58, %v588_v45  ;;  %v11799_v20 = vsub.f32 %v11770_v49, %v11782_v62  ;;  %v792_v45 = vmul.f32 %v11737_v60, %v11712_v11  ;;  %v11817_v11 = vsub.f32 %v11536_v26, %v926_v28 }
  0xbf   : > { %v432_v5 = vpop.permute.xlu0 %431  ;;  %v462_v13 = vpop.permute.xlu1 %461  ;;  %v1329_v39 = vsub.f32 %v11779_v43, %v1328_v61  ;;  %v15259_v49 = vmov 0  }
  0xc0   : > { %v823_v19 = vadd.f32 %v791_v56, %v626_v63  ;;  %v589_v21 = vmul.f32 %v11722_v23, %v432_v5  ;;  %v595_v16 = vmul.f32 %v11722_v23, %v462_v13  ;;  %15254 = vst [vmem:[#allocation12_spill] sm:$0xff] %v11799_v20  ;;  %v11810_v63 = vsub.f32 %v11531_v25, %v923_v27 }
  0xc1   : > { %10997 = vset.pattern.permute.xlu1 %v14824_v8  ;;  %v14822_v25 = vand.u32 4294901760, %v11799_v20  ;;  %v1336_v27 = vsub.f32 %v11788_v55, %v1335_v22  ;;  %v1330_v38 = vand.u32 4294901760, %v1329_v39  ;;  %v1349_v34 = vand.u32 4294901760, %v11817_v11 }
  0xc2   : > { %11008 = vtanh.f32 %v823_v19  ;;  %v627_v9 = vadd.f32 %v11730_v58, %v589_v21  ;;  %566 = vperm.xlu1 %10997, %v418_v15   ;;  %v633_v10 = vadd.f32 %v11730_v58, %v595_v16  ;;  %v796_v39 = vmul.f32 %v11737_v60, %v681_v50 }
  0xc3   : > { %v437_v56 = vpop.permute.xlu0 %436 }
  0xc4   : > { %v824_v5 = vadd.f32 %v792_v45, %v627_v9  ;;  %v590_v13 = vmul.f32 %v11722_v23, %v437_v56  ;;  %v689_v44 = vpop.permute.xlu1 %688  ;;  %v1342_v56 = vand.u32 4294901760, %v11810_v63 }
  0xc5   : > { %v11819_v19 = vpop.eup %11006  ;;  %v798_v21 = vmul.f32 %v11737_v60, %v689_v44 }
  0xc6   : > { %15255 = vst [vmem:[#allocation13_spill] sm:$0xff] %v11819_v19  ;;  %11010 = vtanh.f32 %v824_v5  ;;  %v628_v45 = vadd.f32 %v11730_v58, %v590_v13  ;;  %10998 = vset.pattern.permute.xlu1 %v14823_v1  ;;  %v11828_v9 = vand.u32 4294901760, %v11819_v19  ;;  %v421_v1 = vld [vmem:[%s11449_s15 + $0xf8] sm:$0xff]  ;;  %s11267_s15 = sshll.u32 %s11329_s10, 4  ;;  %s11268_s15 = int_to_ptr.vmem [resolvable:$false] %s11267_s15 }
  0xc7   : > { %v830_v26 = vadd.f32 %v798_v21, %v633_v10  ;;  %v452_v28 = vpop.permute.xlu0 %451  ;;  %772 = vperm.xlu1 %10998, %v418_v15   ;;  %v11840_v10 = vsub.f32 %v11799_v20, %v14822_v25  ;;  %v1337_v15 = vand.u32 4294901760, %v1336_v27  ;;  %s11269_s14 = scalar_lea.vmem %s11268_s15, 8192  ;;  %p11270_p0 = scmp.lt.s32.totalorder %s14755_s18, %s11268_s15 }
  0xc8   : > { %v825_v16 = vadd.f32 %v793_v7, %v628_v45  ;;  %v593_v44 = vmul.f32 %v11722_v23, %v452_v28  ;;  %v11835_v13 = vsub.f32 %v11819_v19, %v11828_v9  ;;  %v797_v7 = vmul.f32 %v11737_v60, %v11714_v12  ;;  %p11271_p1 = scmp.lt.s32.totalorder %s11269_s14, %s11263_s12 }
  0xc9   : > { %11012 = vtanh.f32 %v830_v26  ;;  %v467_v5 = vpop.permute.xlu1 %466  ;;  %v11848_v45 = vmul.f32 %v11737_v60, %v11717_v17  ;;  %v11852_v26 = vmul.f32 %v11737_v60, %v11732_v59  ;;  %v1343_v12 = vsub.f32 %v11810_v63, %v1342_v56 }
  0xca   : > { %15256 = vst [vmem:[#allocation14_spill] sm:$0xff] %v11835_v13  ;;  %11014 = vtanh.f32 %v825_v16  ;;  %v631_v21 = vadd.f32 %v11730_v58, %v593_v44  ;;  %v596_v28 = vmul.f32 %v11722_v23, %v467_v5  ;;  %v11860_v44 = vpack.c.bf16 %v1335_v22, %v1328_v61  ;;  %p11272_p2 = por %p11271_p1, %p11270_p0 }
  0xcb   : > { %v457_v27 = vpop.permute.xlu0 %456  ;;  %776 = vperm.xlu1 %10998, %v11693_v2   ;;  %v1350_v17 = vsub.f32 %v11817_v11, %v1349_v34  ;;  %v11869_v2 = vpack.c.bf16 %v1337_v15, %v1330_v38  ;;  %v15258_v61 = vand.u32 4294901760, %v11555_v31  ;;  %v1344_v15 = vand.u32 4294901760, %v1343_v12 }
  0xcc   : > { %v11857_v25 = vpop.eup %11008  ;;  %v828_v50 = vadd.f32 %v796_v39, %v631_v21  ;;  %v594_v16 = vmul.f32 %v11722_v23, %v457_v27  ;;  %v11872_v21 = vpack.c.bf16 %v1349_v34, %v1342_v56  ;;  %v634_v27 = vadd.f32 %v11730_v58, %v596_v28  ;;  %p11273_p3 = pnand %p11272_p2, %p11266_p13 }
  0xcd   : > { %15257 = vst [vmem:[#allocation15_spill] sm:$0xff] %v11857_v25  ;;  %v11865_v59 = vand.u32 4294901760, %v11857_v25  ;;  %v11877_v22 = vsub.f32 %v11555_v31, %v15258_v61  ;;  %v1351_v31 = vand.u32 4294901760, %v1350_v17  ;;  %v15263_v12 = vand.u32 4294901760, %v11835_v13 }
  0xce   : > { %11016 = vtanh.f32 %v828_v50  ;;  %v632_v33 = vadd.f32 %v11730_v58, %v594_v16  ;;  %v693_v39 = vpop.permute.xlu1 %692  ;;  %v15262_v16 = vand.u32 4294901760, %v11560_v32 }
  0xcf   : > { %v799_v19 = vmul.f32 %v11737_v60, %v693_v39  ;;  %v472_v5 = vpop.permute.xlu0 %471  ;;  %10999 = vset.pattern.permute.xlu1 %v15259_v49  ;;  %v11884_v38 = vsub.f32 %v11857_v25, %v11865_v59  ;;  %v11901_v25 = vsub.f32 %v11835_v13, %v15263_v12  ;;  %v1356_v17 = vand.u32 4294901760, %v11877_v22 }
  0xd0   : > { %v11886_v50 = vpop.eup %11010  ;;  %v829_v34 = vadd.f32 %v797_v7, %v632_v33  ;;  %v597_v56 = vmul.f32 %v11722_v23, %v472_v5  ;;  %581 = vperm.xlu1 %10999, %v421_v1   ;;  %v11892_v28 = vsub.f32 %v11560_v32, %v15262_v16  ;;  %v15264_v32 = vand.u32 4294901760, %v11578_v36 }
  0xd1   : > { %15260 = vst [vmem:[#allocation16_spill] sm:$0xff] %v11884_v38  ;;  %15261 = vst [vmem:[#allocation17_spill] sm:$0xff] %v11886_v50  ;;  %v831_v39 = vadd.f32 %v799_v19, %v634_v27  ;;  %v993_v61 = vand.u32 4294901760, %v11884_v38  ;;  %v11896_v8 = vand.u32 4294901760, %v11886_v50  ;;  %v11939_v40 = vsub.f32 %v11877_v22, %v1356_v17 }
  0xd2   : > { %11018 = vtanh.f32 %v829_v34  ;;  %v635_v33 = vadd.f32 %v11730_v58, %v597_v56  ;;  %v697_v7 = vpop.permute.xlu1 %696  ;;  %v11908_v19 = vsub.f32 %v11578_v36, %v15264_v32 }
  0xd3   : > { %v11910_v5 = vpop.eup %11012  ;;  %11020 = vtanh.f32 %v831_v39  ;;  %v800_v27 = vmul.f32 %v11737_v60, %v697_v7  ;;  %v477_v16 = vpop.permute.xlu0 %476  ;;  %8605 = vmatprep.mubr.f32.mxu0 %v993_v61  ;;  %v994_v12 = vsub.f32 %v11884_v38, %v993_v61  ;;  %v11916_v34 = vsub.f32 %v11886_v50, %v11896_v8 }
  0xd4   : > { %15265 = vst [vmem:[#allocation18_spill] sm:$0xff] %v11910_v5  ;;  %v11918_v56 = vpop.eup %11014  ;;  %v598_v57 = vmul.f32 %v11722_v23, %v477_v16  ;;  %11001 = vset.pattern.permute.xlu1 %v15268_v52  ;;  %v11923_v36 = vand.u32 4294901760, %v11910_v5  ;;  %v1363_v39 = vand.u32 4294901760, %v11892_v28  ;;  %v11936_v16 = vpack.c.bf16 %v1351_v31, %v1344_v15 }
  0xd5   : > { %15266 = vst [vmem:[#allocation19_spill] sm:$0xff] %v11916_v34  ;;  %15267 = vst [vmem:[#allocation20_spill] sm:$0xff] %v11918_v56  ;;  %v832_v32 = vadd.f32 %v800_v27, %v635_v33  ;;  %784 = vperm.xlu1 %11001, %v421_v1   ;;  %v995_v61 = vand.u32 4294901760, %v994_v12  ;;  %v1003_v38 = vand.u32 4294901760, %v11916_v34  ;;  %v11929_v50 = vand.u32 4294901760, %v11918_v56 }
  0xd6   : > { %v636_v46 = vadd.f32 %v11730_v58, %v598_v57  ;;  %v11934_v52 = vsub.f32 %v11910_v5, %v11923_v36  ;;  %v15270_v12 = vand.u32 4294901760, %v11583_v37 }
  0xd7   : > { %11022 = vtanh.f32 %v832_v32  ;;  %v11941_v33 = vpop.permute.xlu0 %491  ;;  %8365 = vmatprep.mubr.f32.mxu1 %v995_v61  ;;  %8606 = vmatmul.mubr.f32.vlgmr.msra.gmra.mrb[0].mxu0 %v1003_v38  ;;  %v482_v1 = vpop.permute.xlu1 %481  ;;  %v1004_v27 = vsub.f32 %v11916_v34, %v1003_v38  ;;  %v11946_v57 = vsub.f32 %v11918_v56, %v11929_v50  ;;  %v1364_v61 = vsub.f32 %v11892_v28, %v1363_v39 }
  0xd8   : > { %v11951_v15 = vsub.f32 %v11583_v37, %v15270_v12  ;;  %v11953_v31 = vpop.eup %11016  ;;  %v833_v32 = vadd.f32 %v11848_v45, %v636_v46  ;;  %v599_v7 = vmul.f32 %v11722_v23, %v482_v1  ;;  %9904 = vmatpush3.bf16.msra.mxu0 %v11767_v14  ;;  %v15272_v38 = vand.u32 4294901760, %v11908_v19 }
  0xd9   : > { %15269 = vst [vmem:[#allocation21_spill] sm:$0xff] %v11946_v57  ;;  %15271 = vst [vmem:[#allocation22_spill] sm:$0xff] %v11953_v31  ;;  %v1005_v56 = vand.u32 4294901760, %v1004_v27  ;;  %v1013_v34 = vand.u32 4294901760, %v11946_v57  ;;  %v11966_v37 = vand.u32 4294901760, %v11953_v31  ;;  %v1035_v12 = vand.u32 4294901760, %v11901_v25  ;;  %9906 = vmatprep.subr.bf16.mxu0 %v11860_v44  ;;  %11002 = vset.pattern.permute.xlu1 %v15259_v49 }
  0xda   : > { %v11962_v5 = vsub.f32 %v11908_v19, %v15272_v38  ;;  %11024 = vtanh.f32 %v833_v32  ;;  %v1358_v14 = vand.u32 4294901760, %v11939_v40  ;;  %v11973_v45 = vpack.c.bf16 %v1363_v39, %v1356_v17 }
  0xdb   : > { %v497_v1 = vpop.permute.xlu0 %496  ;;  %8366 = vmatmul.mubr.f32.vlgmr.msra.gmra.mrb[0].mxu1 %v1005_v56  ;;  %8608 = vmatprep.mubr.f32.mxu0 %v1013_v34  ;;  %v1014_v27 = vsub.f32 %v11946_v57, %v1013_v34  ;;  %v11978_v38 = vsub.f32 %v11953_v31, %v11966_v37  ;;  %v1377_v25 = vand.u32 4294901760, %v11951_v15  ;;  %v15274_v49 = vand.u32 4294901760, %v11602_v41 }
  0xdc   : > { %v11986_v46 = vpop.eup %11018  ;;  %v637_v40 = vadd.f32 %v11730_v58, %v599_v7  ;;  %v602_v17 = vmul.f32 %v11722_v23, %v497_v1  ;;  %v15276_v56 = vand.u32 4294901760, %v11799_v20  ;;  %v705_v34 = vpop.permute.xlu1 %704  ;;  %9808 = vmatpush3.bf16.msra.mxu1 %v11772_v0  ;;  %v1365_v39 = vand.u32 4294901760, %v1364_v61  ;;  %9908 = vmatpush3.bf16.msra.mxu0 %v11860_v44 }
  0xdd   : > { %15273 = vst [vmem:[#allocation23_spill] sm:$0xff] %v11978_v38  ;;  %v11984_v32 = vsub.f32 %v11602_v41, %v15274_v49  ;;  %15275 = vst [vmem:[#allocation24_spill] sm:$0xff] %v11986_v46  ;;  %v1372_v31 = vand.u32 4294901760, %v11962_v5  ;;  %v11994_v57 = vpop.eup %11020  ;;  %v802_v41 = vmul.f32 %v11737_v60, %v705_v34  ;;  %v15278_v49 = vand.u32 4294901760, %v11835_v13  ;;  %9810 = vmatprep.subr.bf16.mxu1 %v11869_v2 }
  0xde   : > { %8609 = vmatmul.mubr.f32.gmra.mrb[2].mxu0 %v15276_v56  ;;  %15277 = vst [vmem:[#allocation25_spill] sm:$0xff] %v11994_v57  ;;  %v1015_v35 = vand.u32 4294901760, %v1014_v27  ;;  %v1043_v7 = vand.u32 4294901760, %v11978_v38  ;;  %v12001_v1 = vand.u32 4294901760, %v11986_v46  ;;  %v640_v0 = vadd.f32 %v11730_v58, %v602_v17  ;;  %9910 = vmatprep.subr.bf16.mxu0 %v11872_v21 }
  0xdf   : > { %8611 = vmatprep.mubr.f32.mxu0 %v15278_v49  ;;  %v12006_v61 = vand.u32 4294901760, %v11994_v57  ;;  %v15279_v5 = vand.u32 4294901760, %v11934_v52  ;;  %v1378_v27 = vsub.f32 %v11951_v15, %v1377_v25  ;;  %v834_v34 = vadd.f32 %v802_v41, %v637_v40 }
  0xe0   : > { %8368 = vmatprep.mubr.f32.mxu1 %v1015_v35  ;;  %v12015_v49 = vsub.f32 %v11986_v46, %v12001_v1  ;;  %v1044_v13 = vsub.f32 %v11978_v38, %v1043_v7  ;;  %v1384_v17 = vand.u32 4294901760, %v11984_v32  ;;  %v837_v20 = vadd.f32 %v11852_v26, %v640_v0  ;;  %9812 = vmatpush3.bf16.msra.mxu1 %v11869_v2 }
  0xe1   : > { %v1064_v56 = vsub.f32 %v11934_v52, %v15279_v5  ;;  %v15280_v5 = vand.u32 4294901760, %v11840_v10  ;;  %v12025_v44 = vsub.f32 %v11994_v57, %v12006_v61  ;;  %v1379_v35 = vand.u32 4294901760, %v1378_v27  ;;  %v12032_v46 = vpop.eup %11022  ;;  %v487_v38 = vpop.permute.xlu1 %486  ;;  %9814 = vmatprep.subr.bf16.mxu1 %v11936_v16  ;;  %9912 = vmatpush3.bf16.msra.mxu0 %v11872_v21 }
  0xe2   : > { %8612 = vmatmul.mubr.f32.gmra.mrb[4].mxu0 %v1043_v7  ;;  %v15282_v40 = vand.u32 4294901760, %v11607_v42  ;;  %15283 = vst [vmem:[#allocation27_spill] sm:$0xff] %v12032_v46  ;;  %11026 = vtanh.f32 %v834_v34  ;;  %v1053_v26 = vand.u32 4294901760, %v12015_v49  ;;  %v1045_v10 = vand.u32 4294901760, %v1044_v13  ;;  %9914 = vmatprep.subr.bf16.mxu0 %v11973_v45 }
  0xe3   : > { %8369 = vmatmul.mubr.f32.gmra.mrb[2].mxu1 %v15280_v5  ;;  %15281 = vst [vmem:[#allocation26_spill] sm:$0xff] %v12025_v44  ;;  %v9817_v7 = vpack.c.bf16 %v1365_v39, %v1358_v14  ;;  %v601_v0 = vmul.f32 %v11722_v23, %v11941_v33  ;;  %v600_v27 = vmul.f32 %v11722_v23, %v487_v38  ;;  %v1073_v5 = vand.u32 4294901760, %v12025_v44 }
  0xe4   : > { %v12030_v41 = vsub.f32 %v11607_v42, %v15282_v40  ;;  %8371 = vmatprep.mubr.f32.mxu1 %v1035_v12  ;;  %v1385_v42 = vsub.f32 %v11984_v32, %v1384_v17  ;;  %11028 = vtanh.f32 %v837_v20  ;;  %8614 = vmatprep.mubr.f32.mxu0 %v1053_v26  ;;  %v1054_v13 = vsub.f32 %v12015_v49, %v1053_v26  ;;  %v12050_v14 = vpop.eup %11024 }
  0xe5   : > { %v12045_v2 = vand.u32 4294901760, %v12032_v46  ;;  %v15284_v33 = vand.u32 4294901760, %v11908_v19  ;;  %15285 = vst [vmem:[#allocation28_spill] sm:$0xff] %v12050_v14  ;;  %v15286_v38 = vand.u32 4294901760, %v11934_v52  ;;  %v1065_v21 = vand.u32 4294901760, %v1064_v56  ;;  %9816 = vmatpush3.bf16.msra.mxu1 %v11936_v16  ;;  %9916 = vmatpush3.bf16.msra.mxu0 %v11973_v45 }
  0xe6   : > { %v1074_v20 = vsub.f32 %v12025_v44, %v1073_v5  ;;  %v9821_v39 = vpack.c.bf16 %v1379_v35, %v1372_v31  ;;  %v1391_v34 = vand.u32 4294901760, %v12030_v41  ;;  %v1055_v40 = vand.u32 4294901760, %v1054_v13  ;;  %v709_v35 = vpop.permute.xlu1 %708  ;;  %9818 = vmatprep.subr.bf16.mxu1 %v9817_v7 }
  0xe7   : > { %v9917_v12 = vpack.c.bf16 %v1377_v25, %v15284_v33  ;;  %8372 = vmatmul.mubr.f32.gmra.mrb[4].mxu1 %v1045_v10  ;;  %8615 = vmatmul.mubr.f32.gmra.mrb[6].mxu0 %v15286_v38  ;;  %v12058_v26 = vsub.f32 %v12032_v46, %v12045_v2  ;;  %v12061_v25 = vand.u32 4294901760, %v12050_v14  ;;  %v15287_v10 = vand.u32 4294901760, %v11626_v47 }
  0xe8   : > { %8617 = vmatprep.mubr.f32.mxu0 %v1073_v5  ;;  %v638_v31 = vadd.f32 %v11730_v58, %v600_v27  ;;  %v1075_v33 = vand.u32 4294901760, %v1074_v20  ;;  %v1386_v5 = vand.u32 4294901760, %v1385_v42  ;;  %v1392_v13 = vsub.f32 %v12030_v41, %v1391_v34  ;;  %8374 = vmatprep.mubr.f32.mxu1 %v1055_v40 }
  0xe9   : > { %v12067_v56 = vsub.f32 %v11626_v47, %v15287_v10  ;;  %v803_v38 = vmul.f32 %v11737_v60, %v709_v35  ;;  %v1083_v16 = vand.u32 4294901760, %v12058_v26  ;;  %v12076_v57 = vsub.f32 %v12050_v14, %v12061_v25  ;;  %9918 = vmatprep.subr.bf16.mxu0 %v9917_v12  ;;  %9820 = vmatpush3.bf16.msra.mxu1 %v9817_v7 }
  0xea   : > { %v639_v27 = vadd.f32 %v11730_v58, %v601_v0  ;;  %v1393_v20 = vand.u32 4294901760, %v1392_v13  ;;  %v9921_v45 = vpack.c.bf16 %v1391_v34, %v1384_v17  ;;  %v15289_v42 = vand.u32 4294901760, %v11631_v48  ;;  %v713_v44 = vpop.permute.xlu1 %712  ;;  %9920 = vmatpush3.bf16.msra.mxu0 %v9917_v12  ;;  %v12091_v34 = vpop.permute.xlu0 %511  ;;  %9822 = vmatprep.subr.bf16.mxu1 %v9821_v39 }
  0xeb   : > { %15288 = vst [vmem:[#allocation29_spill] sm:$0xff] %v12076_v57  ;;  %v1398_v47 = vand.u32 4294901760, %v12067_v56  ;;  %8375 = vmatmul.mubr.f32.gmra.mrb[6].mxu1 %v1065_v21  ;;  %v835_v40 = vadd.f32 %v803_v38, %v638_v31  ;;  %8618 = vmatmul.mubr.f32.gmra.mrb[8].mxu0 %v1083_v16  ;;  %v1084_v35 = vsub.f32 %v12058_v26, %v1083_v16  ;;  %v1093_v14 = vand.u32 4294901760, %v12076_v57 }
  0xec   : > { %v12083_v10 = vsub.f32 %v11631_v48, %v15289_v42  ;;  %8377 = vmatprep.mubr.f32.mxu1 %v1075_v33  ;;  %v9825_v0 = vpack.c.bf16 %v1393_v20, %v1386_v5  ;;  %v12089_v21 = vpop.eup %11026  ;;  %v804_v48 = vmul.f32 %v11737_v60, %v713_v44  ;;  %9922 = vmatprep.subr.bf16.mxu0 %v9921_v45  ;;  %v15293_v42 = vand.u32 4294901760, %v11651_v53 }
  0xed   : > { %v1399_v46 = vsub.f32 %v12067_v56, %v1398_v47  ;;  %15290 = vst [vmem:[#allocation30_spill] sm:$0xff] %v12089_v21  ;;  %11030 = vtanh.f32 %v835_v40  ;;  %v1085_v31 = vand.u32 4294901760, %v1084_v35  ;;  %8620 = vmatprep.mubr.f32.mxu0 %v1093_v14  ;;  %v1094_v33 = vsub.f32 %v12076_v57, %v1093_v14  ;;  %9824 = vmatpush3.bf16.msra.mxu1 %v9821_v39 }
  0xee   : > { %v1405_v17 = vand.u32 4294901760, %v12083_v10  ;;  %v12096_v13 = vand.u32 4294901760, %v12089_v21  ;;  %v12099_v12 = vpop.eup %11028  ;;  %v836_v5 = vadd.f32 %v804_v48, %v639_v27  ;;  %9924 = vmatpush3.bf16.msra.mxu0 %v9921_v45  ;;  %v12108_v40 = vsub.f32 %v11651_v53, %v15293_v42  ;;  %9826 = vmatprep.subr.bf16.mxu1 %v9825_v0  ;;  %v517_v53 = vpop.permute.xlu0 %516 }
  0xef   : > { %15291 = vst [vmem:[#allocation31_spill] sm:$0xff] %v12099_v12  ;;  %8378 = vmatmul.mubr.f32.gmra.mrb[8].mxu1 %v1085_v31  ;;  %v1095_v38 = vand.u32 4294901760, %v1094_v33  ;;  %v1400_v16 = vand.u32 4294901760, %v1399_v46  ;;  %v502_v35 = vpop.permute.xlu1 %501  ;;  %v15294_v27 = vand.u32 4294901760, %v11656_v54  ;;  %v12121_v45 = vand.u32 4294901760, %v12099_v12 }
  0xf0   : > { %v1406_v7 = vsub.f32 %v12083_v10, %v1405_v17  ;;  %v9925_v20 = vpack.c.bf16 %v1405_v17, %v1398_v47  ;;  %v12103_v44 = vsub.f32 %v12089_v21, %v12096_v13  ;;  %11032 = vtanh.f32 %v836_v5 }
  0xf1   : > { %8380 = vmatprep.mubr.f32.mxu1 %v1095_v38  ;;  %v12113_v46 = vsub.f32 %v11656_v54, %v15294_v27  ;;  %v12117_v47 = vpack.c.bf16 %v11755_v51, %v11750_v29  ;;  %v603_v17 = vmul.f32 %v11722_v23, %v502_v35  ;;  %v1412_v31 = vand.u32 4294901760, %v12108_v40  ;;  %9828 = vmatpush3.bf16.msra.mxu1 %v9825_v0 }
  0xf2   : > { %15292 = vst [vmem:[#allocation32_spill] sm:$0xff] %v12103_v44  ;;  %v1407_v14 = vand.u32 4294901760, %v1406_v7  ;;  %v1103_v39 = vand.u32 4294901760, %v12103_v44  ;;  %9926 = vmatprep.subr.bf16.mxu0 %v9925_v20  ;;  %v606_v54 = vmul.f32 %v11722_v23, %v517_v53  ;;  %v12136_v27 = vsub.f32 %v12099_v12, %v12121_v45 }
  0xf3   : > { %v1419_v33 = vand.u32 4294901760, %v12113_v46  ;;  %9928 = vmatpush3.bf16.msra.mxu0 %v9925_v20  ;;  %v1413_v51 = vsub.f32 %v12108_v40, %v1412_v31  ;;  %v809_v20 = vmul.f32 %v11737_v60, %v11742_v3 }
  0xf4   : > { %v9829_v48 = vpack.c.bf16 %v1407_v14, %v1400_v16  ;;  %8621 = vmatmul.mubr.f32.gmra.mrb[10].mxu0 %v1103_v39  ;;  %v1104_v29 = vsub.f32 %v12103_v44, %v1103_v39  ;;  %v721_v5 = vpop.permute.xlu1 %720  ;;  %v641_v14 = vadd.f32 %v11730_v58, %v603_v17  ;;  %15296 = vst [vmem:[#allocation34_spill] sm:$0xff] %v12136_v27 }
  0xf5   : > { %v1420_v7 = vsub.f32 %v12113_v46, %v1419_v33  ;;  %v9929_v42 = vpack.c.bf16 %v1419_v33, %v1412_v31  ;;  %v806_v35 = vmul.f32 %v11737_v60, %v721_v5  ;;  %v1414_v0 = vand.u32 4294901760, %v1413_v51 }
  0xf6   : > { %9830 = vmatprep.subr.bf16.mxu1 %v9829_v48  ;;  %v1105_v38 = vand.u32 4294901760, %v1104_v29  ;;  %v644_v39 = vadd.f32 %v11730_v58, %v606_v54  ;;  %v12146_v17 = vpack.c.bf16 %v11788_v55, %v11779_v43 }
  0xf7   : > { %v12130_v16 = vpop.eup %11030  ;;  %v1421_v31 = vand.u32 4294901760, %v1420_v7  ;;  %9930 = vmatprep.subr.bf16.mxu0 %v9929_v42  ;;  %v838_v33 = vadd.f32 %v806_v35, %v641_v14  ;;  %9832 = vmatpush3.bf16.msra.mxu1 %v9829_v48  ;;  %v1133_v7 = vand.u32 4294901760, %v12136_v27  ;;  %v605_v14 = vmul.f32 %v11722_v23, %v12091_v34 }
  0xf8   : > { %15295 = vst [vmem:[#allocation33_spill] sm:$0xff] %v12130_v16  ;;  %8381 = vmatmul.mubr.f32.gmra.mrb[10].mxu1 %v1105_v38  ;;  %v12142_v53 = vand.u32 4294901760, %v12130_v16  ;;  %9932 = vmatpush3.bf16.msra.mxu0 %v9929_v42  ;;  %v841_v5 = vadd.f32 %v809_v20, %v644_v39 }
  0xf9   : > { %v9833_v3 = vpack.c.bf16 %v1421_v31, %v1414_v0  ;;  %9934 = vmatprep.subr.bf16.mxu0 %v11501_v18  ;;  %11034 = vtanh.f32 %v838_v33  ;;  %v507_v51 = vpop.permute.xlu1 %506  ;;  %v1134_v35 = vsub.f32 %v12136_v27, %v1133_v7 }
  0xfa   : > { %v12150_v29 = vsub.f32 %v12130_v16, %v12142_v53  ;;  %v12153_v54 = vpop.eup %11032  ;;  %v604_v43 = vmul.f32 %v11722_v23, %v507_v51  ;;  %11036 = vtanh.f32 %v841_v5  ;;  %v643_v51 = vadd.f32 %v11730_v58, %v605_v14 }
  0xfb   : > { %15298 = vst [vmem:[#allocation36_spill] sm:$0xff] %v12153_v54  ;;  %v12158_v38 = vand.u32 4294901760, %v12153_v54  ;;  %9834 = vmatprep.subr.bf16.mxu1 %v9833_v3 }
  0xfc   : > { %15297 = vst [vmem:[#allocation35_spill] sm:$0xff] %v12150_v29  ;;  %v1113_v48 = vand.u32 4294901760, %v12150_v29  ;;  %9836 = vmatpush3.bf16.msra.mxu1 %v9833_v3  ;;  %v642_v31 = vadd.f32 %v11730_v58, %v604_v43  ;;  %v12175_v3 = vpack.c.bf16 %v11817_v11, %v11810_v63 }
  0xfd   : > { %v12164_v42 = vsub.f32 %v12153_v54, %v12158_v38  ;;  %9838 = vmatprep.subr.bf16.mxu1 %v12117_v47 }
  0xfe   : > { %8623 = vmatprep.mubr.f32.mxu0 %v1113_v48  ;;  %v1114_v55 = vsub.f32 %v12150_v29, %v1113_v48  ;;  %v725_v0 = vpop.permute.xlu1 %724  ;;  %v532_v48 = vpop.permute.xlu0 %531 }
  0xff   : > { %15299 = vst [vmem:[#allocation37_spill] sm:$0xff] %v12164_v42  ;;  %v1123_v39 = vand.u32 4294901760, %v12164_v42  ;;  %v807_v33 = vmul.f32 %v11737_v60, %v725_v0 }
 0x100   : > { %v1115_v20 = vand.u32 4294901760, %v1114_v55  ;;  %v1135_v55 = vand.u32 4294901760, %v1134_v35  ;;  %v12191_v35 = vpack.c.bf16 %v11892_v28, %v11877_v22 }
 0x101   : > { %8624 = vmatmul.mubr.f32.gmra.mrb[12].mxu0 %v1123_v39  ;;  %v1124_v34 = vsub.f32 %v12164_v42, %v1123_v39  ;;  %v839_v5 = vadd.f32 %v807_v33, %v642_v31 }
 0x102   : > { %8383 = vmatprep.mubr.f32.mxu1 %v1115_v20  ;;  %8626 = vmatprep.mubr.f32.mxu0 %v1133_v7  ;;  %v729_v12 = vpop.permute.xlu1 %728  ;;  %v537_v0 = vpop.permute.xlu0 %536 }
 0x103   : > { %v1125_v16 = vand.u32 4294901760, %v1124_v34  ;;  %v12179_v54 = vpop.eup %11034  ;;  %11038 = vtanh.f32 %v839_v5  ;;  %v808_v43 = vmul.f32 %v11737_v60, %v729_v12  ;;  %v610_v39 = vmul.f32 %v11722_v23, %v537_v0 }
 0x104   : > { %15300 = vst [vmem:[#allocation38_spill] sm:$0xff] %v12179_v54  ;;  %v12183_v63 = vand.u32 4294901760, %v12179_v54  ;;  %v12193_v20 = vpop.eup %11036 }
 0x105   : > { %8384 = vmatmul.mubr.f32.gmra.mrb[12].mxu1 %v1125_v16  ;;  %v840_v11 = vadd.f32 %v808_v43, %v643_v51  ;;  %15302 = vst [vmem:[#allocation40_spill] sm:$0xff] %v12193_v20  ;;  %v12200_v33 = vand.u32 4294901760, %v12193_v20  ;;  %v648_v43 = vadd.f32 %v11730_v58, %v610_v39 }
 0x106   : > { %8386 = vmatprep.mubr.f32.mxu1 %v1135_v55  ;;  %v12187_v14 = vsub.f32 %v12179_v54, %v12183_v63  ;;  %v813_v55 = vmul.f32 %v11737_v60, %v11744_v6 }
 0x107   : > { %11040 = vtanh.f32 %v840_v11  ;;  %v522_v7 = vpop.permute.xlu1 %521 }
 0x108   : > { %15301 = vst [vmem:[#allocation39_spill] sm:$0xff] %v12187_v14  ;;  %v1143_v12 = vand.u32 4294901760, %v12187_v14  ;;  %v607_v16 = vmul.f32 %v11722_v23, %v522_v7  ;;  %v12214_v7 = vsub.f32 %v12193_v20, %v12200_v33 }
 0x10a   : > { %8627 = vmatmul.mubr.f32.gmra.mrb[14].mxu0 %v1143_v12  ;;  %v1144_v31 = vsub.f32 %v12187_v14, %v1143_v12  ;;  %v645_v22 = vadd.f32 %v11730_v58, %v607_v16  ;;  %15304 = vst [vmem:[#allocation42_spill] sm:$0xff] %v12214_v7  ;;  %v12218_v12 = vpack.c.bf16 %v11951_v15, %v11908_v19 }
 0x10c   : > { %v737_v34 = vpop.permute.xlu1 %736  ;;  %v1145_v51 = vand.u32 4294901760, %v1144_v31  ;;  %v845_v31 = vadd.f32 %v813_v55, %v648_v43 }
 0x10d   : > { %v12202_v5 = vpop.eup %11038  ;;  %v810_v28 = vmul.f32 %v11737_v60, %v737_v34 }
 0x10e   : > { %15303 = vst [vmem:[#allocation41_spill] sm:$0xff] %v12202_v5  ;;  %8387 = vmatmul.mubr.f32.gmra.mrb[14].mxu1 %v1145_v51  ;;  %v12210_v11 = vand.u32 4294901760, %v12202_v5 }
 0x10f   : > { %v842_v0 = vadd.f32 %v810_v28, %v645_v22  ;;  %v1173_v28 = vand.u32 4294901760, %v12214_v7 }
 0x110   : > { %v12222_v16 = vsub.f32 %v12202_v5, %v12210_v11 }
 0x111   : > { %v12224_v6 = vpop.eup %11040  ;;  %11042 = vtanh.f32 %v842_v0  ;;  %v527_v39 = vpop.permute.xlu1 %526  ;;  %v609_v0 = vmul.f32 %v11722_v23, %v532_v48  ;;  %v1174_v54 = vsub.f32 %v12214_v7, %v1173_v28 }
 0x112   : > { %15305 = vst [vmem:[#allocation43_spill] sm:$0xff] %v12222_v16  ;;  %15306 = vst [vmem:[#allocation44_spill] sm:$0xff] %v12224_v6  ;;  %v1153_v34 = vand.u32 4294901760, %v12222_v16  ;;  %v12228_v51 = vand.u32 4294901760, %v12224_v6  ;;  %v608_v22 = vmul.f32 %v11722_v23, %v527_v39  ;;  %11044 = vtanh.f32 %v845_v31  ;;  %v552_v48 = vpop.permute.xlu0 %551 }
 0x113   : > { %v1175_v7 = vand.u32 4294901760, %v1174_v54 }
 0x114   : > { %8629 = vmatprep.mubr.f32.mxu0 %v1153_v34  ;;  %v1154_v19 = vsub.f32 %v12222_v16, %v1153_v34  ;;  %v12235_v15 = vsub.f32 %v12224_v6, %v12228_v51  ;;  %v646_v5 = vadd.f32 %v11730_v58, %v608_v22  ;;  %v12244_v34 = vpack.c.bf16 %v12030_v41, %v11984_v32 }
 0x115   : > { %v647_v22 = vadd.f32 %v11730_v58, %v609_v0 }
 0x116   : > { %15307 = vst [vmem:[#allocation45_spill] sm:$0xff] %v12235_v15  ;;  %v741_v55 = vpop.permute.xlu1 %740  ;;  %v1155_v43 = vand.u32 4294901760, %v1154_v19  ;;  %v1163_v20 = vand.u32 4294901760, %v12235_v15 }
 0x117   : > { %v811_v39 = vmul.f32 %v11737_v60, %v741_v55 }
 0x118   : > { %8389 = vmatprep.mubr.f32.mxu1 %v1155_v43  ;;  %8630 = vmatmul.mubr.f32.gmra.mrb[16].mxu0 %v1163_v20  ;;  %v1164_v6 = vsub.f32 %v12235_v15, %v1163_v20 }
 0x119   : > { %v843_v31 = vadd.f32 %v811_v39, %v646_v5  ;;  %8632 = vmatprep.mubr.f32.mxu0 %v1173_v28  ;;  %v557_v5 = vpop.permute.xlu0 %556  ;;  %v12260_v28 = vpack.c.bf16 %v12083_v10, %v12067_v56 }
 0x11a   : > { %v745_v19 = vpop.permute.xlu1 %744  ;;  %v1165_v21 = vand.u32 4294901760, %v1164_v6  ;;  %v614_v43 = vmul.f32 %v11722_v23, %v557_v5 }
 0x11b   : > { %v12247_v16 = vpop.eup %11042  ;;  %11046 = vtanh.f32 %v843_v31  ;;  %v812_v55 = vmul.f32 %v11737_v60, %v745_v19 }
 0x11c   : > { %15308 = vst [vmem:[#allocation46_spill] sm:$0xff] %v12247_v16  ;;  %8390 = vmatmul.mubr.f32.gmra.mrb[16].mxu1 %v1165_v21  ;;  %v12252_v32 = vand.u32 4294901760, %v12247_v16  ;;  %v12262_v0 = vpop.eup %11044 }
 0x11d   : > { %v844_v41 = vadd.f32 %v812_v55, %v647_v22  ;;  %8392 = vmatprep.mubr.f32.mxu1 %v1175_v7  ;;  %15310 = vst [vmem:[#allocation48_spill] sm:$0xff] %v12262_v0  ;;  %v12269_v39 = vand.u32 4294901760, %v12262_v0  ;;  %v652_v55 = vadd.f32 %v11730_v58, %v614_v43 }
 0x11e   : > { %v12256_v20 = vsub.f32 %v12247_v16, %v12252_v32  ;;  %v572_v16 = vpop.permute.xlu0 %571 }
 0x11f   : > { %11048 = vtanh.f32 %v844_v41  ;;  %v542_v6 = vpop.permute.xlu1 %541 }
 0x120   : > { %15309 = vst [vmem:[#allocation47_spill] sm:$0xff] %v12256_v20  ;;  %v1183_v21 = vand.u32 4294901760, %v12256_v20  ;;  %v611_v54 = vmul.f32 %v11722_v23, %v542_v6  ;;  %v12281_v6 = vsub.f32 %v12262_v0, %v12269_v39 }
 0x122   : > { %8633 = vmatmul.mubr.f32.gmra.mrb[18].mxu0 %v1183_v21  ;;  %v1184_v7 = vsub.f32 %v12256_v20, %v1183_v21  ;;  %v649_v56 = vadd.f32 %v11730_v58, %v611_v54  ;;  %15312 = vst [vmem:[#allocation50_spill] sm:$0xff] %v12281_v6  ;;  %v12285_v21 = vpack.c.bf16 %v12113_v46, %v12108_v40  ;;  %v1213_v46 = vand.u32 4294901760, %v12281_v6 }
 0x123   : > { %v817_v54 = vmul.f32 %v11737_v60, %v11760_v4 }
 0x124   : > { %v753_v31 = vpop.permute.xlu1 %752  ;;  %v1185_v19 = vand.u32 4294901760, %v1184_v7  ;;  %v1214_v15 = vsub.f32 %v12281_v6, %v1213_v46 }
 0x125   : > { %v12271_v22 = vpop.eup %11046  ;;  %v814_v10 = vmul.f32 %v11737_v60, %v753_v31 }
 0x126   : > { %15311 = vst [vmem:[#allocation49_spill] sm:$0xff] %v12271_v22  ;;  %8393 = vmatmul.mubr.f32.gmra.mrb[18].mxu1 %v1185_v19  ;;  %v12277_v41 = vand.u32 4294901760, %v12271_v22  ;;  %v849_v19 = vadd.f32 %v817_v54, %v652_v55  ;;  %v613_v54 = vmul.f32 %v11722_v23, %v552_v48  ;;  %v1215_v48 = vand.u32 4294901760, %v1214_v15 }
 0x127   : > { %v846_v5 = vadd.f32 %v814_v10, %v649_v56 }
 0x128   : > { %v12291_v7 = vsub.f32 %v12271_v22, %v12277_v41  ;;  %v651_v14 = vadd.f32 %v11730_v58, %v613_v54 }
 0x129   : > { %v12293_v43 = vpop.eup %11048  ;;  %11050 = vtanh.f32 %v846_v5  ;;  %v547_v31 = vpop.permute.xlu1 %546 }
 0x12a   : > { %15313 = vst [vmem:[#allocation51_spill] sm:$0xff] %v12291_v7  ;;  %15314 = vst [vmem:[#allocation52_spill] sm:$0xff] %v12293_v43  ;;  %v1193_v56 = vand.u32 4294901760, %v12291_v7  ;;  %v12297_v10 = vand.u32 4294901760, %v12293_v43  ;;  %v612_v40 = vmul.f32 %v11722_v23, %v547_v31  ;;  %11052 = vtanh.f32 %v849_v19 }
 0x12c   : > { %8635 = vmatprep.mubr.f32.mxu0 %v1193_v56  ;;  %v1194_v4 = vsub.f32 %v12291_v7, %v1193_v56  ;;  %v12304_v0 = vsub.f32 %v12293_v43, %v12297_v10  ;;  %v650_v20 = vadd.f32 %v11730_v58, %v612_v40 }
 0x12e   : > { %15315 = vst [vmem:[#allocation53_spill] sm:$0xff] %v12304_v0  ;;  %v757_v5 = vpop.permute.xlu1 %756  ;;  %v1195_v22 = vand.u32 4294901760, %v1194_v4  ;;  %v1203_v55 = vand.u32 4294901760, %v12304_v0 }
 0x12f   : > { %v815_v31 = vmul.f32 %v11737_v60, %v757_v5 }
 0x130   : > { %8395 = vmatprep.mubr.f32.mxu1 %v1195_v22  ;;  %8636 = vmatmul.mubr.f32.gmra.mrb[20].mxu0 %v1203_v55  ;;  %v1204_v56 = vsub.f32 %v12304_v0, %v1203_v55  ;;  %v577_v22 = vpop.permute.xlu0 %576 }
 0x131   : > { %v847_v43 = vadd.f32 %v815_v31, %v650_v20  ;;  %8638 = vmatprep.mubr.f32.mxu0 %v1213_v46 }
 0x132   : > { %v761_v19 = vpop.permute.xlu1 %760  ;;  %v1205_v7 = vand.u32 4294901760, %v1204_v56 }
 0x133   : > { %v12312_v4 = vpop.eup %11050  ;;  %11054 = vtanh.f32 %v847_v43  ;;  %v816_v23 = vmul.f32 %v11737_v60, %v761_v19  ;;  %v11260_v60 = vld [vmem:[%s14802_s1] ss:$0 sm:$0xff] }
 0x134   : > { %15316 = vst [vmem:[#allocation54_spill] sm:$0xff] %v12312_v4  ;;  %8396 = vmatmul.mubr.f32.gmra.mrb[20].mxu1 %v1205_v7  ;;  %v12317_v40 = vand.u32 4294901760, %v12312_v4  ;;  %v12323_v55 = vpop.eup %11052  ;;  %v618_v7 = vmul.f32 %v11260_v60, %v577_v22  ;;  %v781_v43 = vpop.permute.xlu0 %780  ;;  %v11262_v22 = vld [vmem:[%s14802_s1 + $0x1] ss:$0 sm:$0xff] }
 0x135   : > { %v848_v5 = vadd.f32 %v816_v23, %v651_v14  ;;  %8398 = vmatprep.mubr.f32.mxu1 %v1215_v48  ;;  %15318 = vst [vmem:[#allocation56_spill] sm:$0xff] %v12323_v55  ;;  %v12331_v54 = vand.u32 4294901760, %v12323_v55  ;;  %v11261_v23 = vld [vmem:[%s14803_s2] ss:$0 sm:$0xff] }
 0x136   : > { %v12321_v20 = vsub.f32 %v12312_v4, %v12317_v40 }
 0x137   : > { %11056 = vtanh.f32 %v848_v5  ;;  %v562_v46 = vpop.permute.xlu1 %561 }
 0x138   : > { %15317 = vst [vmem:[#allocation55_spill] sm:$0xff] %v12321_v20  ;;  %v1223_v58 = vand.u32 4294901760, %v12321_v20  ;;  %v615_v15 = vmul.f32 %v11260_v60, %v562_v46  ;;  %v656_v46 = vadd.f32 %v11261_v23, %v618_v7 }
 0x13a   : > { %8639 = vmatmul.mubr.f32.gmra.mrb[22].mxu0 %v1223_v58  ;;  %v1224_v14 = vsub.f32 %v12321_v20, %v1223_v58  ;;  %v653_v48 = vadd.f32 %v11261_v23, %v615_v15  ;;  %v821_v58 = vmul.f32 %v11262_v22, %v781_v43 }
 0x13c   : > { %v769_v31 = vpop.permute.xlu1 %768  ;;  %v1225_v56 = vand.u32 4294901760, %v1224_v14  ;;  %v12346_v14 = vsub.f32 %v12323_v55, %v12331_v54 }
 0x13d   : > { %v12333_v19 = vpop.eup %11054  ;;  %v818_v5 = vmul.f32 %v11262_v22, %v769_v31  ;;  %v853_v31 = vadd.f32 %v821_v58, %v656_v46  ;;  %v617_v58 = vmul.f32 %v11260_v60, %v572_v16 }
 0x13e   : > { %15319 = vst [vmem:[#allocation57_spill] sm:$0xff] %v12333_v19  ;;  %8399 = vmatmul.mubr.f32.gmra.mrb[22].mxu1 %v1225_v56  ;;  %v12342_v4 = vand.u32 4294901760, %v12333_v19 }
 0x13f   : > { %v850_v20 = vadd.f32 %v818_v5, %v653_v48  ;;  %v1253_v48 = vand.u32 4294901760, %v12346_v14 }
 0x140   : > { %v12350_v6 = vsub.f32 %v12333_v19, %v12342_v4 }
 0x141   : > { %v12352_v15 = vpop.eup %11056  ;;  %11058 = vtanh.f32 %v850_v20  ;;  %v567_v0 = vpop.permute.xlu1 %566  ;;  %v1254_v29 = vsub.f32 %v12346_v14, %v1253_v48 }
 0x142   : > { %15320 = vst [vmem:[#allocation58_spill] sm:$0xff] %v12350_v6  ;;  %15321 = vst [vmem:[#allocation59_spill] sm:$0xff] %v12352_v15  ;;  %v1233_v7 = vand.u32 4294901760, %v12350_v6  ;;  %v12356_v43 = vand.u32 4294901760, %v12352_v15  ;;  %v616_v56 = vmul.f32 %v11260_v60, %v567_v0  ;;  %11060 = vtanh.f32 %v853_v31 }
 0x143   : > { %v655_v31 = vadd.f32 %v11261_v23, %v617_v58  ;;  %v1255_v57 = vand.u32 4294901760, %v1254_v29 }
 0x144   : > { %8641 = vmatprep.mubr.f32.mxu0 %v1233_v7  ;;  %v1234_v5 = vsub.f32 %v12350_v6, %v1233_v7  ;;  %v12362_v55 = vsub.f32 %v12352_v15, %v12356_v43  ;;  %v654_v27 = vadd.f32 %v11261_v23, %v616_v56 }
 0x146   : > { %v773_v19 = vpop.permute.xlu1 %772  ;;  %v1235_v20 = vand.u32 4294901760, %v1234_v5  ;;  %v1243_v46 = vand.u32 4294901760, %v12362_v55 }
 0x147   : > { %v819_v42 = vmul.f32 %v11262_v22, %v773_v19 }
 0x148   : > { %8401 = vmatprep.mubr.f32.mxu1 %v1235_v20  ;;  %8642 = vmatmul.mubr.f32.gmra.mrb[24].mxu0 %v1243_v46  ;;  %v1244_v0 = vsub.f32 %v12362_v55, %v1243_v46 }
 0x149   : > { %v851_v44 = vadd.f32 %v819_v42, %v654_v27  ;;  %8644 = vmatprep.mubr.f32.mxu0 %v1253_v48 }
 0x14a   : > { %v777_v7 = vpop.permute.xlu1 %776  ;;  %v1245_v6 = vand.u32 4294901760, %v1244_v0 }
 0x14b   : > { %v12367_v15 = vpop.eup %11058  ;;  %11062 = vtanh.f32 %v851_v44  ;;  %v820_v5 = vmul.f32 %v11262_v22, %v777_v7 }
 0x14c   : > { %15322 = vst [vmem:[#allocation60_spill] sm:$0xff] %v12367_v15  ;;  %8402 = vmatmul.mubr.f32.gmra.mrb[24].mxu1 %v1245_v6  ;;  %v12370_v16 = vand.u32 4294901760, %v12367_v15  ;;  %v12376_v42 = vpop.eup %11060 }
 0x14d   : > { %v852_v19 = vadd.f32 %v820_v5, %v655_v31  ;;  %8404 = vmatprep.mubr.f32.mxu1 %v1255_v57  ;;  %15323 = vst [vmem:[#allocation61_spill] sm:$0xff] %v12376_v42  ;;  %v12381_v29 = vand.u32 4294901760, %v12376_v42 }
 0x14e   : > { %v12374_v56 = vsub.f32 %v12367_v15, %v12370_v16 }
 0x14f   : > { %11064 = vtanh.f32 %v852_v19  ;;  %v582_v27 = vpop.permute.xlu1 %581 }
 0x150   : > { %v1263_v48 = vand.u32 4294901760, %v12374_v56  ;;  %v619_v20 = vmul.f32 %v11260_v60, %v582_v27  ;;  %v12390_v60 = vsub.f32 %v12376_v42, %v12381_v29 }
 0x152   : > { %8645 = vmatmul.mubr.f32.gmra.mrb[26].mxu0 %v1263_v48  ;;  %v1264_v44 = vsub.f32 %v12374_v56, %v1263_v48  ;;  %v657_v58 = vadd.f32 %v11261_v23, %v619_v20 }
 0x154   : > { %v785_v6 = vpop.permute.xlu1 %784  ;;  %v1265_v46 = vand.u32 4294901760, %v1264_v44 }
 0x155   : > { %v12383_v57 = vpop.eup %11062  ;;  %v822_v0 = vmul.f32 %v11262_v22, %v785_v6  ;;  %v1293_v22 = vand.u32 4294901760, %v12390_v60 }
 0x156   : > { %15324 = vst [vmem:[#allocation62_spill] sm:$0xff] %v12383_v57  ;;  %8405 = vmatmul.mubr.f32.gmra.mrb[26].mxu1 %v1265_v46  ;;  %v12386_v7 = vand.u32 4294901760, %v12383_v57 }
 0x157   : > { %v854_v31 = vadd.f32 %v822_v0, %v657_v58  ;;  %v1294_v46 = vsub.f32 %v12390_v60, %v1293_v22 }
 0x158   : > { %v12394_v5 = vsub.f32 %v12383_v57, %v12386_v7 }
 0x159   : > { %v12396_v19 = vpop.eup %11064  ;;  %11066 = vtanh.f32 %v854_v31  ;;  %v1295_v42 = vand.u32 4294901760, %v1294_v46  ;;  %v12552_v46 = vld [vmem:[%s14806_s5 + $0x20] sm:$0xff] }
 0x15a   : > { %15325 = vst [vmem:[#allocation63_spill] sm:$0xff] %v12396_v19  ;;  %v1273_v27 = vand.u32 4294901760, %v12394_v5  ;;  %v12400_v23 = vand.u32 4294901760, %v12396_v19 }
 0x15c   : > { %8647 = vmatprep.mubr.f32.mxu0 %v1273_v27  ;;  %v1274_v48 = vsub.f32 %v12394_v5, %v1273_v27  ;;  %v12406_v20 = vsub.f32 %v12396_v19, %v12400_v23 }
 0x15e   : > { %v1275_v44 = vand.u32 4294901760, %v1274_v48  ;;  %v1283_v6 = vand.u32 4294901760, %v12406_v20 }
 0x160   : > { %8407 = vmatprep.mubr.f32.mxu1 %v1275_v44  ;;  %8648 = vmatmul.mubr.f32.gmra.mrb[28].mxu0 %v1283_v6  ;;  %v1284_v58 = vsub.f32 %v12406_v20, %v1283_v6 }
 0x161   : > { %8650 = vmatprep.mubr.f32.mxu0 %v1293_v22 }
 0x162   : > { %v1285_v0 = vand.u32 4294901760, %v1284_v58  ;;  %v12557_v58 = vld [vmem:[%s14806_s5 + $0x28] sm:$0xff] }
 0x163   : > { %v12411_v31 = vpop.eup %11066 }
 0x164   : > { %15326 = vst [vmem:[#allocation64_spill] sm:$0xff] %v12411_v31  ;;  %8408 = vmatmul.mubr.f32.gmra.mrb[28].mxu1 %v1285_v0  ;;  %v12414_v27 = vand.u32 4294901760, %v12411_v31  ;;  %v15332_v0 = vld [vmem:[#allocation16_spill] sm:$0xff] }
 0x165   : > { %8410 = vmatprep.mubr.f32.mxu1 %v1295_v42 }
 0x166   : > { %v12418_v48 = vsub.f32 %v12411_v31, %v12414_v27 }
 0x168   : > { %v1303_v57 = vand.u32 4294901760, %v12418_v48 }
 0x16a   : > { %8651 = vmatmul.mubr.f32.gmra.mrb[30].mxu0 %v1303_v57  ;;  %v1304_v44 = vsub.f32 %v12418_v48, %v1303_v57 }
 0x16b   : > { %8685 = vmatprep.mubr.f32.mxu0 %v11865_v59 }
 0x16c   : > { %v1305_v22 = vand.u32 4294901760, %v1304_v44  ;;  %v14888_v44 = vand.u32 4294901760, %v12557_v58 }
 0x16e   : > { %8411 = vmatmul.mubr.f32.gmra.mrb[30].mxu1 %v1305_v22  ;;  %8686 = vmatmul.mubr.f32.vlgmr.msra.gmra.mrb[0].mxu0 %v11896_v8  ;;  %v15333_v22 = vld [vmem:[#allocation19_spill] sm:$0xff] }
 0x16f   : > { %8445 = vmatprep.mubr.f32.mxu1 %v11865_v59  ;;  %8688 = vmatprep.mubr.f32.mxu0 %v11929_v50 }
 0x170   : > { %9936 = vmatpush3.bf16.msra.mxu0 %v11501_v18  ;;  %v15327_v18 = vld [vmem:[#allocation6_spill] sm:$0xff] }
 0x171   : > { %9938 = vmatprep.subr.bf16.mxu0 %v11525_v24 }
 0x172   : > { %8446 = vmatmul.mubr.f32.vlgmr.msra.gmra.mrb[0].mxu1 %v11896_v8  ;;  %8689 = vmatmul.mubr.f32.gmra.mrb[2].mxu0 %v11782_v62 }
 0x173   : > { %9840 = vmatpush3.bf16.msra.mxu1 %v12117_v47  ;;  %8448 = vmatprep.mubr.f32.mxu1 %v11929_v50  ;;  %v12472_v47 = vld [vmem:[%s14806_s5] sm:$0xff] }
 0x174   : > { %8691 = vmatprep.mubr.f32.mxu0 %v11828_v9  ;;  %9842 = vmatprep.subr.bf16.mxu1 %v12146_v17 }
 0x175   : > { %9940 = vmatpush3.bf16.msra.mxu0 %v11525_v24  ;;  %v15328_v24 = vld [vmem:[#allocation7_spill] sm:$0xff] }
 0x176   : > { %8449 = vmatmul.mubr.f32.gmra.mrb[2].mxu1 %v11782_v62  ;;  %8692 = vmatmul.mubr.f32.gmra.mrb[4].mxu0 %v11966_v37 }
 0x177   : > { %8451 = vmatprep.mubr.f32.mxu1 %v11828_v9  ;;  %8694 = vmatprep.mubr.f32.mxu0 %v12001_v1 }
 0x178   : > { %9844 = vmatpush3.bf16.msra.mxu1 %v12146_v17  ;;  %9942 = vmatprep.subr.bf16.mxu0 %v11549_v30  ;;  %v12477_v17 = vld [vmem:[%s14806_s5 + $0x8] sm:$0xff] }
 0x179   : > { %9846 = vmatprep.subr.bf16.mxu1 %v12175_v3  ;;  %9944 = vmatpush3.bf16.msra.mxu0 %v11549_v30  ;;  %v15329_v30 = vld [vmem:[#allocation8_spill] sm:$0xff] }
 0x17a   : > { %8452 = vmatmul.mubr.f32.gmra.mrb[4].mxu1 %v11966_v37  ;;  %8695 = vmatmul.mubr.f32.gmra.mrb[6].mxu0 %v11923_v36 }
 0x17b   : > { %8454 = vmatprep.mubr.f32.mxu1 %v12001_v1  ;;  %8697 = vmatprep.mubr.f32.mxu0 %v12006_v61 }
 0x17c   : > { %9848 = vmatpush3.bf16.msra.mxu1 %v12175_v3  ;;  %9946 = vmatprep.subr.bf16.mxu0 %v15327_v18  ;;  %v15330_v3 = vld [vmem:[#allocation9_spill] sm:$0xff] }
 0x17d   : > { %9850 = vmatprep.subr.bf16.mxu1 %v12191_v35  ;;  %9948 = vmatpush3.bf16.msra.mxu0 %v15327_v18  ;;  %v12574_v18 = vld [vmem:[%s14806_s5 + $0x30] sm:$0xff] }
 0x17e   : > { %8455 = vmatmul.mubr.f32.gmra.mrb[6].mxu1 %v11923_v36  ;;  %8698 = vmatmul.mubr.f32.gmra.mrb[8].mxu0 %v12045_v2 }
 0x17f   : > { %8457 = vmatprep.mubr.f32.mxu1 %v12006_v61  ;;  %8700 = vmatprep.mubr.f32.mxu0 %v12061_v25 }
 0x180   : > { %9852 = vmatpush3.bf16.msra.mxu1 %v12191_v35  ;;  %9950 = vmatprep.subr.bf16.mxu0 %v15328_v24  ;;  %v2940_v35 = vand.u32 4294901760, %v12472_v47 }
 0x181   : > { %9854 = vmatprep.subr.bf16.mxu1 %v12218_v12  ;;  %9952 = vmatpush3.bf16.msra.mxu0 %v15328_v24  ;;  %v15334_v24 = vld [vmem:[#allocation21_spill] sm:$0xff] }
 0x182   : > { %8458 = vmatmul.mubr.f32.gmra.mrb[8].mxu1 %v12045_v2  ;;  %8701 = vmatmul.mubr.f32.gmra.mrb[10].mxu0 %v12096_v13 }
 0x183   : > { %8460 = vmatprep.mubr.f32.mxu1 %v12061_v25  ;;  %8703 = vmatprep.mubr.f32.mxu0 %v12142_v53 }
 0x184   : > { %9856 = vmatpush3.bf16.msra.mxu1 %v12218_v12  ;;  %9954 = vmatprep.subr.bf16.mxu0 %v15329_v30  ;;  %v2943_v12 = vand.u32 4294901760, %v12477_v17 }
 0x185   : > { %9858 = vmatprep.subr.bf16.mxu1 %v12244_v34  ;;  %9956 = vmatpush3.bf16.msra.mxu0 %v15329_v30  ;;  %v2958_v30 = vand.u32 4294901760, %v12574_v18 }
 0x186   : > { %8461 = vmatmul.mubr.f32.gmra.mrb[10].mxu1 %v12096_v13  ;;  %8704 = vmatmul.mubr.f32.gmra.mrb[12].mxu0 %v12158_v38  ;;  %v12499_v42 = vpack.c.bf16 %v2943_v12, %v2940_v35 }
 0x187   : > { %8463 = vmatprep.mubr.f32.mxu1 %v12142_v53  ;;  %8706 = vmatprep.mubr.f32.mxu0 %v12121_v45 }
 0x188   : > { %9860 = vmatpush3.bf16.msra.mxu1 %v12244_v34  ;;  %9958 = vmatprep.subr.bf16.mxu0 %v15330_v3  ;;  %v15331_v34 = vld [vmem:[#allocation10_spill] sm:$0xff] }
 0x189   : > { %9862 = vmatprep.subr.bf16.mxu1 %v12260_v28  ;;  %9960 = vmatpush3.bf16.msra.mxu0 %v15330_v3 }
 0x18a   : > { %8464 = vmatmul.mubr.f32.gmra.mrb[12].mxu1 %v12158_v38  ;;  %8707 = vmatmul.mubr.f32.gmra.mrb[14].mxu0 %v12183_v63 }
 0x18b   : > { %8466 = vmatprep.mubr.f32.mxu1 %v12121_v45  ;;  %8709 = vmatprep.mubr.f32.mxu0 %v12210_v11 }
 0x18c   : > { %9864 = vmatpush3.bf16.msra.mxu1 %v12260_v28  ;;  %9962 = vmatprep.subr.bf16.mxu0 %v15331_v34  ;;  %v12536_v28 = vld [vmem:[%s14806_s5 + $0x10] sm:$0xff] }
 0x18d   : > { %9866 = vmatprep.subr.bf16.mxu1 %v12285_v21  ;;  %9964 = vmatpush3.bf16.msra.mxu0 %v15331_v34  ;;  %v2946_v57 = vand.u32 4294901760, %v12536_v28  ;;  %v15336_v34 = vld [vmem:[#allocation12_spill] sm:$0xff] }
 0x18e   : > { %8467 = vmatmul.mubr.f32.gmra.mrb[14].mxu1 %v12183_v63  ;;  %8710 = vmatmul.mubr.f32.gmra.mrb[16].mxu0 %v12228_v51 }
 0x18f   : > { %8469 = vmatprep.mubr.f32.mxu1 %v12210_v11  ;;  %8712 = vmatprep.mubr.f32.mxu0 %v12200_v33 }
 0x190   : > { %9868 = vmatpush3.bf16.msra.mxu1 %v12285_v21  ;;  %v12541_v21 = vld [vmem:[%s14806_s5 + $0x18] sm:$0xff] }
 0x191   : > { %9966 = vmatprep.subr.bf16.mxu1 %v12499_v42  ;;  %v2949_v6 = vand.u32 4294901760, %v12541_v21 }
 0x192   : > { %8470 = vmatmul.mubr.f32.gmra.mrb[16].mxu1 %v12228_v51  ;;  %8713 = vmatmul.mubr.f32.gmra.mrb[18].mxu0 %v12252_v32 }
 0x193   : > { %8472 = vmatprep.mubr.f32.mxu1 %v12200_v33  ;;  %8715 = vmatprep.mubr.f32.mxu0 %v12277_v41 }
 0x196   : > { %8473 = vmatmul.mubr.f32.gmra.mrb[18].mxu1 %v12252_v32  ;;  %8716 = vmatmul.mubr.f32.gmra.mrb[20].mxu0 %v12297_v10 }
 0x197   : > { %8475 = vmatprep.mubr.f32.mxu1 %v12277_v41  ;;  %8718 = vmatprep.mubr.f32.mxu0 %v12269_v39 }
 0x19a   : > { %8476 = vmatmul.mubr.f32.gmra.mrb[20].mxu1 %v12297_v10  ;;  %8719 = vmatmul.mubr.f32.gmra.mrb[22].mxu0 %v12317_v40 }
 0x19b   : > { %8478 = vmatprep.mubr.f32.mxu1 %v12269_v39  ;;  %8721 = vmatprep.mubr.f32.mxu0 %v12342_v4 }
 0x19e   : > { %8479 = vmatmul.mubr.f32.gmra.mrb[22].mxu1 %v12317_v40  ;;  %8722 = vmatmul.mubr.f32.gmra.mrb[24].mxu0 %v12356_v43 }
 0x19f   : > { %8481 = vmatprep.mubr.f32.mxu1 %v12342_v4  ;;  %8724 = vmatprep.mubr.f32.mxu0 %v12331_v54 }
 0x1a2   : > { %8482 = vmatmul.mubr.f32.gmra.mrb[24].mxu1 %v12356_v43  ;;  %8725 = vmatmul.mubr.f32.gmra.mrb[26].mxu0 %v12370_v16 }
 0x1a3   : > { %8484 = vmatprep.mubr.f32.mxu1 %v12331_v54  ;;  %8727 = vmatprep.mubr.f32.mxu0 %v12386_v7 }
 0x1a6   : > { %8485 = vmatmul.mubr.f32.gmra.mrb[26].mxu1 %v12370_v16  ;;  %8728 = vmatmul.mubr.f32.gmra.mrb[28].mxu0 %v12400_v23 }
 0x1a7   : > { %8487 = vmatprep.mubr.f32.mxu1 %v12386_v7  ;;  %8730 = vmatprep.mubr.f32.mxu0 %v12381_v29 }
 0x1aa   : > { %8488 = vmatmul.mubr.f32.gmra.mrb[28].mxu1 %v12400_v23  ;;  %8731 = vmatmul.mubr.f32.gmra.mrb[30].mxu0 %v12414_v27 }
 0x1ab   : > { %8490 = vmatprep.mubr.f32.mxu1 %v12381_v29  ;;  %8765 = vmatprep.mubr.f32.mxu0 %v11865_v59  ;;  %v12565_v59 = vpack.c.bf16 %v2949_v6, %v2946_v57 }
 0x1ae   : > { %8491 = vmatmul.mubr.f32.gmra.mrb[30].mxu1 %v12414_v27  ;;  %8766 = vmatmul.mubr.f32.vlgmr.msra.gmra.mrb[0].mxu0 %v11896_v8  ;;  %v2952_v8 = vand.u32 4294901760, %v12552_v46 }
 0x1af   : > { %8525 = vmatprep.mubr.f32.mxu1 %v15332_v0  ;;  %8768 = vmatprep.mubr.f32.mxu0 %v11929_v50  ;;  %v12579_v50 = vld [vmem:[%s14806_s5 + $0x38] sm:$0xff]  ;;  %v12603_v0 = vld [vmem:[%s14806_s5 + $0x48] sm:$0xff] }
 0x1b0   : > { %v2961_v3 = vand.u32 4294901760, %v12579_v50 }
 0x1b2   : > { %8526 = vmatmul.mubr.f32.vlgmr.msra.gmra.mrb[0].mxu1 %v15333_v22  ;;  %8769 = vmatmul.mubr.f32.gmra.mrb[2].mxu0 %v11782_v62  ;;  %v12589_v62 = vpack.c.bf16 %v14888_v44, %v2952_v8  ;;  %v15337_v22 = vld [vmem:[#allocation14_spill] sm:$0xff]  ;;  %v15339_v44 = vld [vmem:[#allocation23_spill] sm:$0xff] }
 0x1b3   : > { %8528 = vmatprep.mubr.f32.mxu1 %v15334_v24  ;;  %8771 = vmatprep.mubr.f32.mxu0 %v11828_v9  ;;  %v12598_v9 = vld [vmem:[%s14806_s5 + $0x40] sm:$0xff] }
 0x1b4   : > { %9968 = vmatpush3.bf16.msra.mxu1 %v12499_v42  ;;  %15335 = vst [vmem:[#allocation6_spill] sm:$0xff] %v12589_v62  ;;  %v2964_v24 = vand.u32 4294901760, %v12598_v9 }
 0x1b5   : > { %9970 = vmatprep.subr.bf16.mxu1 %v12565_v59 }
 0x1b6   : > { %8529 = vmatmul.mubr.f32.gmra.mrb[2].mxu1 %v15336_v34  ;;  %8772 = vmatmul.mubr.f32.gmra.mrb[4].mxu0 %v11966_v37  ;;  %v12613_v37 = vpack.c.bf16 %v2961_v3, %v2958_v30  ;;  %v2967_v34 = vand.u32 4294901760, %v12603_v0 }
 0x1b7   : > { %8531 = vmatprep.mubr.f32.mxu1 %v15337_v22  ;;  %8774 = vmatprep.mubr.f32.mxu0 %v12001_v1 }
 0x1b8   : > { %9972 = vmatpush3.bf16.msra.mxu1 %v12565_v59  ;;  %15338 = vst [vmem:[#allocation7_spill] sm:$0xff] %v12613_v37  ;;  %v12627_v1 = vpack.c.bf16 %v2967_v34, %v2964_v24 }
 0x1b9   : > { %9974 = vmatprep.subr.bf16.mxu1 %v12589_v62 }
 0x1ba   : > { %8532 = vmatmul.mubr.f32.gmra.mrb[4].mxu1 %v15339_v44  ;;  %8775 = vmatmul.mubr.f32.gmra.mrb[6].mxu0 %v11923_v36  ;;  %15340 = vst [vmem:[#allocation8_spill] sm:$0xff] %v12627_v1  ;;  %v15341_v44 = vld [vmem:[#allocation26_spill] sm:$0xff]  ;;  %v15342_v36 = vld [vmem:[#allocation29_spill] sm:$0xff] }
 0x1bb   : > { %8534 = vmatprep.mubr.f32.mxu1 %v12015_v49  ;;  %8777 = vmatprep.mubr.f32.mxu0 %v12006_v61  ;;  %v15344_v61 = vld [vmem:[#allocation35_spill] sm:$0xff]  ;;  %v15345_v49 = vld [vmem:[#allocation37_spill] sm:$0xff] }
 0x1bc   : > { %9976 = vmatpush3.bf16.msra.mxu1 %v12589_v62 }
 0x1bd   : > { %9978 = vmatprep.subr.bf16.mxu1 %v12613_v37 }
 0x1be   : > { %8535 = vmatmul.mubr.f32.gmra.mrb[6].mxu1 %v11934_v52  ;;  %8778 = vmatmul.mubr.f32.gmra.mrb[8].mxu0 %v12045_v2  ;;  %v15343_v52 = vld [vmem:[#allocation32_spill] sm:$0xff]  ;;  %v15346_v2 = vld [vmem:[#allocation34_spill] sm:$0xff] }
 0x1bf   : > { %8537 = vmatprep.mubr.f32.mxu1 %v15341_v44  ;;  %8780 = vmatprep.mubr.f32.mxu0 %v12061_v25  ;;  %v15348_v25 = vld [vmem:[#allocation43_spill] sm:$0xff] }
 0x1c0   : > { %9980 = vmatpush3.bf16.msra.mxu1 %v12613_v37 }
 0x1c1   : > { %9982 = vmatprep.subr.bf16.mxu1 %v12627_v1 }
 0x1c2   : > { %8538 = vmatmul.mubr.f32.gmra.mrb[8].mxu1 %v12058_v26  ;;  %8781 = vmatmul.mubr.f32.gmra.mrb[10].mxu0 %v12096_v13  ;;  %v15347_v26 = vld [vmem:[#allocation39_spill] sm:$0xff]  ;;  %v15349_v13 = vld [vmem:[#allocation45_spill] sm:$0xff] }
 0x1c3   : > { %8540 = vmatprep.mubr.f32.mxu1 %v15342_v36  ;;  %8783 = vmatprep.mubr.f32.mxu0 %v12142_v53  ;;  %v15351_v53 = vld [vmem:[#allocation47_spill] sm:$0xff] }
 0x1c4   : > { %9984 = vmatpush3.bf16.msra.mxu1 %v12627_v1 }
 0x1c6   : > { %8541 = vmatmul.mubr.f32.gmra.mrb[10].mxu1 %v15343_v52  ;;  %8784 = vmatmul.mubr.f32.gmra.mrb[12].mxu0 %v12158_v38  ;;  %v15352_v38 = vld [vmem:[#allocation51_spill] sm:$0xff] }
 0x1c7   : > { %8543 = vmatprep.mubr.f32.mxu1 %v15344_v61  ;;  %8786 = vmatprep.mubr.f32.mxu0 %v12121_v45  ;;  %v15350_v45 = vld [vmem:[#allocation42_spill] sm:$0xff] }
 0x1ca   : > { %8544 = vmatmul.mubr.f32.gmra.mrb[12].mxu1 %v15345_v49  ;;  %8787 = vmatmul.mubr.f32.gmra.mrb[14].mxu0 %v12183_v63  ;;  %v15353_v63 = vld [vmem:[#allocation53_spill] sm:$0xff] }
 0x1cb   : > { %8546 = vmatprep.mubr.f32.mxu1 %v15346_v2  ;;  %8789 = vmatprep.mubr.f32.mxu0 %v12210_v11  ;;  %v15355_v11 = vld [vmem:[#allocation55_spill] sm:$0xff] }
 0x1ce   : > { %8547 = vmatmul.mubr.f32.gmra.mrb[14].mxu1 %v15347_v26  ;;  %8790 = vmatmul.mubr.f32.gmra.mrb[16].mxu0 %v12228_v51  ;;  %v15356_v51 = vld [vmem:[#allocation58_spill] sm:$0xff] }
 0x1cf   : > { %8549 = vmatprep.mubr.f32.mxu1 %v15348_v25  ;;  %8792 = vmatprep.mubr.f32.mxu0 %v12200_v33  ;;  %v15354_v33 = vld [vmem:[#allocation50_spill] sm:$0xff] }
 0x1d2   : > { %8550 = vmatmul.mubr.f32.gmra.mrb[16].mxu1 %v15349_v13  ;;  %8793 = vmatmul.mubr.f32.gmra.mrb[18].mxu0 %v12252_v32  ;;  %v2926_v32 = vld [vmem:[%s14806_s5 + $0x50] sm:$0xff] }
 0x1d3   : > { %8552 = vmatprep.mubr.f32.mxu1 %v15350_v45  ;;  %8795 = vmatprep.mubr.f32.mxu0 %v12277_v41  ;;  %v2970_v41 = vand.u32 4294901760, %v2926_v32 }
 0x1d6   : > { %8553 = vmatmul.mubr.f32.gmra.mrb[18].mxu1 %v15351_v53  ;;  %8796 = vmatmul.mubr.f32.gmra.mrb[20].mxu0 %v12297_v10 }
 0x1d7   : > { %8555 = vmatprep.mubr.f32.mxu1 %v15352_v38  ;;  %8798 = vmatprep.mubr.f32.mxu0 %v12269_v39  ;;  %v2927_v39 = vld [vmem:[%s14806_s5 + $0x58] sm:$0xff] }
 0x1d8   : > { %v2973_v10 = vand.u32 4294901760, %v2927_v39 }
 0x1da   : > { %8556 = vmatmul.mubr.f32.gmra.mrb[20].mxu1 %v15353_v63  ;;  %8799 = vmatmul.mubr.f32.gmra.mrb[22].mxu0 %v12317_v40  ;;  %v2928_v40 = vld [vmem:[%s14806_s5 + $0x60] sm:$0xff] }
 0x1db   : > { %8558 = vmatprep.mubr.f32.mxu1 %v15354_v33  ;;  %8801 = vmatprep.mubr.f32.mxu0 %v12342_v4  ;;  %v12686_v4 = vpack.c.bf16 %v2973_v10, %v2970_v41 }
 0x1dd   : > { %15357 = vst [vmem:[#allocation9_spill] sm:$0xff] %v12686_v4  ;;  %9986 = vmatprep.subr.bf16.mxu1 %v12686_v4 }
 0x1de   : > { %8559 = vmatmul.mubr.f32.gmra.mrb[22].mxu1 %v15355_v11  ;;  %8802 = vmatmul.mubr.f32.gmra.mrb[24].mxu0 %v12356_v43 }
 0x1df   : > { %8561 = vmatprep.mubr.f32.mxu1 %v15356_v51  ;;  %8804 = vmatprep.mubr.f32.mxu0 %v12331_v54  ;;  %v2976_v54 = vand.u32 4294901760, %v2928_v40 }
 0x1e0   : > { %9988 = vmatpush3.bf16.msra.mxu1 %v12686_v4 }
 0x1e1   : > { %v12743_v25 = vsub.f32 %v2928_v40, %v2976_v54  ;;  %v12770_v40 = vsub.f32 %v12536_v28, %v2946_v57  ;;  %v12803_v57 = vsub.f32 %v12579_v50, %v2961_v3 }
 0x1e2   : > { %8562 = vmatmul.mubr.f32.gmra.mrb[24].mxu1 %v12362_v55  ;;  %8805 = vmatmul.mubr.f32.gmra.mrb[26].mxu0 %v12370_v16  ;;  %v2929_v55 = vld [vmem:[%s14806_s5 + $0x68] sm:$0xff]  ;;  %v2930_v16 = vld [vmem:[%s14806_s5 + $0x70] sm:$0xff] }
 0x1e3   : > { %8564 = vmatprep.mubr.f32.mxu1 %v12346_v14  ;;  %8807 = vmatprep.mubr.f32.mxu0 %v12386_v7  ;;  %v2979_v14 = vand.u32 4294901760, %v2929_v55  ;;  %15364 = vst [vmem:[#allocation23_spill] sm:$0xff] %v12743_v25  ;;  %v14890_v53 = vand.u32 4294901760, %v12743_v25  ;;  %15366 = vst [vmem:[#allocation29_spill] sm:$0xff] %v12770_v40 }
 0x1e4   : > { %15372 = vst [vmem:[#allocation39_spill] sm:$0xff] %v12803_v57 }
 0x1e5   : > { %v12696_v43 = vpack.c.bf16 %v2979_v14, %v2976_v54  ;;  %v12745_v13 = vsub.f32 %v2929_v55, %v2979_v14  ;;  %v3428_v63 = vsub.f32 %v12743_v25, %v14890_v53  ;;  %v12775_v55 = vsub.f32 %v12541_v21, %v2949_v6 }
 0x1e6   : > { %8565 = vmatmul.mubr.f32.gmra.mrb[26].mxu1 %v12374_v56  ;;  %8808 = vmatmul.mubr.f32.gmra.mrb[28].mxu0 %v12400_v23  ;;  %v2931_v56 = vld [vmem:[%s14806_s5 + $0x78] sm:$0xff]  ;;  %v12718_v23 = vsub.f32 %v12477_v17, %v2943_v12  ;;  %v12731_v17 = vsub.f32 %v2926_v32, %v2970_v41  ;;  %v12733_v12 = vsub.f32 %v2927_v39, %v2973_v10 }
 0x1e7   : > { %8567 = vmatprep.mubr.f32.mxu1 %v12394_v5  ;;  %8810 = vmatprep.mubr.f32.mxu0 %v12381_v29  ;;  %15358 = vst [vmem:[#allocation10_spill] sm:$0xff] %v12696_v43  ;;  %v2982_v29 = vand.u32 4294901760, %v2930_v16  ;;  %v2985_v7 = vand.u32 4294901760, %v2931_v56  ;;  %v12713_v5 = vsub.f32 %v12472_v47, %v2940_v35  ;;  %15365 = vst [vmem:[#allocation26_spill] sm:$0xff] %v12745_v13  ;;  %v14889_v38 = vand.u32 4294901760, %v12745_v13 }
 0x1e8   : > { %9990 = vmatprep.subr.bf16.mxu1 %v12696_v43  ;;  %15361 = vst [vmem:[#allocation21_spill] sm:$0xff] %v12718_v23  ;;  %15362 = vst [vmem:[#allocation12_spill] sm:$0xff] %v12731_v17  ;;  %v14892_v36 = vand.u32 4294901760, %v12731_v17  ;;  %v14891_v52 = vand.u32 4294901760, %v12733_v12  ;;  %v3429_v32 = vand.u32 4294901760, %v3428_v63  ;;  %v12779_v54 = vpack.c.bf16 %v12775_v55, %v12770_v40 }
 0x1e9   : > { %9992 = vmatpush3.bf16.msra.mxu1 %v12696_v43  ;;  %15360 = vst [vmem:[#allocation19_spill] sm:$0xff] %v12713_v5  ;;  %15363 = vst [vmem:[#allocation14_spill] sm:$0xff] %v12733_v12  ;;  %v3435_v33 = vsub.f32 %v12745_v13, %v14889_v38  ;;  %v12757_v11 = vsub.f32 %v2930_v16, %v2982_v29  ;;  %v12759_v51 = vsub.f32 %v2931_v56, %v2985_v7 }
 0x1ea   : > { %8568 = vmatmul.mubr.f32.gmra.mrb[28].mxu1 %v12406_v20  ;;  %8811 = vmatmul.mubr.f32.gmra.mrb[30].mxu0 %v12414_v27  ;;  %v14902_v20 = vand.u32 4294901760, %v12713_v5  ;;  %v14900_v27 = vand.u32 4294901760, %v12718_v23  ;;  %v3414_v61 = vsub.f32 %v12731_v17, %v14892_v36  ;;  %v3421_v49 = vsub.f32 %v12733_v12, %v14891_v52  ;;  %15367 = vst [vmem:[#allocation32_spill] sm:$0xff] %v12775_v55 }
 0x1eb   : > { %8570 = vmatprep.mubr.f32.mxu1 %v12390_v60  ;;  %v12706_v60 = vpack.c.bf16 %v2985_v7, %v2982_v29  ;;  %v3436_v39 = vand.u32 4294901760, %v3435_v33  ;;  %v12765_v10 = vpack.c.bf16 %v12718_v23, %v12713_v5  ;;  %v12784_v14 = vsub.f32 %v12552_v46, %v2952_v8 }
 0x1ec   : > { %v3351_v22 = vsub.f32 %v12718_v23, %v14900_v27  ;;  %v3415_v2 = vand.u32 4294901760, %v3414_v61  ;;  %v3422_v26 = vand.u32 4294901760, %v3421_v49  ;;  %v15369_v16 = vand.u32 4294901760, %v12557_v58 }
 0x1ed   : > { %15359 = vst [vmem:[#allocation16_spill] sm:$0xff] %v12706_v60  ;;  %9994 = vmatprep.subr.bf16.mxu1 %v12706_v60  ;;  %v12761_v41 = vpack.c.bf16 %v3436_v39, %v3429_v32  ;;  %15368 = vst [vmem:[#allocation35_spill] sm:$0xff] %v12784_v14  ;;  %v12798_v21 = vsub.f32 %v12574_v18, %v2958_v30  ;;  %v12812_v46 = vsub.f32 %v12598_v9, %v2964_v24  ;;  %v12826_v30 = vld [vmem:[%s14805_s4] ss:$0 sm:$0xff] }
 0x1ee   : > { %8571 = vmatmul.mubr.f32.gmra.mrb[30].mxu1 %v12418_v48  ;;  %v3344_v48 = vsub.f32 %v12713_v5, %v14902_v20  ;;  %v3352_v47 = vand.u32 4294901760, %v3351_v22  ;;  %v12747_v45 = vpack.c.bf16 %v3422_v26, %v3415_v2  ;;  %v12789_v56 = vsub.f32 %v12557_v58, %v15369_v16 }
 0x1ef   : > { %9996 = vmatpush3.bf16.msra.mxu1 %v12706_v60  ;;  %15371 = vst [vmem:[#allocation34_spill] sm:$0xff] %v12798_v21  ;;  %v12807_v6 = vpack.c.bf16 %v12803_v57, %v12798_v21  ;;  %15373 = vst [vmem:[#allocation43_spill] sm:$0xff] %v12812_v46  ;;  %v12817_v58 = vsub.f32 %v12603_v0, %v2967_v34  ;;  %v14898_v61 = vand.u32 4294901760, %v12770_v40  ;;  %v14896_v49 = vand.u32 4294901760, %v12775_v55 }
 0x1f0   : > { %v3345_v44 = vand.u32 4294901760, %v3344_v48  ;;  %15370 = vst [vmem:[#allocation37_spill] sm:$0xff] %v12789_v56  ;;  %v12793_v28 = vpack.c.bf16 %v12789_v56, %v12784_v14  ;;  %v12832_v48 = vpack.c.bf16 %v12733_v12, %v12731_v17  ;;  %v14895_v33 = vand.u32 4294901760, %v12784_v14 }
 0x1f1   : > { %15374 = vst [vmem:[#allocation45_spill] sm:$0xff] %v12817_v58  ;;  %v12821_v8 = vpack.c.bf16 %v12817_v58, %v12812_v46  ;;  %v14893_v32 = vand.u32 4294901760, %v12789_v56  ;;  %v14894_v16 = vand.u32 4294901760, %v12798_v21 }
 0x1f2   : > { %v12728_v35 = vpack.c.bf16 %v3352_v47, %v3345_v44 }
 0x1f3   : > { %v3386_v53 = vsub.f32 %v12798_v21, %v14894_v16 }
 0x1f4   : > { %9998 = vmatprep.subr.bf16.mxu1 %v12728_v35 }
 0x281   : > { %v8767_v18 = vpop.f32.mrb[0].mxu0 }
 0x282   : > { %v2694_v50 = vpop.f32.mrb[1].mxu0 }
 0x285   : > { %v8527_v3 = vpop.f32.mrb[0].mxu1  ;;  %v8770_v29 = vpop.f32.mrb[2].mxu0 }
 0x286   : > { %v10349_v9 = vadd.f32 %v8527_v3, %v12826_v30  ;;  %v1748_v24 = vpop.f32.mrb[1].mxu1  ;;  %v2706_v7 = vpop.f32.mrb[3].mxu0  ;;  %v14899_v3 = vand.u32 4294901760, %v12812_v46 }
 0x287   : > { %v10351_v0 = vadd.f32 %v12826_v30, %v1748_v24 }
 0x288   : > { %v10350_v34 = vadd.f32 %v10349_v9, %v8767_v18  ;;  %v14897_v18 = vand.u32 4294901760, %v12803_v57  ;;  %v14901_v9 = vand.u32 4294901760, %v12817_v58  ;;  %v3400_v52 = vsub.f32 %v12812_v46, %v14899_v3 }
 0x289   : > { %v10352_v22 = vadd.f32 %v10351_v0, %v2694_v50  ;;  %v8530_v44 = vpop.f32.mrb[2].mxu1  ;;  %v8773_v47 = vpop.f32.mrb[4].mxu0 }
 0x28a   : > { %11068 = vtanh.f32 %v10350_v34  ;;  %v10353_v2 = vadd.f32 %v8530_v44, %v12826_v30  ;;  %v1762_v26 = vpop.f32.mrb[3].mxu1  ;;  %v2718_v63 = vpop.f32.mrb[5].mxu0  ;;  %v3358_v44 = vsub.f32 %v12770_v40, %v14898_v61  ;;  %v3407_v36 = vsub.f32 %v12817_v58, %v14901_v9 }
 0x28b   : > { %11070 = vtanh.f32 %v10352_v22  ;;  %v10355_v39 = vadd.f32 %v12826_v30, %v1762_v26  ;;  %v3365_v22 = vsub.f32 %v12775_v55, %v14896_v49  ;;  %v3387_v9 = vand.u32 4294901760, %v3386_v53 }
 0x28c   : > { %v10354_v50 = vadd.f32 %v10353_v2, %v8770_v29  ;;  %v3372_v2 = vsub.f32 %v12784_v14, %v14895_v33  ;;  %v3359_v33 = vand.u32 4294901760, %v3358_v44 }
 0x28d   : > { %v10356_v24 = vadd.f32 %v10355_v39, %v2706_v7  ;;  %v8533_v0 = vpop.f32.mrb[4].mxu1  ;;  %v8776_v34 = vpop.f32.mrb[6].mxu0  ;;  %v3379_v7 = vsub.f32 %v12789_v56, %v14893_v32  ;;  %v3366_v49 = vand.u32 4294901760, %v3365_v22 }
 0x28e   : > { %11072 = vtanh.f32 %v10354_v50  ;;  %v10357_v26 = vadd.f32 %v8533_v0, %v12826_v30  ;;  %v1776_v38 = vpop.f32.mrb[5].mxu1  ;;  %v2730_v29 = vpop.f32.mrb[7].mxu0  ;;  %v3393_v50 = vsub.f32 %v12803_v57, %v14897_v18  ;;  %v3373_v61 = vand.u32 4294901760, %v3372_v2 }
 0x28f   : > { %11074 = vtanh.f32 %v10356_v24  ;;  %v10359_v39 = vadd.f32 %v12826_v30, %v1776_v38  ;;  %v12872_v38 = vpack.c.bf16 %v12745_v13, %v12743_v25  ;;  %v3380_v3 = vand.u32 4294901760, %v3379_v7 }
 0x290   : > { %v10358_v0 = vadd.f32 %v10357_v26, %v8773_v47  ;;  %v3394_v20 = vand.u32 4294901760, %v3393_v50  ;;  %v12883_v2 = vpack.c.bf16 %v3366_v49, %v3359_v33 }
 0x291   : > { %v10360_v24 = vadd.f32 %v10359_v39, %v2718_v63  ;;  %v8536_v32 = vpop.f32.mrb[6].mxu1  ;;  %v8779_v16 = vpop.f32.mrb[8].mxu0  ;;  %v3401_v63 = vand.u32 4294901760, %v3400_v52  ;;  %v3408_v39 = vand.u32 4294901760, %v3407_v36  ;;  %v12889_v52 = vpack.c.bf16 %v3380_v3, %v3373_v61 }
 0x292   : > { %11076 = vtanh.f32 %v10358_v0  ;;  %v10361_v47 = vadd.f32 %v8536_v32, %v12826_v30  ;;  %v1790_v26 = vpop.f32.mrb[7].mxu1  ;;  %v2742_v18 = vpop.f32.mrb[9].mxu0 }
 0x293   : > { %11078 = vtanh.f32 %v10360_v24  ;;  %v10363_v27 = vadd.f32 %v12826_v30, %v1790_v26 }
 0x294   : > { %v12876_v31 = vpop.eup %11068  ;;  %v10362_v19 = vadd.f32 %v10361_v47, %v8776_v34  ;;  %v12896_v34 = vpack.c.bf16 %v3394_v20, %v3387_v9 }
 0x295   : > { %15375 = vst [vmem:[#allocation42_spill] sm:$0xff] %v12876_v31  ;;  %v12878_v15 = vpop.eup %11070  ;;  %v10364_v44 = vadd.f32 %v10363_v27, %v2730_v29  ;;  %v8539_v22 = vpop.f32.mrb[8].mxu1  ;;  %v12881_v32 = vand.u32 4294901760, %v12876_v31  ;;  %v12904_v29 = vpack.c.bf16 %v3408_v39, %v3401_v63 }
 0x296   : > { %15376 = vst [vmem:[#allocation47_spill] sm:$0xff] %v12878_v15  ;;  %v8782_v0 = vpop.f32.mrb[10].mxu0  ;;  %11080 = vtanh.f32 %v10362_v19  ;;  %v10365_v7 = vadd.f32 %v8539_v22, %v12826_v30  ;;  %v1804_v53 = vpop.f32.mrb[9].mxu1  ;;  %v12887_v24 = vand.u32 4294901760, %v12878_v15 }
 0x297   : > { %v2754_v50 = vpop.f32.mrb[11].mxu0  ;;  %11082 = vtanh.f32 %v10364_v44  ;;  %v10367_v27 = vadd.f32 %v12826_v30, %v1804_v53  ;;  %v12894_v36 = vsub.f32 %v12876_v31, %v12881_v32 }
 0x298   : > { %v12898_v49 = vpop.eup %11072  ;;  %v10366_v19 = vadd.f32 %v10365_v7, %v8779_v16  ;;  %v12902_v33 = vsub.f32 %v12878_v15, %v12887_v24 }
 0x299   : > { %15377 = vst [vmem:[#allocation51_spill] sm:$0xff] %v12898_v49  ;;  %v12907_v3 = vpop.eup %11074  ;;  %v10368_v47 = vadd.f32 %v10367_v27, %v2742_v18  ;;  %v8542_v26 = vpop.f32.mrb[10].mxu1  ;;  %v14907_v22 = vand.u32 4294901760, %v12894_v36  ;;  %v12911_v20 = vand.u32 4294901760, %v12898_v49 }
 0x29a   : > { %15378 = vst [vmem:[#allocation53_spill] sm:$0xff] %v12907_v3  ;;  %v8785_v44 = vpop.f32.mrb[12].mxu0  ;;  %11084 = vtanh.f32 %v10366_v19  ;;  %v10369_v9 = vadd.f32 %v8542_v26, %v12826_v30  ;;  %v1818_v7 = vpop.f32.mrb[11].mxu1  ;;  %v14912_v39 = vand.u32 4294901760, %v12902_v33  ;;  %v12917_v53 = vand.u32 4294901760, %v12907_v3 }
 0x29b   : > { %v2766_v63 = vpop.f32.mrb[13].mxu0  ;;  %11086 = vtanh.f32 %v10368_v47  ;;  %v10371_v18 = vadd.f32 %v12826_v30, %v1818_v7  ;;  %v3033_v27 = vsub.f32 %v12894_v36, %v14907_v22  ;;  %v12925_v16 = vsub.f32 %v12898_v49, %v12911_v20 }
 0x29c   : > { %v12927_v19 = vpop.eup %11076  ;;  %v10370_v26 = vadd.f32 %v10369_v9, %v8782_v0  ;;  %v3023_v61 = vsub.f32 %v12902_v33, %v14912_v39  ;;  %v12934_v47 = vsub.f32 %v12907_v3, %v12917_v53  ;;  %v15380_v7 = vand.u32 4294901760, %v12757_v11 }
 0x29d   : > { %15379 = vst [vmem:[#allocation50_spill] sm:$0xff] %v12927_v19  ;;  %v12941_v22 = vpop.eup %11078  ;;  %v10372_v49 = vadd.f32 %v10371_v18, %v2754_v50  ;;  %v8545_v31 = vpop.f32.mrb[12].mxu1  ;;  %v3034_v25 = vand.u32 4294901760, %v3033_v27  ;;  %v14917_v0 = vand.u32 4294901760, %v12925_v16  ;;  %v12945_v9 = vand.u32 4294901760, %v12927_v19 }
 0x29e   : > { %v12939_v15 = vsub.f32 %v12757_v11, %v15380_v7  ;;  %15381 = vst [vmem:[#allocation55_spill] sm:$0xff] %v12941_v22  ;;  %v8788_v13 = vpop.f32.mrb[14].mxu0  ;;  %11088 = vtanh.f32 %v10370_v26  ;;  %v10373_v39 = vadd.f32 %v8545_v31, %v12826_v30  ;;  %v1832_v3 = vpop.f32.mrb[13].mxu1  ;;  %v3024_v17 = vand.u32 4294901760, %v3023_v61 }
 0x29f   : > { %v2778_v12 = vpop.f32.mrb[15].mxu0  ;;  %v14921_v7 = vand.u32 4294901760, %v12934_v47  ;;  %11090 = vtanh.f32 %v10372_v49  ;;  %v10375_v58 = vadd.f32 %v12826_v30, %v1832_v3  ;;  %v3053_v50 = vsub.f32 %v12925_v16, %v14917_v0 }
 0x2a0   : > { %v12954_v18 = vand.u32 4294901760, %v12941_v22  ;;  %v12956_v27 = vpop.eup %11080  ;;  %v10374_v26 = vadd.f32 %v10373_v39, %v8785_v44  ;;  %8845 = vmatprep.mubr.f32.mxu1 %v3024_v17  ;;  %v12963_v49 = vsub.f32 %v12927_v19, %v12945_v9  ;;  %v15384_v61 = vand.u32 4294901760, %v12759_v51 }
 0x2a1   : > { %15382 = vst [vmem:[#allocation58_spill] sm:$0xff] %v12956_v27  ;;  %v3043_v31 = vsub.f32 %v12934_v47, %v14921_v7  ;;  %v12970_v0 = vpop.eup %11082  ;;  %v10376_v46 = vadd.f32 %v10375_v58, %v2766_v63  ;;  %v8548_v57 = vpop.f32.mrb[14].mxu1  ;;  %8846 = vmatmul.mubr.f32.vlgmr.msra.gmra.mrb[32].mxu1 %v3034_v25  ;;  %v3054_v17 = vand.u32 4294901760, %v3053_v50  ;;  %v12977_v39 = vand.u32 4294901760, %v12956_v27 }
 0x2a2   : > { %15383 = vst [vmem:[#allocation65_spill] sm:$0xff] %v12963_v49  ;;  %v12968_v3 = vsub.f32 %v12759_v51, %v15384_v61  ;;  %15385 = vst [vmem:[#allocation66_spill] sm:$0xff] %v12970_v0  ;;  %v8791_v21 = vpop.f32.mrb[16].mxu0  ;;  %v12974_v44 = vsub.f32 %v12941_v22, %v12954_v18  ;;  %11092 = vtanh.f32 %v10374_v26  ;;  %v10377_v7 = vadd.f32 %v8548_v57, %v12826_v30  ;;  %v1846_v61 = vpop.f32.mrb[15].mxu1 }
 0x2a3   : > { %10000 = vmatpush3.bf16.msra.mxu1 %v12728_v35  ;;  %v2790_v19 = vpop.f32.mrb[17].mxu0  ;;  %v3044_v56 = vand.u32 4294901760, %v3043_v31  ;;  %v14927_v58 = vand.u32 4294901760, %v12963_v49  ;;  %11094 = vtanh.f32 %v10376_v46  ;;  %v10379_v25 = vadd.f32 %v12826_v30, %v1846_v61 }
 0x2a4   : > { %10002 = vmatprep.subr.bf16.mxu1 %v12883_v2  ;;  %v12986_v50 = vand.u32 4294901760, %v12970_v0  ;;  %v12988_v26 = vpop.eup %11084  ;;  %v10378_v57 = vadd.f32 %v10377_v7, %v8788_v13  ;;  %v12995_v46 = vsub.f32 %v12956_v27, %v12977_v39  ;;  %v3443_v31 = vand.u32 4294901760, %v12939_v15 }
 0x2a5   : > { %15386 = vst [vmem:[#allocation67_spill] sm:$0xff] %v12988_v26  ;;  %8848 = vmatprep.mubr.f32.mxu1 %v3044_v56  ;;  %v3073_v35 = vsub.f32 %v12963_v49, %v14927_v58  ;;  %v12998_v61 = vpop.eup %11086  ;;  %v10380_v63 = vadd.f32 %v10379_v25, %v2778_v12  ;;  %v8551_v22 = vpop.f32.mrb[16].mxu1  ;;  %v15389_v55 = vand.u32 4294901760, %v12974_v44  ;;  %v13008_v7 = vand.u32 4294901760, %v12988_v26 }
 0x2a6   : > { %15387 = vst [vmem:[#allocation68_spill] sm:$0xff] %v12995_v46  ;;  %15388 = vst [vmem:[#allocation69_spill] sm:$0xff] %v12998_v61  ;;  %v8794_v14 = vpop.f32.mrb[18].mxu0  ;;  %8849 = vmatmul.mubr.f32.gmra.mrb[34].mxu1 %v3054_v17  ;;  %v13005_v56 = vsub.f32 %v12970_v0, %v12986_v50  ;;  %11096 = vtanh.f32 %v10378_v57  ;;  %v10381_v15 = vadd.f32 %v8551_v22, %v12826_v30  ;;  %v1860_v58 = vpop.f32.mrb[17].mxu1  ;;  %v14932_v17 = vand.u32 4294901760, %v12995_v46 }
 0x2a7   : > { %v3063_v13 = vsub.f32 %v12974_v44, %v15389_v55  ;;  %v2802_v27 = vpop.f32.mrb[19].mxu0  ;;  %v3074_v12 = vand.u32 4294901760, %v3073_v35  ;;  %10004 = vmatpush3.bf16.msra.mxu1 %v12883_v2  ;;  %11098 = vtanh.f32 %v10380_v63  ;;  %v10383_v55 = vadd.f32 %v12826_v30, %v1860_v58 }
 0x2a8   : > { %15390 = vst [vmem:[#allocation70_spill] sm:$0xff] %v13005_v56  ;;  %10006 = vmatprep.subr.bf16.mxu1 %v12889_v52  ;;  %v13016_v40 = vpop.eup %11088  ;;  %v10382_v57 = vadd.f32 %v10381_v15, %v8791_v21  ;;  %v3093_v22 = vsub.f32 %v12995_v46, %v14932_v17  ;;  %v13022_v35 = vand.u32 4294901760, %v12998_v61  ;;  %v13026_v2 = vsub.f32 %v12988_v26, %v13008_v7 }
 0x2a9   : > { %v3064_v25 = vand.u32 4294901760, %v3063_v13  ;;  %15391 = vst [vmem:[#allocation71_spill] sm:$0xff] %v13016_v40  ;;  %v13028_v58 = vpop.eup %11090  ;;  %v10384_v63 = vadd.f32 %v10383_v55, %v2790_v19  ;;  %v8554_v13 = vpop.f32.mrb[18].mxu1  ;;  %v15394_v23 = vand.u32 4294901760, %v13005_v56  ;;  %v13034_v15 = vand.u32 4294901760, %v13016_v40 }
 0x2aa   : > { %15392 = vst [vmem:[#allocation72_spill] sm:$0xff] %v13026_v2  ;;  %15393 = vst [vmem:[#allocation73_spill] sm:$0xff] %v13028_v58  ;;  %v8797_v0 = vpop.f32.mrb[20].mxu0  ;;  %v3450_v17 = vand.u32 4294901760, %v12968_v3  ;;  %11100 = vtanh.f32 %v10382_v57  ;;  %v10385_v5 = vadd.f32 %v8554_v13, %v12826_v30  ;;  %v1874_v26 = vpop.f32.mrb[19].mxu1  ;;  %v3094_v43 = vand.u32 4294901760, %v3093_v22 }
 0x2ab   : > { %8851 = vmatprep.mubr.f32.mxu1 %v3064_v25  ;;  %v3083_v21 = vsub.f32 %v13005_v56, %v15394_v23  ;;  %15395 = vst [vmem:[#allocation74_spill] sm:$0xff] %v13034_v15  ;;  %v2814_v60 = vpop.f32.mrb[21].mxu0  ;;  %v13040_v19 = vsub.f32 %v12998_v61, %v13022_v35  ;;  %11102 = vtanh.f32 %v10384_v63  ;;  %v10387_v55 = vadd.f32 %v12826_v30, %v1874_v26 }
 0x2ac   : > { %8852 = vmatmul.mubr.f32.gmra.mrb[36].mxu1 %v3074_v12  ;;  %v14943_v25 = vand.u32 4294901760, %v13026_v2  ;;  %v13045_v3 = vpop.eup %11092  ;;  %v10386_v57 = vadd.f32 %v10385_v5, %v8794_v14  ;;  %v13049_v13 = vand.u32 4294901760, %v13028_v58  ;;  %v13053_v22 = vsub.f32 %v13016_v40, %v13034_v15 }
 0x2ad   : > { %15396 = vst [vmem:[#allocation75_spill] sm:$0xff] %v13040_v19  ;;  %v3084_v23 = vand.u32 4294901760, %v3083_v21  ;;  %10008 = vmatpush3.bf16.msra.mxu1 %v12889_v52  ;;  %15397 = vst [vmem:[#allocation76_spill] sm:$0xff] %v13045_v3  ;;  %v13056_v26 = vpop.eup %11094  ;;  %v10388_v63 = vadd.f32 %v10387_v55, %v2802_v27  ;;  %v8557_v21 = vpop.f32.mrb[20].mxu1  ;;  %v13062_v14 = vand.u32 4294901760, %v13045_v3  ;;  %v13064_v12 = vpack.c.bf16 %v3450_v17, %v3443_v31 }
 0x2ae   : > { %15398 = vst [vmem:[#allocation77_spill] sm:$0xff] %v13053_v22  ;;  %10010 = vmatprep.subr.bf16.mxu1 %v12896_v34  ;;  %15399 = vst [vmem:[#allocation78_spill] sm:$0xff] %v13056_v26  ;;  %v8800_v52 = vpop.f32.mrb[22].mxu0  ;;  %v3113_v5 = vsub.f32 %v13026_v2, %v14943_v25  ;;  %11104 = vtanh.f32 %v10386_v57  ;;  %v10389_v40 = vadd.f32 %v8557_v21, %v12826_v30  ;;  %v1888_v61 = vpop.f32.mrb[21].mxu1  ;;  %v15401_v27 = vand.u32 4294901760, %v13040_v19 }
 0x2af   : > { %8854 = vmatprep.mubr.f32.mxu1 %v3084_v23  ;;  %15400 = vst [vmem:[#allocation79_spill] sm:$0xff] %v13062_v14  ;;  %v2826_v4 = vpop.f32.mrb[23].mxu0  ;;  %v13072_v23 = vsub.f32 %v13028_v58, %v13049_v13  ;;  %11106 = vtanh.f32 %v10388_v63  ;;  %v10391_v25 = vadd.f32 %v12826_v30, %v1888_v61  ;;  %v14949_v31 = vand.u32 4294901760, %v13053_v22 }
 0x2b0   : > { %8855 = vmatmul.mubr.f32.gmra.mrb[38].mxu1 %v3094_v43  ;;  %v3103_v55 = vsub.f32 %v13040_v19, %v15401_v27  ;;  %v3114_v2 = vand.u32 4294901760, %v3113_v5  ;;  %v13077_v17 = vpop.eup %11096  ;;  %v10390_v43 = vadd.f32 %v10389_v40, %v8797_v0  ;;  %v13081_v27 = vand.u32 4294901760, %v13056_v26 }
 0x2b1   : > { %15402 = vst [vmem:[#allocation80_spill] sm:$0xff] %v13072_v23  ;;  %10012 = vmatpush3.bf16.msra.mxu1 %v12896_v34  ;;  %15403 = vst [vmem:[#allocation81_spill] sm:$0xff] %v13077_v17  ;;  %v13084_v58 = vpop.eup %11098  ;;  %v10392_v63 = vadd.f32 %v10391_v25, %v2814_v60  ;;  %v8560_v61 = vpop.f32.mrb[22].mxu1  ;;  %v3133_v34 = vsub.f32 %v13053_v22, %v14949_v31  ;;  %v13091_v40 = vsub.f32 %v13045_v3, %v13062_v14 }
 0x2b2   : > { %v3104_v57 = vand.u32 4294901760, %v3103_v55  ;;  %15404 = vst [vmem:[#allocation82_spill] sm:$0xff] %v13081_v27  ;;  %10014 = vmatprep.subr.bf16.mxu1 %v12904_v29  ;;  %15405 = vst [vmem:[#allocation83_spill] sm:$0xff] %v13084_v58  ;;  %v8803_v5 = vpop.f32.mrb[24].mxu0  ;;  %v13094_v0 = vand.u32 4294901760, %v13077_v17  ;;  %11108 = vtanh.f32 %v10390_v43  ;;  %v10393_v55 = vadd.f32 %v8560_v61, %v12826_v30  ;;  %v1902_v21 = vpop.f32.mrb[23].mxu1 }
 0x2b3   : > { %15406 = vst [vmem:[#allocation84_spill] sm:$0xff] %v13091_v40  ;;  %v2838_v1 = vpop.f32.mrb[25].mxu0  ;;  %v15408_v60 = vand.u32 4294901760, %v13072_v23  ;;  %v13102_v31 = vsub.f32 %v13056_v26, %v13081_v27  ;;  %11110 = vtanh.f32 %v10392_v63  ;;  %v10395_v3 = vadd.f32 %v12826_v30, %v1902_v21 }
 0x2b4   : > { %15407 = vst [vmem:[#allocation85_spill] sm:$0xff] %v13094_v0  ;;  %8857 = vmatprep.mubr.f32.mxu1 %v3104_v57  ;;  %v3134_v22 = vand.u32 4294901760, %v3133_v34  ;;  %v14960_v43 = vand.u32 4294901760, %v13091_v40  ;;  %v13106_v57 = vpop.eup %11100  ;;  %v10394_v61 = vadd.f32 %v10393_v55, %v8800_v52  ;;  %v13110_v37 = vand.u32 4294901760, %v13084_v58 }
 0x2b5   : > { %v3123_v25 = vsub.f32 %v13072_v23, %v15408_v60  ;;  %15409 = vst [vmem:[#allocation86_spill] sm:$0xff] %v13102_v31  ;;  %8858 = vmatmul.mubr.f32.gmra.mrb[40].mxu1 %v3114_v2  ;;  %15410 = vst [vmem:[#allocation87_spill] sm:$0xff] %v13106_v57  ;;  %v14968_v46 = vand.u32 4294901760, %v13102_v31  ;;  %v13113_v60 = vpop.eup %11102  ;;  %v10396_v63 = vadd.f32 %v10395_v3, %v2826_v4  ;;  %v8563_v2 = vpop.f32.mrb[24].mxu1  ;;  %v13123_v34 = vand.u32 4294901760, %v13106_v57 }
 0x2b6   : > { %15411 = vst [vmem:[#allocation88_spill] sm:$0xff] %v13110_v37  ;;  %10016 = vmatpush3.bf16.msra.mxu1 %v12904_v29  ;;  %15412 = vst [vmem:[#allocation89_spill] sm:$0xff] %v13113_v60  ;;  %v8806_v26 = vpop.f32.mrb[26].mxu0  ;;  %v3153_v21 = vsub.f32 %v13091_v40, %v14960_v43  ;;  %v13120_v52 = vsub.f32 %v13077_v17, %v13094_v0  ;;  %11112 = vtanh.f32 %v10394_v61  ;;  %v1916_v4 = vpop.f32.mrb[25].mxu1  ;;  %v13140_v56 = vand.u32 4294901760, %v13113_v60 }
 0x2b7   : > { %v3124_v19 = vand.u32 4294901760, %v3123_v25  ;;  %15414 = vst [vmem:[#allocation91_spill] sm:$0xff] %v13123_v34  ;;  %10018 = vmatprep.subr.bf16.mxu1 %v12747_v45  ;;  %v10397_v29 = vadd.f32 %v8563_v2, %v12826_v30  ;;  %v2850_v3 = vpop.f32.mrb[27].mxu0  ;;  %v3143_v55 = vsub.f32 %v13102_v31, %v14968_v46  ;;  %v13132_v25 = vsub.f32 %v13084_v58, %v13110_v37 }
 0x2b8   : > { %15413 = vst [vmem:[#allocation90_spill] sm:$0xff] %v13120_v52  ;;  %11114 = vtanh.f32 %v10396_v63  ;;  %v10399_v43 = vadd.f32 %v12826_v30, %v1916_v4  ;;  %v3154_v17 = vand.u32 4294901760, %v3153_v21  ;;  %v14970_v61 = vand.u32 4294901760, %v13120_v52  ;;  %15417 = vst [vmem:[#allocation94_spill] sm:$0xff] %v13140_v56 }
 0x2b9   : > { %8860 = vmatprep.mubr.f32.mxu1 %v3124_v19  ;;  %15415 = vst [vmem:[#allocation92_spill] sm:$0xff] %v13132_v25  ;;  %v13136_v19 = vpop.eup %11104  ;;  %v10398_v2 = vadd.f32 %v10397_v29, %v8803_v5  ;;  %v3144_v40 = vand.u32 4294901760, %v3143_v55  ;;  %v14978_v23 = vand.u32 4294901760, %v13132_v25  ;;  %v8809_v58 = vpop.f32.mrb[28].mxu0  ;;  %v13150_v5 = vsub.f32 %v13106_v57, %v13123_v34 }
 0x2ba   : > { %8861 = vmatmul.mubr.f32.gmra.mrb[42].mxu1 %v3134_v22  ;;  %15416 = vst [vmem:[#allocation93_spill] sm:$0xff] %v13136_v19  ;;  %v13143_v46 = vpop.eup %11106  ;;  %v10400_v63 = vadd.f32 %v10399_v43, %v2838_v1  ;;  %v8566_v22 = vpop.f32.mrb[26].mxu1  ;;  %v3173_v21 = vsub.f32 %v13120_v52, %v14970_v61  ;;  %v13153_v29 = vand.u32 4294901760, %v13136_v19  ;;  %v13162_v55 = vsub.f32 %v13113_v60, %v13140_v56 }
 0x2bb   : > { %10020 = vmatpush3.bf16.msra.mxu1 %v12747_v45  ;;  %15418 = vst [vmem:[#allocation95_spill] sm:$0xff] %v13143_v46  ;;  %15419 = vst [vmem:[#allocation96_spill] sm:$0xff] %v13150_v5  ;;  %11116 = vtanh.f32 %v10398_v2  ;;  %8863 = vmatprep.mubr.f32.mxu1 %v3144_v40  ;;  %v10401_v45 = vadd.f32 %v8566_v22, %v12826_v30  ;;  %v1930_v1 = vpop.f32.mrb[27].mxu1  ;;  %v2862_v43 = vpop.f32.mrb[29].mxu0  ;;  %v3163_v4 = vsub.f32 %v13132_v25, %v14978_v23 }
 0x2bc   : > { %15420 = vst [vmem:[#allocation97_spill] sm:$0xff] %v13153_v29  ;;  %10022 = vmatprep.subr.bf16.mxu1 %v12761_v41  ;;  %11118 = vtanh.f32 %v10400_v63  ;;  %v10403_v61 = vadd.f32 %v12826_v30, %v1930_v1  ;;  %v3174_v57 = vand.u32 4294901760, %v3173_v21  ;;  %v14980_v2 = vand.u32 4294901760, %v13150_v5  ;;  %v13166_v40 = vpop.eup %11108 }
 0x2bd   : > { %15421 = vst [vmem:[#allocation98_spill] sm:$0xff] %v13166_v40  ;;  %v10402_v22 = vadd.f32 %v10401_v45, %v8806_v26  ;;  %v3164_v52 = vand.u32 4294901760, %v3163_v4  ;;  %v14988_v31 = vand.u32 4294901760, %v13162_v55  ;;  %v13170_v49 = vand.u32 4294901760, %v13143_v46  ;;  %v13173_v23 = vpop.eup %11110  ;;  %v8812_v60 = vpop.f32.mrb[30].mxu0 }
 0x2be   : > { %8864 = vmatmul.mubr.f32.gmra.mrb[44].mxu1 %v3154_v17  ;;  %15423 = vst [vmem:[#allocation100_spill] sm:$0xff] %v13173_v23  ;;  %v10404_v63 = vadd.f32 %v10403_v61, %v2850_v3  ;;  %v8569_v17 = vpop.f32.mrb[28].mxu1  ;;  %v3193_v21 = vsub.f32 %v13150_v5, %v14980_v2  ;;  %v13180_v26 = vsub.f32 %v13136_v19, %v13153_v29  ;;  %v13183_v45 = vand.u32 4294901760, %v13166_v40  ;;  %v2874_v61 = vpop.f32.mrb[31].mxu0 }
 0x2bf   : > { %15422 = vst [vmem:[#allocation99_spill] sm:$0xff] %v13170_v49  ;;  %10024 = vmatpush3.bf16.msra.mxu1 %v12761_v41  ;;  %11120 = vtanh.f32 %v10402_v22  ;;  %8866 = vmatprep.mubr.f32.mxu1 %v3164_v52  ;;  %v10405_v41 = vadd.f32 %v8569_v17, %v12826_v30  ;;  %v1944_v3 = vpop.f32.mrb[29].mxu1  ;;  %v3183_v1 = vsub.f32 %v13162_v55, %v14988_v31  ;;  %v13200_v62 = vand.u32 4294901760, %v13173_v23 }
 0x2c0   : > { %15424 = vst [vmem:[#allocation101_spill] sm:$0xff] %v13180_v26  ;;  %15425 = vst [vmem:[#allocation102_spill] sm:$0xff] %v13183_v45  ;;  %10026 = vmatprep.subr.bf16.mxu1 %v13064_v12  ;;  %v13192_v4 = vsub.f32 %v13143_v46, %v13170_v49  ;;  %11122 = vtanh.f32 %v10404_v63  ;;  %v10407_v2 = vadd.f32 %v12826_v30, %v1944_v3  ;;  %v3194_v19 = vand.u32 4294901760, %v3193_v21  ;;  %v13196_v52 = vpop.eup %11112 }
 0x2c1   : > { %v14989_v22 = vand.u32 4294901760, %v13180_v26  ;;  %15427 = vst [vmem:[#allocation104_spill] sm:$0xff] %v13196_v52  ;;  %v10406_v17 = vadd.f32 %v10405_v41, %v8809_v58  ;;  %v3184_v5 = vand.u32 4294901760, %v3183_v1  ;;  %15428 = vst [vmem:[#allocation105_spill] sm:$0xff] %v13200_v62  ;;  %v13210_v3 = vsub.f32 %v13166_v40, %v13183_v45 }
 0x2c2   : > { %15426 = vst [vmem:[#allocation103_spill] sm:$0xff] %v13192_v4  ;;  %8867 = vmatmul.mubr.f32.gmra.mrb[46].mxu1 %v3174_v57  ;;  %v14994_v25 = vand.u32 4294901760, %v13192_v4  ;;  %v13203_v31 = vpop.eup %11114  ;;  %v10408_v63 = vadd.f32 %v10407_v2, %v2862_v43  ;;  %v8572_v57 = vpop.f32.mrb[30].mxu1  ;;  %v13213_v58 = vand.u32 4294901760, %v13196_v52  ;;  %v13222_v2 = vsub.f32 %v13173_v23, %v13200_v62 }
 0x2c3   : > { %10028 = vmatpush3.bf16.msra.mxu1 %v13064_v12  ;;  %15429 = vst [vmem:[#allocation106_spill] sm:$0xff] %v13203_v31  ;;  %v3213_v21 = vsub.f32 %v13180_v26, %v14989_v22  ;;  %15430 = vst [vmem:[#allocation107_spill] sm:$0xff] %v13210_v3  ;;  %11124 = vtanh.f32 %v10406_v17  ;;  %8869 = vmatprep.mubr.f32.mxu1 %v3184_v5  ;;  %v10409_v12 = vadd.f32 %v8572_v57, %v12826_v30  ;;  %v1958_v41 = vpop.f32.mrb[31].mxu1 }
 0x2c4   : > { %15431 = vst [vmem:[#allocation108_spill] sm:$0xff] %v13213_v58  ;;  %10030 = vmatprep.subr.bf16.mxu1 %v12765_v10  ;;  %v3203_v43 = vsub.f32 %v13192_v4, %v14994_v25  ;;  %15432 = vst [vmem:[#allocation109_spill] sm:$0xff] %v13222_v2  ;;  %11126 = vtanh.f32 %v10408_v63  ;;  %v10411_v1 = vadd.f32 %v12826_v30, %v1958_v41  ;;  %v14996_v40 = vand.u32 4294901760, %v13210_v3 }
 0x2c5   : > { %v3214_v22 = vand.u32 4294901760, %v3213_v21  ;;  %v13226_v17 = vpop.eup %11116  ;;  %v10410_v5 = vadd.f32 %v10409_v12, %v8812_v60  ;;  %v14997_v46 = vand.u32 4294901760, %v13222_v2  ;;  %v13230_v26 = vand.u32 4294901760, %v13203_v31 }
 0x2c6   : > { %8870 = vmatmul.mubr.f32.gmra.mrb[48].mxu1 %v3194_v19  ;;  %15433 = vst [vmem:[#allocation110_spill] sm:$0xff] %v13226_v17  ;;  %v3204_v57 = vand.u32 4294901760, %v3203_v43  ;;  %v13232_v25 = vpop.eup %11118  ;;  %v10412_v23 = vadd.f32 %v10411_v1, %v2874_v61  ;;  %v3233_v19 = vsub.f32 %v13210_v3, %v14996_v40  ;;  %v13239_v30 = vsub.f32 %v13196_v52, %v13213_v58 }
 0x2c7   : > { %15434 = vst [vmem:[#allocation111_spill] sm:$0xff] %v13230_v26  ;;  %15435 = vst [vmem:[#allocation112_spill] sm:$0xff] %v13232_v25  ;;  %v13242_v63 = vand.u32 4294901760, %v13226_v17  ;;  %11128 = vtanh.f32 %v10410_v5  ;;  %v3223_v60 = vsub.f32 %v13222_v2, %v14997_v46  ;;  %v13249_v61 = vsub.f32 %v13203_v31, %v13230_v26 }
 0x2c8   : > { %15436 = vst [vmem:[#allocation113_spill] sm:$0xff] %v13239_v30  ;;  %8872 = vmatprep.mubr.f32.mxu1 %v3204_v57  ;;  %v13252_v21 = vand.u32 4294901760, %v13232_v25  ;;  %11130 = vtanh.f32 %v10412_v23  ;;  %v15001_v12 = vand.u32 4294901760, %v13239_v30  ;;  %v3234_v46 = vand.u32 4294901760, %v3233_v19 }
 0x2c9   : > { %15437 = vst [vmem:[#allocation114_spill] sm:$0xff] %v13242_v63  ;;  %15438 = vst [vmem:[#allocation115_spill] sm:$0xff] %v13249_v61  ;;  %v13257_v41 = vsub.f32 %v13226_v17, %v13242_v63  ;;  %v13259_v43 = vpop.eup %11120  ;;  %v3224_v1 = vand.u32 4294901760, %v3223_v60  ;;  %v15002_v5 = vand.u32 4294901760, %v13249_v61 }
 0x2ca   : > { %15439 = vst [vmem:[#allocation116_spill] sm:$0xff] %v13252_v21  ;;  %8873 = vmatmul.mubr.f32.gmra.mrb[50].mxu1 %v3214_v22  ;;  %15441 = vst [vmem:[#allocation118_spill] sm:$0xff] %v13259_v43  ;;  %v13264_v57 = vsub.f32 %v13232_v25, %v13252_v21  ;;  %v13266_v40 = vpop.eup %11122  ;;  %v3253_v23 = vsub.f32 %v13239_v30, %v15001_v12  ;;  %v13273_v17 = vand.u32 4294901760, %v13259_v43 }
 0x2cb   : > { %15440 = vst [vmem:[#allocation117_spill] sm:$0xff] %v13257_v41  ;;  %15443 = vst [vmem:[#allocation120_spill] sm:$0xff] %v13266_v40  ;;  %8875 = vmatprep.mubr.f32.mxu1 %v3224_v1  ;;  %v3243_v60 = vsub.f32 %v13249_v61, %v15002_v5  ;;  %v13280_v31 = vand.u32 4294901760, %v13266_v40 }
 0x2cc   : > { %15442 = vst [vmem:[#allocation119_spill] sm:$0xff] %v13264_v57  ;;  %15444 = vst [vmem:[#allocation121_spill] sm:$0xff] %v13273_v17  ;;  %v15011_v25 = vand.u32 4294901760, %v13264_v57  ;;  %v13284_v19 = vsub.f32 %v13259_v43, %v13273_v17  ;;  %v3254_v30 = vand.u32 4294901760, %v3253_v23 }
 0x2cd   : > { %15445 = vst [vmem:[#allocation122_spill] sm:$0xff] %v13280_v31  ;;  %v13286_v12 = vpop.eup %11124  ;;  %v3244_v22 = vand.u32 4294901760, %v3243_v60  ;;  %v13293_v5 = vsub.f32 %v13266_v40, %v13280_v31 }
 0x2ce   : > { %8876 = vmatmul.mubr.f32.gmra.mrb[52].mxu1 %v3234_v46  ;;  %15446 = vst [vmem:[#allocation123_spill] sm:$0xff] %v13284_v19  ;;  %15447 = vst [vmem:[#allocation124_spill] sm:$0xff] %v13286_v12  ;;  %v3263_v1 = vsub.f32 %v13264_v57, %v15011_v25  ;;  %v13295_v52 = vpop.eup %11126  ;;  %v15450_v46 = vand.u32 4294901760, %v13257_v41  ;;  %v13302_v3 = vand.u32 4294901760, %v13286_v12 }
 0x2cf   : > { %15448 = vst [vmem:[#allocation125_spill] sm:$0xff] %v13293_v5  ;;  %15449 = vst [vmem:[#allocation126_spill] sm:$0xff] %v13295_v52  ;;  %8878 = vmatprep.mubr.f32.mxu1 %v3244_v22  ;;  %v15022_v25 = vand.u32 4294901760, %v13293_v5  ;;  %v13306_v57 = vand.u32 4294901760, %v13295_v52 }
 0x2d0   : > { %v3273_v61 = vsub.f32 %v13257_v41, %v15450_v46  ;;  %15451 = vst [vmem:[#allocation127_spill] sm:$0xff] %v13302_v3  ;;  %v3264_v60 = vand.u32 4294901760, %v3263_v1  ;;  %v13310_v23 = vsub.f32 %v13286_v12, %v13302_v3 }
 0x2d1   : > { %15452 = vst [vmem:[#allocation128_spill] sm:$0xff] %v13306_v57  ;;  %v13312_v40 = vpop.eup %11128  ;;  %v3283_v46 = vsub.f32 %v13293_v5, %v15022_v25  ;;  %v13319_v22 = vsub.f32 %v13295_v52, %v13306_v57 }
 0x2d2   : > { %8879 = vmatmul.mubr.f32.gmra.mrb[54].mxu1 %v3254_v30  ;;  %15453 = vst [vmem:[#allocation129_spill] sm:$0xff] %v13312_v40  ;;  %v13321_v1 = vpop.eup %11130  ;;  %v3274_v43 = vand.u32 4294901760, %v3273_v61  ;;  %v15455_v30 = vand.u32 4294901760, %v13284_v19  ;;  %v15031_v12 = vand.u32 4294901760, %v13310_v23  ;;  %v13328_v2 = vand.u32 4294901760, %v13312_v40 }
 0x2d3   : > { %8881 = vmatprep.mubr.f32.mxu1 %v3264_v60  ;;  %15454 = vst [vmem:[#allocation130_spill] sm:$0xff] %v13321_v1  ;;  %v3284_v60 = vand.u32 4294901760, %v3283_v46  ;;  %v15029_v4 = vand.u32 4294901760, %v13319_v22  ;;  %v13332_v25 = vand.u32 4294901760, %v13321_v1 }
 0x2d4   : > { %v3293_v41 = vsub.f32 %v13284_v19, %v15455_v30  ;;  %15456 = vst [vmem:[#allocation131_spill] sm:$0xff] %v13328_v2  ;;  %v13336_v52 = vsub.f32 %v13312_v40, %v13328_v2  ;;  %v3313_v19 = vsub.f32 %v13310_v23, %v15031_v12 }
 0x2d5   : > { %15457 = vst [vmem:[#allocation132_spill] sm:$0xff] %v13332_v25  ;;  %v3303_v61 = vsub.f32 %v13319_v22, %v15029_v4  ;;  %v13343_v30 = vsub.f32 %v13321_v1, %v13332_v25 }
 0x2d6   : > { %8882 = vmatmul.mubr.f32.gmra.mrb[56].mxu1 %v3274_v43  ;;  %v3294_v46 = vand.u32 4294901760, %v3293_v41  ;;  %v15032_v43 = vand.u32 4294901760, %v13336_v52  ;;  %v3314_v4 = vand.u32 4294901760, %v3313_v19  ;;  %v15467_v19 = vld [vmem:[#allocation9_spill] sm:$0xff] }
 0x2d7   : > { %8884 = vmatprep.mubr.f32.mxu1 %v3284_v60  ;;  %v3304_v5 = vand.u32 4294901760, %v3303_v61  ;;  %v15033_v40 = vand.u32 4294901760, %v13343_v30  ;;  %v15469_v61 = vld [vmem:[#allocation86_spill] sm:$0xff] }
 0x2d8   : > { %v3333_v41 = vsub.f32 %v13336_v52, %v15032_v43  ;;  %v15474_v43 = vld [vmem:[#allocation19_spill] sm:$0xff] }
 0x2d9   : > { %v3323_v60 = vsub.f32 %v13343_v30, %v15033_v40  ;;  %v15475_v40 = vand.u32 4294901760, %v15474_v43  ;;  %v15484_v43 = vld [vmem:[#allocation115_spill] sm:$0xff] }
 0x2da   : > { %8885 = vmatmul.mubr.f32.gmra.mrb[58].mxu1 %v3294_v46  ;;  %v3334_v12 = vand.u32 4294901760, %v3333_v41  ;;  %v15470_v46 = vld [vmem:[#allocation10_spill] sm:$0xff]  ;;  %v15472_v41 = vld [vmem:[#allocation92_spill] sm:$0xff] }
 0x2db   : > { %8887 = vmatprep.mubr.f32.mxu1 %v3304_v5  ;;  %v3324_v1 = vand.u32 4294901760, %v3323_v60  ;;  %v15466_v5 = vld [vmem:[#allocation80_spill] sm:$0xff] }
 0x2dc   : > { %v15471_v60 = vld [vmem:[#allocation84_spill] sm:$0xff] }
 0x2de   : > { %8888 = vmatmul.mubr.f32.gmra.mrb[60].mxu1 %v3314_v4  ;;  %v15464_v4 = vld [vmem:[#allocation8_spill] sm:$0xff] }
 0x2df   : > { %8890 = vmatprep.mubr.f32.mxu1 %v3324_v1  ;;  %v15468_v1 = vld [vmem:[#allocation77_spill] sm:$0xff] }
 0x2e2   : > { %8891 = vmatmul.mubr.f32.gmra.mrb[62].mxu1 %v3334_v12  ;;  %v15465_v12 = vld [vmem:[#allocation72_spill] sm:$0xff] }
 0x2e3   : > { %8925 = vmatprep.mubr.f32.mxu1 %v12887_v24 }
 0x2e6   : > { %8926 = vmatmul.mubr.f32.vlgmr.msra.gmra.mrb[32].mxu1 %v12881_v32 }
 0x2e7   : > { %10032 = vmatpush3.bf16.msra.mxu1 %v12765_v10  ;;  %8928 = vmatprep.mubr.f32.mxu1 %v12917_v53  ;;  %v10057_v10 = vpack.c.bf16 %v12759_v51, %v12757_v11 }
 0x2e8   : > { %10034 = vmatprep.subr.bf16.mxu1 %v12779_v54 }
 0x2ea   : > { %8929 = vmatmul.mubr.f32.gmra.mrb[34].mxu1 %v12911_v20 }
 0x2eb   : > { %8931 = vmatprep.mubr.f32.mxu1 %v12954_v18  ;;  %10036 = vmatpush3.bf16.msra.mxu1 %v12779_v54  ;;  %v15458_v54 = vld [vmem:[#allocation6_spill] sm:$0xff] }
 0x2ec   : > { %10038 = vmatprep.subr.bf16.mxu1 %v12793_v28 }
 0x2ee   : > { %8932 = vmatmul.mubr.f32.gmra.mrb[36].mxu1 %v12945_v9 }
 0x2ef   : > { %8934 = vmatprep.mubr.f32.mxu1 %v12986_v50  ;;  %10040 = vmatpush3.bf16.msra.mxu1 %v12793_v28  ;;  %v15459_v28 = vld [vmem:[#allocation65_spill] sm:$0xff] }
 0x2f0   : > { %10042 = vmatprep.subr.bf16.mxu1 %v12807_v6 }
 0x2f2   : > { %8935 = vmatmul.mubr.f32.gmra.mrb[38].mxu1 %v12977_v39 }
 0x2f3   : > { %8937 = vmatprep.mubr.f32.mxu1 %v13022_v35  ;;  %10044 = vmatpush3.bf16.msra.mxu1 %v12807_v6  ;;  %v15460_v6 = vld [vmem:[#allocation70_spill] sm:$0xff] }
 0x2f4   : > { %10046 = vmatprep.subr.bf16.mxu1 %v12821_v8 }
 0x2f6   : > { %8938 = vmatmul.mubr.f32.gmra.mrb[40].mxu1 %v13008_v7 }
 0x2f7   : > { %8940 = vmatprep.mubr.f32.mxu1 %v13049_v13  ;;  %10048 = vmatpush3.bf16.msra.mxu1 %v12821_v8  ;;  %v15461_v8 = vld [vmem:[#allocation7_spill] sm:$0xff] }
 0x2f8   : > { %10050 = vmatprep.subr.bf16.mxu1 %v12832_v48 }
 0x2fa   : > { %8941 = vmatmul.mubr.f32.gmra.mrb[42].mxu1 %v13034_v15 }
 0x2fb   : > { %8943 = vmatprep.mubr.f32.mxu1 %v13081_v27  ;;  %10052 = vmatpush3.bf16.msra.mxu1 %v12832_v48  ;;  %v15462_v48 = vld [vmem:[#allocation68_spill] sm:$0xff]  ;;  %v15499_v27 = vld [vmem:[#allocation37_spill] sm:$0xff] }
 0x2fc   : > { %10054 = vmatprep.subr.bf16.mxu1 %v12872_v38  ;;  %v15500_v15 = vand.u32 4294901760, %v15499_v27  ;;  %v15511_v27 = vld [vmem:[#allocation45_spill] sm:$0xff] }
 0x2fe   : > { %8944 = vmatmul.mubr.f32.gmra.mrb[44].mxu1 %v13062_v14  ;;  %v15497_v14 = vld [vmem:[#allocation35_spill] sm:$0xff] }
 0x2ff   : > { %8946 = vmatprep.mubr.f32.mxu1 %v13110_v37  ;;  %10056 = vmatpush3.bf16.msra.mxu1 %v12872_v38  ;;  %v15463_v38 = vld [vmem:[#allocation75_spill] sm:$0xff]  ;;  %v15496_v37 = vand.u32 4294901760, %v12934_v47 }
 0x300   : > { %10058 = vmatprep.subr.bf16.mxu1 %v10057_v10 }
 0x302   : > { %8947 = vmatmul.mubr.f32.gmra.mrb[46].mxu1 %v13094_v0 }
 0x303   : > { %8949 = vmatprep.mubr.f32.mxu1 %v13140_v56  ;;  %10060 = vmatpush3.bf16.msra.mxu1 %v10057_v10  ;;  %v15473_v10 = vld [vmem:[#allocation16_spill] sm:$0xff] }
 0x304   : > { %10062 = vmatprep.subr.bf16.mxu1 %v12499_v42 }
 0x306   : > { %8950 = vmatmul.mubr.f32.gmra.mrb[48].mxu1 %v13123_v34  ;;  %v15493_v34 = vld [vmem:[#allocation32_spill] sm:$0xff] }
 0x307   : > { %8952 = vmatprep.mubr.f32.mxu1 %v13170_v49  ;;  %v15494_v56 = vand.u32 4294901760, %v15493_v34 }
 0x30a   : > { %8953 = vmatmul.mubr.f32.gmra.mrb[50].mxu1 %v13153_v29  ;;  %v15491_v29 = vld [vmem:[#allocation29_spill] sm:$0xff] }
 0x30b   : > { %8955 = vmatprep.mubr.f32.mxu1 %v13200_v62  ;;  %v15490_v62 = vand.u32 4294901760, %v12902_v33  ;;  %v15492_v49 = vand.u32 4294901760, %v15491_v29 }
 0x30d   : > { %v10097_v0 = vpack.c.bf16 %v15494_v56, %v15492_v49  ;;  %v15505_v56 = vld [vmem:[#allocation39_spill] sm:$0xff] }
 0x30e   : > { %8956 = vmatmul.mubr.f32.gmra.mrb[52].mxu1 %v13183_v45  ;;  %v15489_v45 = vld [vmem:[#allocation123_spill] sm:$0xff]  ;;  %v15506_v34 = vand.u32 4294901760, %v15505_v56 }
 0x30f   : > { %8958 = vmatprep.mubr.f32.mxu1 %v13230_v26  ;;  %v15488_v26 = vld [vmem:[#allocation125_spill] sm:$0xff] }
 0x312   : > { %8959 = vmatmul.mubr.f32.gmra.mrb[54].mxu1 %v13213_v58  ;;  %v15483_v58 = vld [vmem:[#allocation107_spill] sm:$0xff] }
 0x313   : > { %8961 = vmatprep.mubr.f32.mxu1 %v13252_v21  ;;  %v15482_v21 = vld [vmem:[#allocation109_spill] sm:$0xff] }
 0x316   : > { %8962 = vmatmul.mubr.f32.gmra.mrb[56].mxu1 %v13242_v63  ;;  %v15481_v63 = vld [vmem:[#allocation101_spill] sm:$0xff] }
 0x317   : > { %8964 = vmatprep.mubr.f32.mxu1 %v13280_v31  ;;  %v15480_v31 = vld [vmem:[#allocation103_spill] sm:$0xff] }
 0x31a   : > { %8965 = vmatmul.mubr.f32.gmra.mrb[58].mxu1 %v13273_v17  ;;  %v15479_v17 = vld [vmem:[#allocation96_spill] sm:$0xff] }
 0x31b   : > { %8967 = vmatprep.mubr.f32.mxu1 %v13306_v57  ;;  %v15478_v57 = vld [vmem:[#allocation90_spill] sm:$0xff] }
 0x31e   : > { %8968 = vmatmul.mubr.f32.gmra.mrb[60].mxu1 %v13302_v3 }
 0x31f   : > { %8970 = vmatprep.mubr.f32.mxu1 %v13332_v25 }
 0x322   : > { %8971 = vmatmul.mubr.f32.gmra.mrb[62].mxu1 %v13328_v2  ;;  %v15476_v2 = vld [vmem:[#allocation21_spill] sm:$0xff] }
 0x323   : > { %9005 = vmatprep.mubr.f32.mxu1 %v12902_v33  ;;  %v15477_v25 = vand.u32 4294901760, %v15476_v2  ;;  %v15487_v2 = vld [vmem:[#allocation117_spill] sm:$0xff]  ;;  %v15502_v33 = vand.u32 4294901760, %v12974_v44 }
 0x325   : > { %v10093_v3 = vpack.c.bf16 %v15477_v25, %v15475_v40  ;;  %v15485_v25 = vld [vmem:[#allocation113_spill] sm:$0xff]  ;;  %v15486_v40 = vld [vmem:[#allocation119_spill] sm:$0xff] }
 0x326   : > { %9006 = vmatmul.mubr.f32.vlgmr.msra.gmra.mrb[32].mxu1 %v12894_v36 }
 0x327   : > { %10064 = vmatpush3.bf16.msra.mxu1 %v12499_v42  ;;  %9008 = vmatprep.mubr.f32.mxu1 %v12934_v47 }
 0x328   : > { %10066 = vmatprep.subr.bf16.mxu1 %v12565_v59 }
 0x32a   : > { %9009 = vmatmul.mubr.f32.gmra.mrb[34].mxu1 %v12925_v16 }
 0x32b   : > { %9011 = vmatprep.mubr.f32.mxu1 %v12974_v44  ;;  %10068 = vmatpush3.bf16.msra.mxu1 %v12565_v59  ;;  %v15512_v44 = vand.u32 4294901760, %v15511_v27  ;;  %v13575_v27 = vld [vmem:[%s14808_s7 + $0x20] sm:$0xff] }
 0x32c   : > { %10070 = vmatprep.subr.bf16.mxu1 %v15458_v54 }
 0x32e   : > { %9012 = vmatmul.mubr.f32.gmra.mrb[36].mxu1 %v15459_v28 }
 0x32f   : > { %9014 = vmatprep.mubr.f32.mxu1 %v15460_v6  ;;  %10072 = vmatpush3.bf16.msra.mxu1 %v15458_v54 }
 0x330   : > { %10074 = vmatprep.subr.bf16.mxu1 %v15461_v8 }
 0x332   : > { %9015 = vmatmul.mubr.f32.gmra.mrb[38].mxu1 %v15462_v48 }
 0x333   : > { %9017 = vmatprep.mubr.f32.mxu1 %v15463_v38  ;;  %10076 = vmatpush3.bf16.msra.mxu1 %v15461_v8 }
 0x334   : > { %10078 = vmatprep.subr.bf16.mxu1 %v15464_v4 }
 0x336   : > { %9018 = vmatmul.mubr.f32.gmra.mrb[40].mxu1 %v15465_v12 }
 0x337   : > { %9020 = vmatprep.mubr.f32.mxu1 %v15466_v5  ;;  %10080 = vmatpush3.bf16.msra.mxu1 %v15464_v4 }
 0x338   : > { %10082 = vmatprep.subr.bf16.mxu1 %v15467_v19 }
 0x33a   : > { %9021 = vmatmul.mubr.f32.gmra.mrb[42].mxu1 %v15468_v1 }
 0x33b   : > { %9023 = vmatprep.mubr.f32.mxu1 %v15469_v61  ;;  %10084 = vmatpush3.bf16.msra.mxu1 %v15467_v19 }
 0x33c   : > { %10086 = vmatprep.subr.bf16.mxu1 %v15470_v46 }
 0x33e   : > { %9024 = vmatmul.mubr.f32.gmra.mrb[44].mxu1 %v15471_v60 }
 0x33f   : > { %9026 = vmatprep.mubr.f32.mxu1 %v15472_v41  ;;  %10088 = vmatpush3.bf16.msra.mxu1 %v15470_v46  ;;  %v15498_v46 = vand.u32 4294901760, %v15497_v14  ;;  %v15508_v14 = vand.u32 4294901760, %v15460_v6 }
 0x340   : > { %10090 = vmatprep.subr.bf16.mxu1 %v15473_v10 }
 0x341   : > { %v10101_v19 = vpack.c.bf16 %v15500_v15, %v15498_v46 }
 0x342   : > { %9027 = vmatmul.mubr.f32.gmra.mrb[46].mxu1 %v15478_v57 }
 0x343   : > { %9029 = vmatprep.mubr.f32.mxu1 %v13162_v55  ;;  %10092 = vmatpush3.bf16.msra.mxu1 %v15473_v10  ;;  %v15495_v10 = vand.u32 4294901760, %v12894_v36  ;;  %v15503_v36 = vld [vmem:[#allocation34_spill] sm:$0xff] }
 0x344   : > { %10094 = vmatprep.subr.bf16.mxu1 %v10093_v3  ;;  %v15504_v49 = vand.u32 4294901760, %v15503_v36 }
 0x346   : > { %9030 = vmatmul.mubr.f32.gmra.mrb[48].mxu1 %v15479_v17  ;;  %v10105_v47 = vpack.c.bf16 %v15506_v34, %v15504_v49  ;;  %v15523_v49 = vld [vmem:[#allocation26_spill] sm:$0xff]  ;;  %v15525_v34 = vand.u32 4294901760, %v15468_v1  ;;  %v15531_v1 = vand.u32 4294901760, %v15478_v57  ;;  %v15537_v57 = vand.u32 4294901760, %v15483_v58 }
 0x347   : > { %9032 = vmatprep.mubr.f32.mxu1 %v15480_v31 }
 0x34a   : > { %9033 = vmatmul.mubr.f32.gmra.mrb[50].mxu1 %v15481_v63 }
 0x34b   : > { %9035 = vmatprep.mubr.f32.mxu1 %v15482_v21 }
 0x34e   : > { %9036 = vmatmul.mubr.f32.gmra.mrb[52].mxu1 %v15483_v58  ;;  %v15544_v58 = vand.u32 4294901760, %v13319_v22 }
 0x34f   : > { %9038 = vmatprep.mubr.f32.mxu1 %v15484_v43 }
 0x352   : > { %9039 = vmatmul.mubr.f32.gmra.mrb[54].mxu1 %v15485_v25 }
 0x353   : > { %9041 = vmatprep.mubr.f32.mxu1 %v15486_v40 }
 0x356   : > { %9042 = vmatmul.mubr.f32.gmra.mrb[56].mxu1 %v15487_v2 }
 0x357   : > { %9044 = vmatprep.mubr.f32.mxu1 %v15488_v26 }
 0x35a   : > { %9045 = vmatmul.mubr.f32.gmra.mrb[58].mxu1 %v15489_v45 }
 0x35b   : > { %9047 = vmatprep.mubr.f32.mxu1 %v13319_v22 }
 0x35e   : > { %9048 = vmatmul.mubr.f32.gmra.mrb[60].mxu1 %v13310_v23 }
 0x35f   : > { %9050 = vmatprep.mubr.f32.mxu1 %v13343_v30 }
 0x362   : > { %9051 = vmatmul.mubr.f32.gmra.mrb[62].mxu1 %v13336_v52 }
 0x363   : > { %9085 = vmatprep.mubr.f32.mxu1 %v15490_v62  ;;  %v15501_v62 = vand.u32 4294901760, %v12925_v16  ;;  %v15509_v16 = vld [vmem:[#allocation43_spill] sm:$0xff] }
 0x364   : > { %v15510_v15 = vand.u32 4294901760, %v15509_v16  ;;  %v15530_v16 = vand.u32 4294901760, %v15472_v41  ;;  %v15536_v41 = vand.u32 4294901760, %v15482_v21  ;;  %v15543_v21 = vand.u32 4294901760, %v15489_v45  ;;  %v13556_v45 = vld [vmem:[%s14808_s7 + $0x8] sm:$0xff] }
 0x365   : > { %v5004_v22 = vand.u32 4294901760, %v13556_v45 }
 0x366   : > { %9086 = vmatmul.mubr.f32.vlgmr.msra.gmra.mrb[32].mxu1 %v15495_v10  ;;  %v10109_v29 = vpack.c.bf16 %v15512_v44, %v15510_v15  ;;  %v15517_v10 = vld [vmem:[#allocation14_spill] sm:$0xff]  ;;  %v15539_v15 = vand.u32 4294901760, %v15485_v25  ;;  %v15546_v25 = vand.u32 4294901760, %v13343_v30  ;;  %v13569_v30 = vld [vmem:[%s14808_s7 + $0x18] sm:$0xff] }
 0x367   : > { %10096 = vmatpush3.bf16.msra.mxu1 %v10093_v3  ;;  %9088 = vmatprep.mubr.f32.mxu1 %v15496_v37  ;;  %v15507_v37 = vand.u32 4294901760, %v15459_v28  ;;  %v15514_v3 = vand.u32 4294901760, %v15463_v38  ;;  %v15515_v28 = vld [vmem:[#allocation12_spill] sm:$0xff]  ;;  %v15518_v6 = vand.u32 4294901760, %v15517_v10  ;;  %v15524_v38 = vand.u32 4294901760, %v15523_v49  ;;  %v13580_v44 = vld [vmem:[%s14808_s7 + $0x28] sm:$0xff] }
 0x368   : > { %10098 = vmatprep.subr.bf16.mxu1 %v10097_v0  ;;  %v15516_v46 = vand.u32 4294901760, %v15515_v28  ;;  %v5013_v28 = vand.u32 4294901760, %v13575_v27  ;;  %v13603_v10 = vld [vmem:[%s14808_s7 + $0x30] sm:$0xff] }
 0x36a   : > { %9089 = vmatmul.mubr.f32.gmra.mrb[34].mxu1 %v15501_v62  ;;  %v10113_v62 = vpack.c.bf16 %v15518_v6, %v15516_v46  ;;  %v5016_v46 = vand.u32 4294901760, %v13580_v44  ;;  %v13608_v6 = vld [vmem:[%s14808_s7 + $0x38] sm:$0xff] }
 0x36b   : > { %9091 = vmatprep.mubr.f32.mxu1 %v15502_v33  ;;  %10100 = vmatpush3.bf16.msra.mxu1 %v10097_v0  ;;  %v15513_v0 = vand.u32 4294901760, %v15462_v48  ;;  %v15520_v33 = vand.u32 4294901760, %v15466_v5  ;;  %v15521_v48 = vld [vmem:[#allocation23_spill] sm:$0xff]  ;;  %v15528_v5 = vand.u32 4294901760, %v12759_v51  ;;  %v15534_v51 = vand.u32 4294901760, %v15480_v31 }
 0x36c   : > { %10102 = vmatprep.subr.bf16.mxu1 %v10101_v19  ;;  %v15522_v36 = vand.u32 4294901760, %v15521_v48  ;;  %v15541_v31 = vand.u32 4294901760, %v15487_v2  ;;  %v13633_v48 = vld [vmem:[%s14808_s7 + $0x48] sm:$0xff] }
 0x36d   : > { %v5028_v49 = vand.u32 4294901760, %v13633_v48 }
 0x36e   : > { %9092 = vmatmul.mubr.f32.gmra.mrb[36].mxu1 %v15507_v37  ;;  %v10117_v56 = vpack.c.bf16 %v15524_v38, %v15522_v36 }
 0x36f   : > { %9094 = vmatprep.mubr.f32.mxu1 %v15508_v14  ;;  %10104 = vmatpush3.bf16.msra.mxu1 %v10101_v19  ;;  %v15519_v19 = vand.u32 4294901760, %v15465_v12  ;;  %v15527_v12 = vand.u32 4294901760, %v12757_v11  ;;  %v15529_v14 = vand.u32 4294901760, %v15471_v60  ;;  %v15533_v11 = vand.u32 4294901760, %v15479_v17 }
 0x370   : > { %10106 = vmatprep.subr.bf16.mxu1 %v10105_v47  ;;  %v15535_v60 = vand.u32 4294901760, %v15481_v63  ;;  %v15540_v17 = vand.u32 4294901760, %v15486_v40  ;;  %v15542_v63 = vand.u32 4294901760, %v15488_v26  ;;  %v15547_v40 = vand.u32 4294901760, %v13336_v52  ;;  %v13551_v26 = vld [vmem:[%s14808_s7] sm:$0xff] }
 0x371   : > { %v10121_v37 = vpack.c.bf16 %v15528_v5, %v15527_v12  ;;  %v5001_v52 = vand.u32 4294901760, %v13551_v26  ;;  %v15556_v12 = vld [vmem:[#allocation88_spill] sm:$0xff] }
 0x372   : > { %9095 = vmatmul.mubr.f32.gmra.mrb[38].mxu1 %v15513_v0  ;;  %v15557_v5 = vld [vmem:[#allocation16_spill] sm:$0xff] }
 0x373   : > { %9097 = vmatprep.mubr.f32.mxu1 %v15514_v3  ;;  %10108 = vmatpush3.bf16.msra.mxu1 %v10105_v47  ;;  %v15526_v47 = vand.u32 4294901760, %v15469_v61  ;;  %v15532_v61 = vand.u32 4294901760, %v13162_v55  ;;  %v15538_v55 = vand.u32 4294901760, %v15484_v43  ;;  %v15545_v43 = vand.u32 4294901760, %v13310_v23  ;;  %v13561_v23 = vld [vmem:[%s14808_s7 + $0x10] sm:$0xff] }
 0x374   : > { %10110 = vmatprep.subr.bf16.mxu1 %v10109_v29  ;;  %v5007_v2 = vand.u32 4294901760, %v13561_v23  ;;  %v13587_v0 = vpack.c.bf16 %v5004_v22, %v5001_v52 }
 0x376   : > { %9098 = vmatmul.mubr.f32.gmra.mrb[40].mxu1 %v15519_v19  ;;  %10158 = vmatprep.subr.bf16.mxu0 %v13587_v0  ;;  %v5022_v19 = vand.u32 4294901760, %v13608_v6 }
 0x377   : > { %9100 = vmatprep.mubr.f32.mxu1 %v15520_v33  ;;  %10112 = vmatpush3.bf16.msra.mxu1 %v10109_v29  ;;  %v5010_v29 = vand.u32 4294901760, %v13569_v30  ;;  %v13628_v33 = vld [vmem:[%s14808_s7 + $0x40] sm:$0xff] }
 0x378   : > { %10114 = vmatprep.subr.bf16.mxu1 %v10113_v62  ;;  %10160 = vmatpush3.bf16.msra.mxu0 %v13587_v0  ;;  %v5025_v36 = vand.u32 4294901760, %v13628_v33 }
 0x379   : > { %v13594_v3 = vpack.c.bf16 %v5010_v29, %v5007_v2 }
 0x37a   : > { %9101 = vmatmul.mubr.f32.gmra.mrb[42].mxu1 %v15525_v34  ;;  %v13657_v38 = vpack.c.bf16 %v5028_v49, %v5025_v36  ;;  %v15553_v34 = vld [vmem:[#allocation82_spill] sm:$0xff] }
 0x37b   : > { %9103 = vmatprep.mubr.f32.mxu1 %v15526_v47  ;;  %10116 = vmatpush3.bf16.msra.mxu1 %v10113_v62  ;;  %v5019_v62 = vand.u32 4294901760, %v13603_v10  ;;  %v15555_v47 = vld [vmem:[#allocation79_spill] sm:$0xff] }
 0x37c   : > { %10118 = vmatprep.subr.bf16.mxu1 %v10117_v56  ;;  %10162 = vmatprep.subr.bf16.mxu0 %v13594_v3  ;;  %15550 = vst [vmem:[#allocation70_spill] sm:$0xff] %v13657_v38 }
 0x37d   : > { %10164 = vmatpush3.bf16.msra.mxu0 %v13594_v3 }
 0x37e   : > { %9104 = vmatmul.mubr.f32.gmra.mrb[44].mxu1 %v15529_v14  ;;  %v15560_v14 = vld [vmem:[#allocation91_spill] sm:$0xff] }
 0x37f   : > { %9106 = vmatprep.mubr.f32.mxu1 %v15530_v16  ;;  %10120 = vmatpush3.bf16.msra.mxu1 %v10117_v56  ;;  %v15552_v56 = vld [vmem:[#allocation74_spill] sm:$0xff]  ;;  %v15561_v16 = vld [vmem:[#allocation99_spill] sm:$0xff] }
 0x380   : > { %10122 = vmatprep.subr.bf16.mxu1 %v10121_v37 }
 0x382   : > { %9107 = vmatmul.mubr.f32.gmra.mrb[46].mxu1 %v15531_v1  ;;  %v15562_v1 = vld [vmem:[#allocation97_spill] sm:$0xff] }
 0x383   : > { %9109 = vmatprep.mubr.f32.mxu1 %v15532_v61  ;;  %10124 = vmatpush3.bf16.msra.mxu1 %v10121_v37  ;;  %v15559_v37 = vld [vmem:[#allocation94_spill] sm:$0xff]  ;;  %v15563_v61 = vld [vmem:[#allocation105_spill] sm:$0xff] }
 0x384   : > { %10126 = vmatprep.subr.bf16.mxu1 %v12499_v42 }
 0x386   : > { %9110 = vmatmul.mubr.f32.gmra.mrb[48].mxu1 %v15533_v11  ;;  %v15564_v11 = vld [vmem:[#allocation102_spill] sm:$0xff] }
 0x387   : > { %9112 = vmatprep.mubr.f32.mxu1 %v15534_v51  ;;  %v15565_v51 = vld [vmem:[#allocation111_spill] sm:$0xff] }
 0x38a   : > { %9113 = vmatmul.mubr.f32.gmra.mrb[50].mxu1 %v15535_v60  ;;  %v15566_v60 = vld [vmem:[#allocation108_spill] sm:$0xff] }
 0x38b   : > { %9115 = vmatprep.mubr.f32.mxu1 %v15536_v41  ;;  %v15567_v41 = vld [vmem:[#allocation116_spill] sm:$0xff] }
 0x38e   : > { %9116 = vmatmul.mubr.f32.gmra.mrb[52].mxu1 %v15537_v57  ;;  %v15568_v57 = vld [vmem:[#allocation114_spill] sm:$0xff] }
 0x38f   : > { %9118 = vmatprep.mubr.f32.mxu1 %v15538_v55  ;;  %v15569_v55 = vld [vmem:[#allocation122_spill] sm:$0xff] }
 0x392   : > { %9119 = vmatmul.mubr.f32.gmra.mrb[54].mxu1 %v15539_v15  ;;  %v15570_v15 = vld [vmem:[#allocation121_spill] sm:$0xff] }
 0x393   : > { %9121 = vmatprep.mubr.f32.mxu1 %v15540_v17  ;;  %v15571_v17 = vld [vmem:[#allocation128_spill] sm:$0xff] }
 0x396   : > { %9122 = vmatmul.mubr.f32.gmra.mrb[56].mxu1 %v15541_v31  ;;  %v15572_v31 = vld [vmem:[#allocation127_spill] sm:$0xff] }
 0x397   : > { %9124 = vmatprep.mubr.f32.mxu1 %v15542_v63  ;;  %v15573_v63 = vld [vmem:[#allocation132_spill] sm:$0xff] }
 0x39a   : > { %9125 = vmatmul.mubr.f32.gmra.mrb[58].mxu1 %v15543_v21  ;;  %v15574_v21 = vld [vmem:[#allocation131_spill] sm:$0xff] }
 0x39b   : > { %9127 = vmatprep.mubr.f32.mxu1 %v15544_v58  ;;  %v4992_v58 = vld [vmem:[%s14808_s7 + $0x78] sm:$0xff] }
 0x39e   : > { %9128 = vmatmul.mubr.f32.gmra.mrb[60].mxu1 %v15545_v43 }
 0x39f   : > { %9130 = vmatprep.mubr.f32.mxu1 %v15546_v25  ;;  %v5046_v25 = vand.u32 4294901760, %v4992_v58 }
 0x3a2   : > { %9131 = vmatmul.mubr.f32.gmra.mrb[62].mxu1 %v15547_v40 }
 0x3a3   : > { %9165 = vmatprep.mubr.f32.mxu1 %v12887_v24 }
 0x3a6   : > { %9166 = vmatmul.mubr.f32.vlgmr.msra.gmra.mrb[32].mxu1 %v12881_v32 }
 0x3a7   : > { %10128 = vmatpush3.bf16.msra.mxu1 %v12499_v42  ;;  %9168 = vmatprep.mubr.f32.mxu1 %v12917_v53  ;;  %v13619_v42 = vpack.c.bf16 %v5016_v46, %v5013_v28 }
 0x3a8   : > { %10130 = vmatprep.subr.bf16.mxu1 %v12565_v59 }
 0x3a9   : > { %15548 = vst [vmem:[#allocation6_spill] sm:$0xff] %v13619_v42  ;;  %10166 = vmatprep.subr.bf16.mxu0 %v13619_v42 }
 0x3aa   : > { %9169 = vmatmul.mubr.f32.gmra.mrb[34].mxu1 %v12911_v20  ;;  %10168 = vmatpush3.bf16.msra.mxu0 %v13619_v42 }
 0x3ab   : > { %9171 = vmatprep.mubr.f32.mxu1 %v12954_v18  ;;  %10132 = vmatpush3.bf16.msra.mxu1 %v12565_v59  ;;  %v13643_v59 = vpack.c.bf16 %v5022_v19, %v5019_v62 }
 0x3ac   : > { %10134 = vmatprep.subr.bf16.mxu1 %v15458_v54 }
 0x3ad   : > { %15549 = vst [vmem:[#allocation65_spill] sm:$0xff] %v13643_v59  ;;  %10170 = vmatprep.subr.bf16.mxu0 %v13643_v59 }
 0x3ae   : > { %9172 = vmatmul.mubr.f32.gmra.mrb[36].mxu1 %v12945_v9  ;;  %10172 = vmatpush3.bf16.msra.mxu0 %v13643_v59  ;;  %v15651_v59 = vld [vmem:[#allocation57_spill] sm:$0xff] }
 0x3af   : > { %9174 = vmatprep.mubr.f32.mxu1 %v12986_v50  ;;  %10136 = vmatpush3.bf16.msra.mxu1 %v15458_v54  ;;  %v15551_v54 = vld [vmem:[#allocation9_spill] sm:$0xff] }
 0x3b0   : > { %10138 = vmatprep.subr.bf16.mxu1 %v15461_v8  ;;  %10174 = vmatprep.subr.bf16.mxu0 %v13657_v38 }
 0x3b2   : > { %9175 = vmatmul.mubr.f32.gmra.mrb[38].mxu1 %v12977_v39  ;;  %10176 = vmatpush3.bf16.msra.mxu0 %v13657_v38 }
 0x3b3   : > { %9177 = vmatprep.mubr.f32.mxu1 %v13022_v35  ;;  %10140 = vmatpush3.bf16.msra.mxu1 %v15461_v8  ;;  %v15554_v8 = vld [vmem:[#allocation10_spill] sm:$0xff] }
 0x3b4   : > { %10142 = vmatprep.subr.bf16.mxu1 %v15464_v4 }
 0x3b6   : > { %9178 = vmatmul.mubr.f32.gmra.mrb[40].mxu1 %v13008_v7 }
 0x3b7   : > { %9180 = vmatprep.mubr.f32.mxu1 %v13049_v13  ;;  %10144 = vmatpush3.bf16.msra.mxu1 %v15464_v4  ;;  %v15558_v4 = vld [vmem:[#allocation85_spill] sm:$0xff] }
 0x3b8   : > { %10146 = vmatprep.subr.bf16.mxu1 %v15551_v54 }
 0x3ba   : > { %9181 = vmatmul.mubr.f32.gmra.mrb[42].mxu1 %v15552_v56 }
 0x3bb   : > { %9183 = vmatprep.mubr.f32.mxu1 %v15553_v34  ;;  %10148 = vmatpush3.bf16.msra.mxu1 %v15551_v54  ;;  %v13760_v54 = vsub.f32 %v13551_v26, %v5001_v52 }
 0x3bc   : > { %10150 = vmatprep.subr.bf16.mxu1 %v15554_v8 }
 0x3bd   : > { %15578 = vst [vmem:[#allocation8_spill] sm:$0xff] %v13760_v54 }
 0x3be   : > { %9184 = vmatmul.mubr.f32.gmra.mrb[44].mxu1 %v15555_v47 }
 0x3bf   : > { %9186 = vmatprep.mubr.f32.mxu1 %v15556_v12  ;;  %10152 = vmatpush3.bf16.msra.mxu1 %v15554_v8 }
 0x3c0   : > { %10154 = vmatprep.subr.bf16.mxu1 %v15557_v5 }
 0x3c2   : > { %9187 = vmatmul.mubr.f32.gmra.mrb[46].mxu1 %v15558_v4 }
 0x3c3   : > { %9189 = vmatprep.mubr.f32.mxu1 %v15559_v37  ;;  %10156 = vmatpush3.bf16.msra.mxu1 %v15557_v5 }
 0x3c6   : > { %9190 = vmatmul.mubr.f32.gmra.mrb[48].mxu1 %v15560_v14 }
 0x3c7   : > { %9192 = vmatprep.mubr.f32.mxu1 %v15561_v16 }
 0x3ca   : > { %9193 = vmatmul.mubr.f32.gmra.mrb[50].mxu1 %v15562_v1 }
 0x3cb   : > { %9195 = vmatprep.mubr.f32.mxu1 %v15563_v61 }
 0x3ce   : > { %9196 = vmatmul.mubr.f32.gmra.mrb[52].mxu1 %v15564_v11 }
 0x3cf   : > { %9198 = vmatprep.mubr.f32.mxu1 %v15565_v51 }
 0x3d2   : > { %9199 = vmatmul.mubr.f32.gmra.mrb[54].mxu1 %v15566_v60 }
 0x3d3   : > { %9201 = vmatprep.mubr.f32.mxu1 %v15567_v41 }
 0x3d6   : > { %9202 = vmatmul.mubr.f32.gmra.mrb[56].mxu1 %v15568_v57 }
 0x3d7   : > { %9204 = vmatprep.mubr.f32.mxu1 %v15569_v55 }
 0x3da   : > { %9205 = vmatmul.mubr.f32.gmra.mrb[58].mxu1 %v15570_v15 }
 0x3db   : > { %9207 = vmatprep.mubr.f32.mxu1 %v15571_v17 }
 0x3de   : > { %9208 = vmatmul.mubr.f32.gmra.mrb[60].mxu1 %v15572_v31 }
 0x3df   : > { %9210 = vmatprep.mubr.f32.mxu1 %v15573_v63 }
 0x3e2   : > { %9211 = vmatmul.mubr.f32.gmra.mrb[62].mxu1 %v15574_v21 }
 0x3e3   : > { %9245 = vmatprep.mubr.f32.mxu1 %v12887_v24  ;;  %v4988_v24 = vld [vmem:[%s14808_s7 + $0x58] sm:$0xff] }
 0x3e6   : > { %9246 = vmatmul.mubr.f32.vlgmr.msra.gmra.mrb[32].mxu1 %v12881_v32  ;;  %v4987_v32 = vld [vmem:[%s14808_s7 + $0x50] sm:$0xff] }
 0x3e7   : > { %9248 = vmatprep.mubr.f32.mxu1 %v12917_v53  ;;  %v5034_v53 = vand.u32 4294901760, %v4988_v24 }
 0x3ea   : > { %9249 = vmatmul.mubr.f32.gmra.mrb[34].mxu1 %v12911_v20  ;;  %v5031_v20 = vand.u32 4294901760, %v4987_v32 }
 0x3eb   : > { %9251 = vmatprep.mubr.f32.mxu1 %v12954_v18  ;;  %v4989_v18 = vld [vmem:[%s14808_s7 + $0x60] sm:$0xff] }
 0x3ee   : > { %9252 = vmatmul.mubr.f32.gmra.mrb[36].mxu1 %v12945_v9  ;;  %v13733_v9 = vpack.c.bf16 %v5034_v53, %v5031_v20 }
 0x3ef   : > { %9254 = vmatprep.mubr.f32.mxu1 %v12986_v50  ;;  %v5037_v50 = vand.u32 4294901760, %v4989_v18 }
 0x3f0   : > { %15575 = vst [vmem:[#allocation7_spill] sm:$0xff] %v13733_v9  ;;  %10178 = vmatprep.subr.bf16.mxu0 %v13733_v9 }
 0x3f1   : > { %10180 = vmatpush3.bf16.msra.mxu0 %v13733_v9 }
 0x3f2   : > { %9255 = vmatmul.mubr.f32.gmra.mrb[38].mxu1 %v12977_v39  ;;  %v4990_v39 = vld [vmem:[%s14808_s7 + $0x68] sm:$0xff] }
 0x3f3   : > { %9257 = vmatprep.mubr.f32.mxu1 %v13022_v35 }
 0x3f6   : > { %9258 = vmatmul.mubr.f32.gmra.mrb[40].mxu1 %v13008_v7  ;;  %v5040_v7 = vand.u32 4294901760, %v4990_v39 }
 0x3f7   : > { %9260 = vmatprep.mubr.f32.mxu1 %v13049_v13  ;;  %v4991_v13 = vld [vmem:[%s14808_s7 + $0x70] sm:$0xff] }
 0x3f8   : > { %v13743_v35 = vpack.c.bf16 %v5040_v7, %v5037_v50  ;;  %v5043_v43 = vand.u32 4294901760, %v4991_v13 }
 0x3fa   : > { %9261 = vmatmul.mubr.f32.gmra.mrb[42].mxu1 %v15552_v56  ;;  %15576 = vst [vmem:[#allocation68_spill] sm:$0xff] %v13743_v35  ;;  %10182 = vmatprep.subr.bf16.mxu0 %v13743_v35  ;;  %v13753_v40 = vpack.c.bf16 %v5046_v25, %v5043_v43  ;;  %v13765_v56 = vsub.f32 %v13556_v45, %v5004_v22 }
 0x3fb   : > { %9263 = vmatprep.mubr.f32.mxu1 %v15553_v34  ;;  %10184 = vmatpush3.bf16.msra.mxu0 %v13743_v35  ;;  %v15094_v34 = vand.u32 4294901760, %v13760_v54  ;;  %v13778_v45 = vsub.f32 %v4987_v32, %v5031_v20  ;;  %v13780_v22 = vsub.f32 %v4988_v24, %v5034_v53  ;;  %v13817_v20 = vsub.f32 %v13561_v23, %v5007_v2 }
 0x3fc   : > { %15577 = vst [vmem:[#allocation75_spill] sm:$0xff] %v13753_v40  ;;  %10186 = vmatprep.subr.bf16.mxu0 %v13753_v40  ;;  %15579 = vst [vmem:[#allocation72_spill] sm:$0xff] %v13765_v56  ;;  %v15092_v8 = vand.u32 4294901760, %v13765_v56  ;;  %v13812_v24 = vpack.c.bf16 %v13765_v56, %v13760_v54  ;;  %v13822_v53 = vsub.f32 %v13569_v30, %v5010_v29 }
 0x3fd   : > { %15580 = vst [vmem:[#allocation80_spill] sm:$0xff] %v13778_v45  ;;  %15581 = vst [vmem:[#allocation77_spill] sm:$0xff] %v13780_v22  ;;  %v13845_v30 = vsub.f32 %v13603_v10, %v5019_v62  ;;  %v13850_v2 = vsub.f32 %v13608_v6, %v5022_v19  ;;  %v13864_v29 = vsub.f32 %v13633_v48, %v5028_v49  ;;  %v15091_v10 = vand.u32 4294901760, %v13817_v20 }
 0x3fe   : > { %9264 = vmatmul.mubr.f32.gmra.mrb[44].mxu1 %v15555_v47  ;;  %v5405_v47 = vsub.f32 %v13760_v54, %v15094_v34  ;;  %15584 = vst [vmem:[#allocation92_spill] sm:$0xff] %v13817_v20  ;;  %15585 = vst [vmem:[#allocation19_spill] sm:$0xff] %v13822_v53  ;;  %v15090_v62 = vand.u32 4294901760, %v13822_v53  ;;  %v13880_v48 = vpack.c.bf16 %v13780_v22, %v13778_v45 }
 0x3ff   : > { %9266 = vmatprep.mubr.f32.mxu1 %v15556_v12  ;;  %10188 = vmatpush3.bf16.msra.mxu0 %v13753_v40  ;;  %v5412_v12 = vsub.f32 %v13765_v56, %v15092_v8  ;;  %15588 = vst [vmem:[#allocation96_spill] sm:$0xff] %v13845_v30  ;;  %15589 = vst [vmem:[#allocation103_spill] sm:$0xff] %v13850_v2  ;;  %v5419_v49 = vsub.f32 %v13817_v20, %v15091_v10 }
 0x400   : > { %v5406_v5 = vand.u32 4294901760, %v5405_v47  ;;  %15591 = vst [vmem:[#allocation109_spill] sm:$0xff] %v13864_v29 }
 0x401   : > { %v5413_v26 = vand.u32 4294901760, %v5412_v12 }
 0x402   : > { %9267 = vmatmul.mubr.f32.gmra.mrb[46].mxu1 %v15558_v4  ;;  %v15082_v4 = vand.u32 4294901760, %v13778_v45 }
 0x403   : > { %9269 = vmatprep.mubr.f32.mxu1 %v15559_v37  ;;  %v13775_v52 = vpack.c.bf16 %v5413_v26, %v5406_v5  ;;  %v15081_v37 = vand.u32 4294901760, %v13780_v22  ;;  %v5420_v5 = vand.u32 4294901760, %v5419_v49  ;;  %v15086_v26 = vand.u32 4294901760, %v13845_v30 }
 0x405   : > { %10190 = vmatprep.subr.bf16.mxu0 %v13775_v52 }
 0x406   : > { %9270 = vmatmul.mubr.f32.gmra.mrb[48].mxu1 %v15560_v14  ;;  %v5475_v14 = vsub.f32 %v13778_v45, %v15082_v4  ;;  %v15592_v4 = vld [vmem:[#allocation17_spill] sm:$0xff]  ;;  %v15602_v45 = vld [vmem:[#allocation24_spill] sm:$0xff] }
 0x407   : > { %9272 = vmatprep.mubr.f32.mxu1 %v15561_v16  ;;  %v5482_v16 = vsub.f32 %v13780_v22, %v15081_v37 }
 0x40a   : > { %9273 = vmatmul.mubr.f32.gmra.mrb[50].mxu1 %v15562_v1  ;;  %v5476_v1 = vand.u32 4294901760, %v5475_v14  ;;  %v15084_v14 = vand.u32 4294901760, %v13850_v2 }
 0x40b   : > { %9275 = vmatprep.mubr.f32.mxu1 %v15563_v61  ;;  %v5483_v61 = vand.u32 4294901760, %v5482_v16 }
 0x40e   : > { %9276 = vmatmul.mubr.f32.gmra.mrb[52].mxu1 %v15564_v11  ;;  %v13790_v11 = vsub.f32 %v4989_v18, %v5037_v50  ;;  %v13826_v18 = vpack.c.bf16 %v13822_v53, %v13817_v20  ;;  %v13836_v50 = vsub.f32 %v13580_v44, %v5016_v46  ;;  %v13859_v44 = vsub.f32 %v13628_v33, %v5025_v36  ;;  %v13873_v46 = vld [vmem:[%s14807_s6] ss:$0 sm:$0xff] }
 0x40f   : > { %9278 = vmatprep.mubr.f32.mxu1 %v15565_v51  ;;  %v13792_v51 = vsub.f32 %v4990_v39, %v5040_v7  ;;  %v13831_v39 = vsub.f32 %v13575_v27, %v5013_v28  ;;  %v13854_v27 = vpack.c.bf16 %v13850_v2, %v13845_v30 }
 0x410   : > { %15582 = vst [vmem:[#allocation86_spill] sm:$0xff] %v13790_v11  ;;  %15587 = vst [vmem:[#allocation90_spill] sm:$0xff] %v13836_v50  ;;  %v13868_v28 = vpack.c.bf16 %v13864_v29, %v13859_v44  ;;  %v15087_v12 = vand.u32 4294901760, %v13836_v50 }
 0x411   : > { %15583 = vst [vmem:[#allocation84_spill] sm:$0xff] %v13792_v51  ;;  %15586 = vst [vmem:[#allocation21_spill] sm:$0xff] %v13831_v39  ;;  %v13840_v23 = vpack.c.bf16 %v13836_v50, %v13831_v39  ;;  %v15088_v47 = vand.u32 4294901760, %v13831_v39 }
 0x412   : > { %9279 = vmatmul.mubr.f32.gmra.mrb[54].mxu1 %v15566_v60  ;;  %v13794_v60 = vpack.c.bf16 %v5483_v61, %v5476_v1  ;;  %15590 = vst [vmem:[#allocation101_spill] sm:$0xff] %v13859_v44  ;;  %v15083_v61 = vand.u32 4294901760, %v13859_v44  ;;  %v5440_v49 = vsub.f32 %v13836_v50, %v15087_v12 }
 0x413   : > { %9281 = vmatprep.mubr.f32.mxu1 %v15567_v41  ;;  %v15080_v41 = vand.u32 4294901760, %v13790_v11 }
 0x416   : > { %9282 = vmatmul.mubr.f32.gmra.mrb[56].mxu1 %v15568_v57  ;;  %v15079_v57 = vand.u32 4294901760, %v13792_v51 }
 0x417   : > { %9284 = vmatprep.mubr.f32.mxu1 %v15569_v55  ;;  %v5489_v55 = vsub.f32 %v13790_v11, %v15080_v41 }
 0x41a   : > { %9285 = vmatmul.mubr.f32.gmra.mrb[58].mxu1 %v15570_v15  ;;  %v5496_v15 = vsub.f32 %v13792_v51, %v15079_v57 }
 0x41b   : > { %9287 = vmatprep.mubr.f32.mxu1 %v15571_v17  ;;  %v13804_v17 = vsub.f32 %v4991_v13, %v5043_v43  ;;  %v5426_v13 = vsub.f32 %v13822_v53, %v15090_v62 }
 0x41d   : > { %v5427_v1 = vand.u32 4294901760, %v5426_v13  ;;  %v5454_v13 = vsub.f32 %v13850_v2, %v15084_v14 }
 0x41e   : > { %9288 = vmatmul.mubr.f32.gmra.mrb[60].mxu1 %v15572_v31  ;;  %v13806_v31 = vsub.f32 %v4992_v58, %v5046_v25 }
 0x41f   : > { %9290 = vmatprep.mubr.f32.mxu1 %v15573_v63  ;;  %v5490_v63 = vand.u32 4294901760, %v5489_v55  ;;  %v15085_v55 = vand.u32 4294901760, %v13864_v29  ;;  %v13924_v57 = vpack.c.bf16 %v5427_v1, %v5420_v5  ;;  %v5455_v1 = vand.u32 4294901760, %v5454_v13 }
 0x422   : > { %9291 = vmatmul.mubr.f32.gmra.mrb[62].mxu1 %v15574_v21  ;;  %v5497_v21 = vand.u32 4294901760, %v5496_v15 }
 0x424   : > { %v13808_v32 = vpack.c.bf16 %v5497_v21, %v5490_v63  ;;  %v15089_v21 = vand.u32 4294901760, %v13804_v17 }
 0x426   : > { %v5503_v41 = vsub.f32 %v13804_v17, %v15089_v21 }
 0x4b9   : > { %v9247_v6 = vpop.f32.mrb[32].mxu1 }
 0x4ba   : > { %v10413_v19 = vadd.f32 %v9247_v6, %v13873_v46  ;;  %v4723_v33 = vpop.f32.mrb[33].mxu1  ;;  %v15093_v6 = vand.u32 4294901760, %v13806_v31 }
 0x4bb   : > { %v10414_v36 = vadd.f32 %v13873_v46, %v4723_v33 }
 0x4bc   : > { %11132 = vtanh.f32 %v10413_v19  ;;  %v13902_v19 = vpack.c.bf16 %v13792_v51, %v13790_v11 }
 0x4bd   : > { %11134 = vtanh.f32 %v10414_v36  ;;  %v9250_v7 = vpop.f32.mrb[34].mxu1  ;;  %v5433_v36 = vsub.f32 %v13831_v39, %v15088_v47 }
 0x4be   : > { %v10415_v58 = vadd.f32 %v9250_v7, %v13873_v46  ;;  %v4735_v43 = vpop.f32.mrb[35].mxu1  ;;  %v5447_v7 = vsub.f32 %v13845_v30, %v15086_v26  ;;  %v5441_v26 = vand.u32 4294901760, %v5440_v49 }
 0x4bf   : > { %v10416_v25 = vadd.f32 %v13873_v46, %v4735_v43  ;;  %v5461_v43 = vsub.f32 %v13859_v44, %v15083_v61 }
 0x4c0   : > { %11136 = vtanh.f32 %v10415_v58  ;;  %v5448_v5 = vand.u32 4294901760, %v5447_v7  ;;  %v15594_v7 = vld [vmem:[#allocation11_spill] sm:$0xff] }
 0x4c1   : > { %11138 = vtanh.f32 %v10416_v25  ;;  %v9253_v16 = vpop.f32.mrb[36].mxu1  ;;  %v5468_v25 = vsub.f32 %v13864_v29, %v15085_v55  ;;  %v5434_v55 = vand.u32 4294901760, %v5433_v36  ;;  %v5462_v62 = vand.u32 4294901760, %v5461_v43 }
 0x4c2   : > { %v10417_v15 = vadd.f32 %v9253_v16, %v13873_v46  ;;  %v4747_v63 = vpop.f32.mrb[37].mxu1 }
 0x4c3   : > { %v10418_v33 = vadd.f32 %v13873_v46, %v4747_v63  ;;  %v5469_v10 = vand.u32 4294901760, %v5468_v25 }
 0x4c4   : > { %11140 = vtanh.f32 %v10417_v15 }
 0x4c5   : > { %11142 = vtanh.f32 %v10418_v33  ;;  %v9256_v58 = vpop.f32.mrb[38].mxu1  ;;  %v5510_v33 = vsub.f32 %v13806_v31, %v15093_v6 }
 0x4c6   : > { %v11133_v16 = vpop.eup %11132  ;;  %v10419_v15 = vadd.f32 %v9256_v58, %v13873_v46  ;;  %v4759_v63 = vpop.f32.mrb[39].mxu1  ;;  %v15593_v58 = vld [vmem:[#allocation15_spill] sm:$0xff] }
 0x4c7   : > { %v11135_v37 = vpop.eup %11134  ;;  %v4946_v61 = vadd.f32 %v11133_v16, %v15592_v4  ;;  %v10420_v14 = vadd.f32 %v13873_v46, %v4759_v63  ;;  %v5504_v16 = vand.u32 4294901760, %v5503_v41  ;;  %v5511_v36 = vand.u32 4294901760, %v5510_v33 }
 0x4c8   : > { %11144 = vtanh.f32 %v10419_v15  ;;  %v4945_v12 = vadd.f32 %v11135_v37, %v15593_v58  ;;  %v13951_v63 = vpack.c.bf16 %v5455_v1, %v5448_v5  ;;  %v13956_v58 = vpack.c.bf16 %v5469_v10, %v5462_v62  ;;  %v15597_v62 = vld [vmem:[#allocation22_spill] sm:$0xff] }
 0x4c9   : > { %v13935_v47 = vand.u32 4294901760, %v4946_v61  ;;  %11146 = vtanh.f32 %v10420_v14  ;;  %v9259_v21 = vpop.f32.mrb[40].mxu1  ;;  %v13945_v14 = vpack.c.bf16 %v5441_v26, %v5434_v55 }
 0x4ca   : > { %v11137_v8 = vpop.eup %11136  ;;  %v10421_v6 = vadd.f32 %v9259_v21, %v13873_v46  ;;  %v4771_v34 = vpop.f32.mrb[41].mxu1  ;;  %v13938_v4 = vand.u32 4294901760, %v4945_v12  ;;  %v15595_v21 = vld [vmem:[#allocation20_spill] sm:$0xff] }
 0x4cb   : > { %v11139_v49 = vpop.eup %11138  ;;  %v13941_v15 = vsub.f32 %v4946_v61, %v13935_v47  ;;  %v10422_v37 = vadd.f32 %v13873_v46, %v4771_v34  ;;  %v4948_v13 = vadd.f32 %v11137_v8, %v15594_v7 }
 0x4cc   : > { %11148 = vtanh.f32 %v10421_v6  ;;  %v13948_v43 = vsub.f32 %v4945_v12, %v13938_v4  ;;  %v4947_v25 = vadd.f32 %v11139_v49, %v15595_v21  ;;  %v13962_v6 = vpack.c.bf16 %v5511_v36, %v5504_v16  ;;  %v15598_v36 = vld [vmem:[#allocation13_spill] sm:$0xff] }
 0x4cd   : > { %11150 = vtanh.f32 %v10422_v37  ;;  %v9262_v41 = vpop.f32.mrb[42].mxu1  ;;  %v15095_v33 = vand.u32 4294901760, %v13941_v15  ;;  %v13954_v61 = vand.u32 4294901760, %v4948_v13 }
 0x4ce   : > { %v11141_v34 = vpop.eup %11140  ;;  %v10423_v8 = vadd.f32 %v9262_v41, %v13873_v46  ;;  %v4783_v26 = vpop.f32.mrb[43].mxu1  ;;  %v15098_v55 = vand.u32 4294901760, %v13948_v43  ;;  %v13960_v12 = vand.u32 4294901760, %v4947_v25 }
 0x4cf   : > { %v11143_v5 = vpop.eup %11142  ;;  %v10424_v1 = vadd.f32 %v13873_v46, %v4783_v26  ;;  %v5094_v49 = vsub.f32 %v13941_v15, %v15095_v33  ;;  %v13969_v10 = vsub.f32 %v4948_v13, %v13954_v61  ;;  %v4950_v37 = vadd.f32 %v11141_v34, %v15597_v62 }
 0x4d0   : > { %11152 = vtanh.f32 %v10423_v8  ;;  %v5084_v7 = vsub.f32 %v13948_v43, %v15098_v55  ;;  %v13976_v16 = vsub.f32 %v4947_v25, %v13960_v12  ;;  %v4949_v21 = vadd.f32 %v11143_v5, %v15598_v36 }
 0x4d1   : > { %15596 = vst [vmem:[#allocation107_spill] sm:$0xff] %v13969_v10  ;;  %11154 = vtanh.f32 %v10424_v1  ;;  %v9265_v41 = vpop.f32.mrb[44].mxu1  ;;  %v5095_v26 = vand.u32 4294901760, %v5094_v49  ;;  %v15102_v33 = vand.u32 4294901760, %v13969_v10  ;;  %v13980_v51 = vand.u32 4294901760, %v4950_v37  ;;  %v15600_v49 = vld [vmem:[#allocation18_spill] sm:$0xff] }
 0x4d2   : > { %v11145_v13 = vpop.eup %11144  ;;  %v10425_v34 = vadd.f32 %v9265_v41, %v13873_v46  ;;  %v4795_v8 = vpop.f32.mrb[45].mxu1  ;;  %v5085_v62 = vand.u32 4294901760, %v5084_v7  ;;  %v15104_v11 = vand.u32 4294901760, %v13976_v16  ;;  %v13984_v55 = vand.u32 4294901760, %v4949_v21 }
 0x4d3   : > { %v11147_v25 = vpop.eup %11146  ;;  %v10426_v22 = vadd.f32 %v13873_v46, %v4795_v8  ;;  %v5114_v5 = vsub.f32 %v13969_v10, %v15102_v33  ;;  %v13991_v1 = vsub.f32 %v4950_v37, %v13980_v51  ;;  %v4952_v36 = vadd.f32 %v11145_v13, %v15600_v49 }
 0x4d4   : > { %11156 = vtanh.f32 %v10425_v34  ;;  %9325 = vmatprep.mubr.f32.mxu0 %v5085_v62  ;;  %v5104_v7 = vsub.f32 %v13976_v16, %v15104_v11  ;;  %v13998_v41 = vsub.f32 %v4949_v21, %v13984_v55  ;;  %v4951_v8 = vadd.f32 %v11147_v25, %v15602_v45 }
 0x4d5   : > { %15599 = vst [vmem:[#allocation115_spill] sm:$0xff] %v13991_v1  ;;  %11158 = vtanh.f32 %v10426_v22  ;;  %v9268_v29 = vpop.f32.mrb[46].mxu1  ;;  %9326 = vmatmul.mubr.f32.vlgmr.msra.gmra.mrb[32].mxu0 %v5095_v26  ;;  %v5115_v33 = vand.u32 4294901760, %v5114_v5  ;;  %v15107_v37 = vand.u32 4294901760, %v13991_v1  ;;  %v14002_v44 = vand.u32 4294901760, %v4952_v36 }
 0x4d6   : > { %15601 = vst [vmem:[#allocation113_spill] sm:$0xff] %v13998_v41  ;;  %v11149_v13 = vpop.eup %11148  ;;  %v10427_v34 = vadd.f32 %v9268_v29, %v13873_v46  ;;  %10192 = vmatpush3.bf16.msra.mxu0 %v13775_v52  ;;  %v4807_v62 = vpop.f32.mrb[47].mxu1  ;;  %v5105_v49 = vand.u32 4294901760, %v5104_v7  ;;  %v15109_v21 = vand.u32 4294901760, %v13998_v41  ;;  %v14007_v11 = vand.u32 4294901760, %v4951_v8  ;;  %v15604_v29 = vld [vmem:[#allocation27_spill] sm:$0xff] }
 0x4d7   : > { %v11151_v45 = vpop.eup %11150  ;;  %v10428_v22 = vadd.f32 %v13873_v46, %v4807_v62  ;;  %10194 = vmatprep.subr.bf16.mxu0 %v13924_v57  ;;  %v5134_v26 = vsub.f32 %v13991_v1, %v15107_v37  ;;  %v14015_v25 = vsub.f32 %v4952_v36, %v14002_v44  ;;  %v4954_v52 = vadd.f32 %v11149_v13, %v15604_v29  ;;  %v15606_v62 = vld [vmem:[#allocation25_spill] sm:$0xff] }
 0x4d8   : > { %11160 = vtanh.f32 %v10427_v34  ;;  %9328 = vmatprep.mubr.f32.mxu0 %v5105_v49  ;;  %v5124_v5 = vsub.f32 %v13998_v41, %v15109_v21  ;;  %v14022_v7 = vsub.f32 %v4951_v8, %v14007_v11  ;;  %v4953_v2 = vadd.f32 %v11151_v45, %v15606_v62 }
 0x4d9   : > { %15603 = vst [vmem:[#allocation119_spill] sm:$0xff] %v14015_v25  ;;  %11162 = vtanh.f32 %v10428_v22  ;;  %v9271_v30 = vpop.f32.mrb[48].mxu1  ;;  %9329 = vmatmul.mubr.f32.gmra.mrb[34].mxu0 %v5115_v33  ;;  %v5135_v37 = vand.u32 4294901760, %v5134_v26  ;;  %v15111_v36 = vand.u32 4294901760, %v14015_v25  ;;  %v14026_v50 = vand.u32 4294901760, %v4954_v52 }
 0x4da   : > { %15605 = vst [vmem:[#allocation117_spill] sm:$0xff] %v14022_v7  ;;  %v11153_v13 = vpop.eup %11152  ;;  %v10429_v34 = vadd.f32 %v9271_v30, %v13873_v46  ;;  %v4819_v49 = vpop.f32.mrb[49].mxu1  ;;  %v5125_v29 = vand.u32 4294901760, %v5124_v5  ;;  %10196 = vmatpush3.bf16.msra.mxu0 %v13924_v57  ;;  %v15114_v8 = vand.u32 4294901760, %v14022_v7  ;;  %v14031_v21 = vand.u32 4294901760, %v4953_v2  ;;  %v15608_v30 = vld [vmem:[#allocation30_spill] sm:$0xff] }
 0x4db   : > { %v11155_v45 = vpop.eup %11154  ;;  %v10430_v22 = vadd.f32 %v13873_v46, %v4819_v49  ;;  %v5154_v33 = vsub.f32 %v14015_v25, %v15111_v36  ;;  %10198 = vmatprep.subr.bf16.mxu0 %v13945_v14  ;;  %v14039_v26 = vsub.f32 %v4954_v52, %v14026_v50  ;;  %v4956_v5 = vadd.f32 %v11153_v13, %v15608_v30  ;;  %v15610_v49 = vld [vmem:[#allocation28_spill] sm:$0xff] }
 0x4dc   : > { %11164 = vtanh.f32 %v10429_v34  ;;  %9331 = vmatprep.mubr.f32.mxu0 %v5125_v29  ;;  %v5144_v57 = vsub.f32 %v14022_v7, %v15114_v8  ;;  %v14046_v62 = vsub.f32 %v4953_v2, %v14031_v21  ;;  %v4955_v39 = vadd.f32 %v11155_v45, %v15610_v49 }
 0x4dd   : > { %15607 = vst [vmem:[#allocation125_spill] sm:$0xff] %v14039_v26  ;;  %11166 = vtanh.f32 %v10430_v22  ;;  %v9274_v36 = vpop.f32.mrb[50].mxu1  ;;  %9332 = vmatmul.mubr.f32.gmra.mrb[36].mxu0 %v5135_v37  ;;  %v5155_v53 = vand.u32 4294901760, %v5154_v33  ;;  %v15116_v52 = vand.u32 4294901760, %v14039_v26  ;;  %v14050_v20 = vand.u32 4294901760, %v4956_v5 }
 0x4de   : > { %15609 = vst [vmem:[#allocation123_spill] sm:$0xff] %v14046_v62  ;;  %v11157_v13 = vpop.eup %11156  ;;  %v10431_v34 = vadd.f32 %v9274_v36, %v13873_v46  ;;  %v4831_v29 = vpop.f32.mrb[51].mxu1  ;;  %v5145_v30 = vand.u32 4294901760, %v5144_v57  ;;  %v15120_v8 = vand.u32 4294901760, %v14046_v62  ;;  %10200 = vmatpush3.bf16.msra.mxu0 %v13945_v14  ;;  %v14055_v2 = vand.u32 4294901760, %v4955_v39  ;;  %v15613_v36 = vld [vmem:[#allocation36_spill] sm:$0xff] }
 0x4df   : > { %15611 = vst [vmem:[#allocation29_spill] sm:$0xff] %v14050_v20  ;;  %v11159_v45 = vpop.eup %11158  ;;  %v10432_v22 = vadd.f32 %v13873_v46, %v4831_v29  ;;  %v5174_v37 = vsub.f32 %v14039_v26, %v15116_v52  ;;  %v14062_v33 = vsub.f32 %v4956_v5, %v14050_v20  ;;  %10202 = vmatprep.subr.bf16.mxu0 %v13951_v63  ;;  %v15615_v29 = vld [vmem:[#allocation33_spill] sm:$0xff] }
 0x4e0   : > { %v4958_v57 = vadd.f32 %v11157_v13, %v15613_v36  ;;  %11168 = vtanh.f32 %v10431_v34  ;;  %9334 = vmatprep.mubr.f32.mxu0 %v5145_v30  ;;  %v5164_v14 = vsub.f32 %v14046_v62, %v15120_v8  ;;  %v14070_v49 = vsub.f32 %v4955_v39, %v14055_v2 }
 0x4e1   : > { %15612 = vst [vmem:[#allocation32_spill] sm:$0xff] %v14062_v33  ;;  %v4957_v56 = vadd.f32 %v11159_v45, %v15615_v29  ;;  %11170 = vtanh.f32 %v10432_v22  ;;  %v9277_v52 = vpop.f32.mrb[52].mxu1  ;;  %9335 = vmatmul.mubr.f32.gmra.mrb[38].mxu0 %v5155_v53  ;;  %v5175_v5 = vand.u32 4294901760, %v5174_v37  ;;  %v15123_v54 = vand.u32 4294901760, %v14062_v33  ;;  %v15619_v37 = vld [vmem:[#allocation38_spill] sm:$0xff]  ;;  %v15621_v29 = vld [vmem:[#allocation31_spill] sm:$0xff] }
 0x4e2   : > { %15614 = vst [vmem:[#allocation35_spill] sm:$0xff] %v14070_v49  ;;  %v14074_v40 = vand.u32 4294901760, %v4958_v57  ;;  %v11161_v13 = vpop.eup %11160  ;;  %v10433_v34 = vadd.f32 %v9277_v52, %v13873_v46  ;;  %v4843_v30 = vpop.f32.mrb[53].mxu1  ;;  %v5165_v36 = vand.u32 4294901760, %v5164_v14  ;;  %v15128_v8 = vand.u32 4294901760, %v14070_v49  ;;  %10204 = vmatpush3.bf16.msra.mxu0 %v13951_v63 }
 0x4e3   : > { %v14078_v35 = vand.u32 4294901760, %v4957_v56  ;;  %v11163_v39 = vpop.eup %11162  ;;  %v10434_v45 = vadd.f32 %v13873_v46, %v4843_v30  ;;  %v5194_v53 = vsub.f32 %v14062_v33, %v15123_v54  ;;  %v4960_v52 = vadd.f32 %v11161_v13, %v15619_v37  ;;  %10206 = vmatprep.subr.bf16.mxu0 %v13956_v58 }
 0x4e4   : > { %15616 = vst [vmem:[#allocation37_spill] sm:$0xff] %v14074_v40  ;;  %v14086_v22 = vsub.f32 %v4958_v57, %v14074_v40  ;;  %11172 = vtanh.f32 %v10433_v34  ;;  %9337 = vmatprep.mubr.f32.mxu0 %v5165_v36  ;;  %v5184_v63 = vsub.f32 %v14070_v49, %v15128_v8  ;;  %v4959_v30 = vadd.f32 %v11163_v39, %v15621_v29  ;;  %v15627_v29 = vld [vmem:[#allocation41_spill] sm:$0xff] }
 0x4e5   : > { %15617 = vst [vmem:[#allocation34_spill] sm:$0xff] %v14078_v35  ;;  %v14094_v14 = vsub.f32 %v4957_v56, %v14078_v35  ;;  %11174 = vtanh.f32 %v10434_v45  ;;  %v9280_v54 = vpop.f32.mrb[54].mxu1  ;;  %9338 = vmatmul.mubr.f32.gmra.mrb[40].mxu0 %v5175_v5  ;;  %v5195_v57 = vand.u32 4294901760, %v5194_v53  ;;  %v14098_v13 = vand.u32 4294901760, %v4960_v52  ;;  %v15625_v53 = vld [vmem:[#allocation44_spill] sm:$0xff] }
 0x4e6   : > { %15618 = vst [vmem:[#allocation39_spill] sm:$0xff] %v14086_v22  ;;  %v15131_v33 = vand.u32 4294901760, %v14086_v22  ;;  %v11165_v37 = vpop.eup %11164  ;;  %v10435_v34 = vadd.f32 %v9280_v54, %v13873_v46  ;;  %v4855_v36 = vpop.f32.mrb[55].mxu1  ;;  %v5185_v9 = vand.u32 4294901760, %v5184_v63  ;;  %v14102_v49 = vand.u32 4294901760, %v4959_v30  ;;  %10208 = vmatpush3.bf16.msra.mxu0 %v13956_v58 }
 0x4e7   : > { %15620 = vst [vmem:[#allocation43_spill] sm:$0xff] %v14094_v14  ;;  %15622 = vst [vmem:[#allocation45_spill] sm:$0xff] %v14098_v13  ;;  %v15136_v8 = vand.u32 4294901760, %v14094_v14  ;;  %v11167_v56 = vpop.eup %11166  ;;  %v10436_v39 = vadd.f32 %v13873_v46, %v4855_v36  ;;  %v14110_v45 = vsub.f32 %v4960_v52, %v14098_v13  ;;  %v4962_v54 = vadd.f32 %v11165_v37, %v15625_v53 }
 0x4e8   : > { %15623 = vst [vmem:[#allocation12_spill] sm:$0xff] %v14102_v49  ;;  %v5214_v5 = vsub.f32 %v14086_v22, %v15131_v33  ;;  %10210 = vmatprep.subr.bf16.mxu0 %v13794_v60  ;;  %11176 = vtanh.f32 %v10435_v34  ;;  %9340 = vmatprep.mubr.f32.mxu0 %v5185_v9  ;;  %v14118_v63 = vsub.f32 %v4959_v30, %v14102_v49 }
 0x4e9   : > { %15624 = vst [vmem:[#allocation14_spill] sm:$0xff] %v14110_v45  ;;  %v5204_v58 = vsub.f32 %v14094_v14, %v15136_v8  ;;  %v4961_v36 = vadd.f32 %v11167_v56, %v15627_v29  ;;  %11178 = vtanh.f32 %v10436_v39  ;;  %v9283_v33 = vpop.f32.mrb[56].mxu1  ;;  %9341 = vmatmul.mubr.f32.gmra.mrb[42].mxu0 %v5195_v57  ;;  %v15139_v22 = vand.u32 4294901760, %v14110_v45  ;;  %v15633_v29 = vld [vmem:[#allocation40_spill] sm:$0xff] }
 0x4ea   : > { %15626 = vst [vmem:[#allocation23_spill] sm:$0xff] %v14118_v63  ;;  %v5215_v52 = vand.u32 4294901760, %v5214_v5  ;;  %v14122_v37 = vand.u32 4294901760, %v4962_v54  ;;  %v11169_v53 = vpop.eup %11168  ;;  %v10437_v9 = vadd.f32 %v9283_v33, %v13873_v46  ;;  %v4867_v34 = vpop.f32.mrb[57].mxu1  ;;  %v15144_v8 = vand.u32 4294901760, %v14118_v63  ;;  %10212 = vmatpush3.bf16.msra.mxu0 %v13794_v60  ;;  %v15631_v5 = vld [vmem:[#allocation46_spill] sm:$0xff] }
 0x4eb   : > { %v5205_v26 = vand.u32 4294901760, %v5204_v58  ;;  %v14126_v14 = vand.u32 4294901760, %v4961_v36  ;;  %v11171_v30 = vpop.eup %11170  ;;  %v10438_v56 = vadd.f32 %v13873_v46, %v4867_v34  ;;  %v5234_v57 = vsub.f32 %v14110_v45, %v15139_v22  ;;  %10214 = vmatprep.subr.bf16.mxu0 %v13808_v32 }
 0x4ec   : > { %15628 = vst [vmem:[#allocation26_spill] sm:$0xff] %v14122_v37  ;;  %v14134_v39 = vsub.f32 %v4962_v54, %v14122_v37  ;;  %v4964_v33 = vadd.f32 %v11169_v53, %v15631_v5  ;;  %11180 = vtanh.f32 %v10437_v9  ;;  %v5224_v60 = vsub.f32 %v14118_v63, %v15144_v8 }
 0x4ed   : > { %15629 = vst [vmem:[#allocation9_spill] sm:$0xff] %v14126_v14  ;;  %9343 = vmatprep.mubr.f32.mxu0 %v5205_v26  ;;  %v14142_v58 = vsub.f32 %v4961_v36, %v14126_v14  ;;  %v4963_v34 = vadd.f32 %v11171_v30, %v15633_v29  ;;  %11182 = vtanh.f32 %v10438_v56  ;;  %v9286_v22 = vpop.f32.mrb[58].mxu1  ;;  %v5235_v54 = vand.u32 4294901760, %v5234_v57  ;;  %v15637_v57 = vld [vmem:[#allocation52_spill] sm:$0xff]  ;;  %v15639_v29 = vld [vmem:[#allocation49_spill] sm:$0xff] }
 0x4ee   : > { %15630 = vst [vmem:[#allocation74_spill] sm:$0xff] %v14134_v39  ;;  %9344 = vmatmul.mubr.f32.gmra.mrb[44].mxu0 %v5215_v52  ;;  %v15147_v45 = vand.u32 4294901760, %v14134_v39  ;;  %v14146_v53 = vand.u32 4294901760, %v4964_v33  ;;  %v11173_v5 = vpop.eup %11172  ;;  %v10439_v26 = vadd.f32 %v9286_v22, %v13873_v46  ;;  %v4879_v9 = vpop.f32.mrb[59].mxu1  ;;  %v5225_v38 = vand.u32 4294901760, %v5224_v60 }
 0x4ef   : > { %15632 = vst [vmem:[#allocation82_spill] sm:$0xff] %v14142_v58  ;;  %v15152_v8 = vand.u32 4294901760, %v14142_v58  ;;  %v14150_v63 = vand.u32 4294901760, %v4963_v34  ;;  %10216 = vmatpush3.bf16.msra.mxu0 %v13808_v32  ;;  %v11175_v36 = vpop.eup %11174  ;;  %v10440_v30 = vadd.f32 %v13873_v46, %v4879_v9  ;;  %v4966_v22 = vadd.f32 %v11173_v5, %v15637_v57 }
 0x4f0   : > { %15634 = vst [vmem:[#allocation10_spill] sm:$0xff] %v14146_v53  ;;  %v5254_v52 = vsub.f32 %v14134_v39, %v15147_v45  ;;  %v14158_v56 = vsub.f32 %v4964_v33, %v14146_v53  ;;  %10218 = vmatprep.subr.bf16.mxu0 %v13962_v6  ;;  %11184 = vtanh.f32 %v10439_v26  ;;  %9346 = vmatprep.mubr.f32.mxu0 %v5225_v38 }
 0x4f1   : > { %15635 = vst [vmem:[#allocation79_spill] sm:$0xff] %v14150_v63  ;;  %v5244_v32 = vsub.f32 %v14142_v58, %v15152_v8  ;;  %v14166_v60 = vsub.f32 %v4963_v34, %v14150_v63  ;;  %v4965_v9 = vadd.f32 %v11175_v36, %v15639_v29  ;;  %11186 = vtanh.f32 %v10440_v30  ;;  %v9289_v45 = vpop.f32.mrb[60].mxu1  ;;  %v15645_v29 = vld [vmem:[#allocation48_spill] sm:$0xff] }
 0x4f2   : > { %15636 = vst [vmem:[#allocation88_spill] sm:$0xff] %v14158_v56  ;;  %9347 = vmatmul.mubr.f32.gmra.mrb[46].mxu0 %v5235_v54  ;;  %v5255_v33 = vand.u32 4294901760, %v5254_v52  ;;  %v15155_v39 = vand.u32 4294901760, %v14158_v56  ;;  %v14170_v5 = vand.u32 4294901760, %v4966_v22  ;;  %v11177_v57 = vpop.eup %11176  ;;  %v10441_v38 = vadd.f32 %v9289_v45, %v13873_v46  ;;  %v4891_v26 = vpop.f32.mrb[61].mxu1  ;;  %v15643_v52 = vld [vmem:[#allocation54_spill] sm:$0xff] }
 0x4f3   : > { %15638 = vst [vmem:[#allocation16_spill] sm:$0xff] %v14166_v60  ;;  %v5245_v62 = vand.u32 4294901760, %v5244_v32  ;;  %v15160_v8 = vand.u32 4294901760, %v14166_v60  ;;  %v14174_v58 = vand.u32 4294901760, %v4965_v9  ;;  %10220 = vmatpush3.bf16.msra.mxu0 %v13962_v6  ;;  %v11179_v34 = vpop.eup %11178  ;;  %v10442_v36 = vadd.f32 %v13873_v46, %v4891_v26 }
 0x4f4   : > { %15640 = vst [vmem:[#allocation85_spill] sm:$0xff] %v14170_v5  ;;  %v5274_v54 = vsub.f32 %v14158_v56, %v15155_v39  ;;  %v14182_v30 = vsub.f32 %v4966_v22, %v14170_v5  ;;  %v4968_v45 = vadd.f32 %v11177_v57, %v15643_v52  ;;  %10222 = vmatprep.subr.bf16.mxu0 %v13812_v24  ;;  %11188 = vtanh.f32 %v10441_v38 }
 0x4f5   : > { %15641 = vst [vmem:[#allocation94_spill] sm:$0xff] %v14174_v58  ;;  %9349 = vmatprep.mubr.f32.mxu0 %v5245_v62  ;;  %v5264_v6 = vsub.f32 %v14166_v60, %v15160_v8  ;;  %v14190_v32 = vsub.f32 %v4965_v9, %v14174_v58  ;;  %v4967_v26 = vadd.f32 %v11179_v34, %v15645_v29  ;;  %11190 = vtanh.f32 %v10442_v36  ;;  %v9292_v39 = vpop.f32.mrb[62].mxu1 }
 0x4f6   : > { %15642 = vst [vmem:[#allocation91_spill] sm:$0xff] %v14182_v30  ;;  %9350 = vmatmul.mubr.f32.gmra.mrb[48].mxu0 %v5255_v33  ;;  %v5275_v22 = vand.u32 4294901760, %v5274_v54  ;;  %v15165_v56 = vand.u32 4294901760, %v14182_v30  ;;  %v14194_v57 = vand.u32 4294901760, %v4968_v45  ;;  %v11181_v52 = vpop.eup %11180  ;;  %v10443_v62 = vadd.f32 %v9292_v39, %v13873_v46  ;;  %v4903_v38 = vpop.f32.mrb[63].mxu1  ;;  %v15649_v54 = vld [vmem:[#allocation59_spill] sm:$0xff] }
 0x4f7   : > { %15644 = vst [vmem:[#allocation99_spill] sm:$0xff] %v14190_v32  ;;  %v5265_v25 = vand.u32 4294901760, %v5264_v6  ;;  %v15168_v8 = vand.u32 4294901760, %v14190_v32  ;;  %v14198_v60 = vand.u32 4294901760, %v4967_v26  ;;  %v11183_v9 = vpop.eup %11182  ;;  %v10444_v34 = vadd.f32 %v13873_v46, %v4903_v38 }
 0x4f8   : > { %15646 = vst [vmem:[#allocation97_spill] sm:$0xff] %v14194_v57  ;;  %v5294_v33 = vsub.f32 %v14182_v30, %v15165_v56  ;;  %v14205_v36 = vsub.f32 %v4968_v45, %v14194_v57  ;;  %v4970_v29 = vadd.f32 %v11181_v52, %v15649_v54  ;;  %11192 = vtanh.f32 %v10443_v62 }
 0x4f9   : > { %15647 = vst [vmem:[#allocation105_spill] sm:$0xff] %v14198_v60  ;;  %9352 = vmatprep.mubr.f32.mxu0 %v5265_v25  ;;  %v5284_v39 = vsub.f32 %v14190_v32, %v15168_v8  ;;  %v14212_v6 = vsub.f32 %v4967_v26, %v14198_v60  ;;  %v4969_v46 = vadd.f32 %v11183_v9, %v15651_v59  ;;  %11194 = vtanh.f32 %v10444_v34  ;;  %v15657_v8 = vld [vmem:[#allocation56_spill] sm:$0xff] }
 0x4fa   : > { %15648 = vst [vmem:[#allocation102_spill] sm:$0xff] %v14205_v36  ;;  %9353 = vmatmul.mubr.f32.gmra.mrb[50].mxu0 %v5275_v22  ;;  %v15173_v38 = vand.u32 4294901760, %v14205_v36  ;;  %v14216_v56 = vand.u32 4294901760, %v4970_v29  ;;  %v11185_v45 = vpop.eup %11184  ;;  %v5295_v54 = vand.u32 4294901760, %v5294_v33  ;;  %v15655_v22 = vld [vmem:[#allocation60_spill] sm:$0xff] }
 0x4fb   : > { %15650 = vst [vmem:[#allocation111_spill] sm:$0xff] %v14212_v6  ;;  %v5285_v30 = vand.u32 4294901760, %v5284_v39  ;;  %v15176_v52 = vand.u32 4294901760, %v14212_v6  ;;  %v14219_v25 = vand.u32 4294901760, %v4969_v46  ;;  %v11187_v62 = vpop.eup %11186  ;;  %v4972_v9 = vadd.f32 %v11185_v45, %v15655_v22 }
 0x4fc   : > { %15652 = vst [vmem:[#allocation108_spill] sm:$0xff] %v14216_v56  ;;  %v5314_v26 = vsub.f32 %v14205_v36, %v15173_v38  ;;  %v14225_v59 = vsub.f32 %v4970_v29, %v14216_v56  ;;  %v4971_v32 = vadd.f32 %v11187_v62, %v15657_v8  ;;  %v15661_v8 = vld [vmem:[#allocation63_spill] sm:$0xff] }
 0x4fd   : > { %15653 = vst [vmem:[#allocation116_spill] sm:$0xff] %v14219_v25  ;;  %9355 = vmatprep.mubr.f32.mxu0 %v5285_v30  ;;  %v5304_v34 = vsub.f32 %v14212_v6, %v15176_v52  ;;  %v14232_v39 = vsub.f32 %v4969_v46, %v14219_v25  ;;  %v14236_v7 = vand.u32 4294901760, %v4972_v9  ;;  %v15662_v6 = vld [vmem:[#allocation62_spill] sm:$0xff] }
 0x4fe   : > { %15654 = vst [vmem:[#allocation114_spill] sm:$0xff] %v14225_v59  ;;  %9356 = vmatmul.mubr.f32.gmra.mrb[52].mxu0 %v5295_v54  ;;  %v15183_v33 = vand.u32 4294901760, %v14225_v59  ;;  %v11189_v38 = vpop.eup %11188  ;;  %v14239_v45 = vand.u32 4294901760, %v4971_v32  ;;  %v5315_v22 = vand.u32 4294901760, %v5314_v26 }
 0x4ff   : > { %15656 = vst [vmem:[#allocation122_spill] sm:$0xff] %v14232_v39  ;;  %15658 = vst [vmem:[#allocation121_spill] sm:$0xff] %v14236_v7  ;;  %v5305_v29 = vand.u32 4294901760, %v5304_v34  ;;  %v15186_v36 = vand.u32 4294901760, %v14232_v39  ;;  %v11191_v30 = vpop.eup %11190  ;;  %v14245_v52 = vsub.f32 %v4972_v9, %v14236_v7  ;;  %v4974_v62 = vadd.f32 %v11189_v38, %v15661_v8 }
 0x500   : > { %15659 = vst [vmem:[#allocation128_spill] sm:$0xff] %v14239_v45  ;;  %v5334_v46 = vsub.f32 %v14225_v59, %v15183_v33  ;;  %v14252_v34 = vsub.f32 %v4971_v32, %v14239_v45  ;;  %v4973_v1 = vadd.f32 %v11191_v30, %v15662_v6  ;;  %v15665_v6 = vld [vmem:[#allocation64_spill] sm:$0xff] }
 0x501   : > { %15660 = vst [vmem:[#allocation127_spill] sm:$0xff] %v14245_v52  ;;  %9358 = vmatprep.mubr.f32.mxu0 %v5305_v29  ;;  %v5324_v54 = vsub.f32 %v14232_v39, %v15186_v36  ;;  %v15193_v26 = vand.u32 4294901760, %v14245_v52  ;;  %v14256_v42 = vand.u32 4294901760, %v4974_v62  ;;  %v15666_v39 = vld [vmem:[#allocation61_spill] sm:$0xff] }
 0x502   : > { %9359 = vmatmul.mubr.f32.gmra.mrb[54].mxu0 %v5315_v22  ;;  %v11193_v33 = vpop.eup %11192  ;;  %v15200_v59 = vand.u32 4294901760, %v14252_v34  ;;  %v14259_v38 = vand.u32 4294901760, %v4973_v1  ;;  %v5335_v8 = vand.u32 4294901760, %v5334_v46 }
 0x503   : > { %15663 = vst [vmem:[#allocation132_spill] sm:$0xff] %v14256_v42  ;;  %v5325_v9 = vand.u32 4294901760, %v5324_v54  ;;  %v11195_v29 = vpop.eup %11194  ;;  %v5354_v32 = vsub.f32 %v14245_v52, %v15193_v26  ;;  %v14265_v36 = vsub.f32 %v4974_v62, %v14256_v42  ;;  %v4976_v30 = vadd.f32 %v11193_v33, %v15665_v6 }
 0x504   : > { %15664 = vst [vmem:[#allocation131_spill] sm:$0xff] %v14259_v38  ;;  %v5344_v22 = vsub.f32 %v14252_v34, %v15200_v59  ;;  %v14272_v54 = vsub.f32 %v4973_v1, %v14259_v38  ;;  %v4975_v41 = vadd.f32 %v11195_v29, %v15666_v39 }
 0x505   : > { %9361 = vmatprep.mubr.f32.mxu0 %v5325_v9  ;;  %v15196_v46 = vand.u32 4294901760, %v14265_v36  ;;  %v14276_v10 = vand.u32 4294901760, %v4976_v30  ;;  %v5355_v33 = vand.u32 4294901760, %v5354_v32 }
 0x506   : > { %9362 = vmatmul.mubr.f32.gmra.mrb[56].mxu0 %v5335_v8  ;;  %v5345_v26 = vand.u32 4294901760, %v5344_v22  ;;  %v15199_v62 = vand.u32 4294901760, %v14272_v54  ;;  %v14279_v52 = vand.u32 4294901760, %v4975_v41 }
 0x507   : > { %15667 = vst [vmem:[#allocation17_spill] sm:$0xff] %v14276_v10  ;;  %v5374_v9 = vsub.f32 %v14265_v36, %v15196_v46  ;;  %v14285_v1 = vsub.f32 %v4976_v30, %v14276_v10 }
 0x508   : > { %15668 = vst [vmem:[#allocation15_spill] sm:$0xff] %v14279_v52  ;;  %9364 = vmatprep.mubr.f32.mxu0 %v5345_v26  ;;  %v5364_v39 = vsub.f32 %v14272_v54, %v15199_v62  ;;  %v14291_v29 = vsub.f32 %v4975_v41, %v14279_v52  ;;  %v15687_v62 = vld [vmem:[#allocation8_spill] sm:$0xff] }
 0x509   : > { %v15197_v8 = vand.u32 4294901760, %v14285_v1  ;;  %v5375_v22 = vand.u32 4294901760, %v5374_v9  ;;  %v15677_v9 = vld [vmem:[#allocation70_spill] sm:$0xff]  ;;  %v15688_v59 = vand.u32 4294901760, %v15687_v62  ;;  %v15698_v62 = vld [vmem:[#allocation111_spill] sm:$0xff] }
 0x50a   : > { %9365 = vmatmul.mubr.f32.gmra.mrb[58].mxu0 %v5355_v33  ;;  %v5365_v6 = vand.u32 4294901760, %v5364_v39  ;;  %v15198_v32 = vand.u32 4294901760, %v14291_v29  ;;  %v15676_v33 = vld [vmem:[#allocation123_spill] sm:$0xff]  ;;  %v15678_v39 = vld [vmem:[#allocation125_spill] sm:$0xff] }
 0x50b   : > { %v5394_v30 = vsub.f32 %v14285_v1, %v15197_v8  ;;  %v15685_v8 = vld [vmem:[#allocation23_spill] sm:$0xff] }
 0x50c   : > { %9367 = vmatprep.mubr.f32.mxu0 %v5365_v6  ;;  %v5384_v26 = vsub.f32 %v14291_v29, %v15198_v32  ;;  %v15679_v6 = vld [vmem:[#allocation35_spill] sm:$0xff] }
 0x50d   : > { %v5395_v41 = vand.u32 4294901760, %v5394_v30  ;;  %v15681_v30 = vld [vmem:[#allocation32_spill] sm:$0xff]  ;;  %v15686_v32 = vld [vmem:[#allocation75_spill] sm:$0xff] }
 0x50e   : > { %9368 = vmatmul.mubr.f32.gmra.mrb[60].mxu0 %v5375_v22  ;;  %v5385_v46 = vand.u32 4294901760, %v5384_v26  ;;  %v15680_v22 = vld [vmem:[#allocation7_spill] sm:$0xff] }
 0x50f   : > { %v15682_v26 = vld [vmem:[#allocation43_spill] sm:$0xff] }
 0x510   : > { %9370 = vmatprep.mubr.f32.mxu0 %v5385_v46  ;;  %v15675_v46 = vld [vmem:[#allocation119_spill] sm:$0xff] }
 0x512   : > { %9371 = vmatmul.mubr.f32.gmra.mrb[62].mxu0 %v5395_v41  ;;  %v15683_v41 = vld [vmem:[#allocation68_spill] sm:$0xff] }
 0x513   : > { %9405 = vmatprep.mubr.f32.mxu0 %v13938_v4 }
 0x516   : > { %9406 = vmatmul.mubr.f32.vlgmr.msra.gmra.mrb[32].mxu0 %v13935_v47 }
 0x517   : > { %10224 = vmatpush3.bf16.msra.mxu0 %v13812_v24  ;;  %9408 = vmatprep.mubr.f32.mxu0 %v13960_v12  ;;  %v10249_v24 = vpack.c.bf16 %v13806_v31, %v13804_v17 }
 0x518   : > { %10226 = vmatprep.subr.bf16.mxu0 %v13826_v18 }
 0x51a   : > { %9409 = vmatmul.mubr.f32.gmra.mrb[34].mxu0 %v13954_v61 }
 0x51b   : > { %9411 = vmatprep.mubr.f32.mxu0 %v13984_v55  ;;  %10228 = vmatpush3.bf16.msra.mxu0 %v13826_v18  ;;  %v15669_v18 = vld [vmem:[#allocation107_spill] sm:$0xff] }
 0x51c   : > { %10230 = vmatprep.subr.bf16.mxu0 %v13840_v23 }
 0x51e   : > { %9412 = vmatmul.mubr.f32.gmra.mrb[36].mxu0 %v13980_v51 }
 0x51f   : > { %9414 = vmatprep.mubr.f32.mxu0 %v14007_v11  ;;  %10232 = vmatpush3.bf16.msra.mxu0 %v13840_v23  ;;  %v15670_v23 = vld [vmem:[#allocation113_spill] sm:$0xff] }
 0x520   : > { %10234 = vmatprep.subr.bf16.mxu0 %v13854_v27 }
 0x522   : > { %9415 = vmatmul.mubr.f32.gmra.mrb[38].mxu0 %v14002_v44 }
 0x523   : > { %9417 = vmatprep.mubr.f32.mxu0 %v14031_v21  ;;  %10236 = vmatpush3.bf16.msra.mxu0 %v13854_v27  ;;  %v15671_v27 = vld [vmem:[#allocation6_spill] sm:$0xff] }
 0x524   : > { %10238 = vmatprep.subr.bf16.mxu0 %v13868_v28 }
 0x526   : > { %9418 = vmatmul.mubr.f32.gmra.mrb[40].mxu0 %v14026_v50 }
 0x527   : > { %9420 = vmatprep.mubr.f32.mxu0 %v14055_v2  ;;  %10240 = vmatpush3.bf16.msra.mxu0 %v13868_v28  ;;  %v15672_v28 = vld [vmem:[#allocation115_spill] sm:$0xff] }
 0x528   : > { %10242 = vmatprep.subr.bf16.mxu0 %v13880_v48 }
 0x52a   : > { %9421 = vmatmul.mubr.f32.gmra.mrb[42].mxu0 %v14050_v20 }
 0x52b   : > { %9423 = vmatprep.mubr.f32.mxu0 %v14078_v35  ;;  %10244 = vmatpush3.bf16.msra.mxu0 %v13880_v48  ;;  %v15673_v48 = vld [vmem:[#allocation117_spill] sm:$0xff]  ;;  %v15712_v35 = vld [vmem:[#allocation90_spill] sm:$0xff] }
 0x52c   : > { %10246 = vmatprep.subr.bf16.mxu0 %v13902_v19  ;;  %v15713_v20 = vand.u32 4294901760, %v15712_v35  ;;  %v15722_v35 = vld [vmem:[#allocation101_spill] sm:$0xff] }
 0x52e   : > { %9424 = vmatmul.mubr.f32.gmra.mrb[44].mxu0 %v14074_v40  ;;  %v15710_v40 = vld [vmem:[#allocation21_spill] sm:$0xff] }
 0x52f   : > { %9426 = vmatprep.mubr.f32.mxu0 %v14102_v49  ;;  %10248 = vmatpush3.bf16.msra.mxu0 %v13902_v19  ;;  %v15674_v19 = vld [vmem:[#allocation65_spill] sm:$0xff]  ;;  %v15709_v49 = vand.u32 4294901760, %v13976_v16 }
 0x530   : > { %10250 = vmatprep.subr.bf16.mxu0 %v10249_v24 }
 0x532   : > { %9427 = vmatmul.mubr.f32.gmra.mrb[46].mxu0 %v14098_v13 }
 0x533   : > { %9429 = vmatprep.mubr.f32.mxu0 %v14126_v14  ;;  %10252 = vmatpush3.bf16.msra.mxu0 %v10249_v24  ;;  %v15684_v24 = vld [vmem:[#allocation39_spill] sm:$0xff] }
 0x534   : > { %10254 = vmatprep.subr.bf16.mxu0 %v13587_v0 }
 0x536   : > { %9430 = vmatmul.mubr.f32.gmra.mrb[48].mxu0 %v14122_v37  ;;  %v15706_v37 = vld [vmem:[#allocation19_spill] sm:$0xff] }
 0x537   : > { %9432 = vmatprep.mubr.f32.mxu0 %v14150_v63  ;;  %v15707_v14 = vand.u32 4294901760, %v15706_v37  ;;  %v15724_v37 = vld [vmem:[#allocation109_spill] sm:$0xff] }
 0x53a   : > { %9433 = vmatmul.mubr.f32.gmra.mrb[50].mxu0 %v14146_v53  ;;  %v15704_v53 = vld [vmem:[#allocation92_spill] sm:$0xff] }
 0x53b   : > { %9435 = vmatprep.mubr.f32.mxu0 %v14174_v58  ;;  %v15703_v58 = vand.u32 4294901760, %v13948_v43  ;;  %v15705_v63 = vand.u32 4294901760, %v15704_v53  ;;  %v15725_v53 = vand.u32 4294901760, %v15724_v37  ;;  %v15773_v37 = vld [vmem:[#allocation94_spill] sm:$0xff] }
 0x53d   : > { %v10289_v13 = vpack.c.bf16 %v15707_v14, %v15705_v63 }
 0x53e   : > { %9436 = vmatmul.mubr.f32.gmra.mrb[52].mxu0 %v14170_v5  ;;  %v15702_v5 = vld [vmem:[#allocation127_spill] sm:$0xff] }
 0x53f   : > { %9438 = vmatprep.mubr.f32.mxu0 %v14198_v60  ;;  %v15697_v60 = vld [vmem:[#allocation91_spill] sm:$0xff] }
 0x542   : > { %9439 = vmatmul.mubr.f32.gmra.mrb[54].mxu0 %v14194_v57  ;;  %v15696_v57 = vld [vmem:[#allocation99_spill] sm:$0xff] }
 0x543   : > { %9441 = vmatprep.mubr.f32.mxu0 %v14219_v25  ;;  %v15695_v25 = vld [vmem:[#allocation88_spill] sm:$0xff] }
 0x546   : > { %9442 = vmatmul.mubr.f32.gmra.mrb[56].mxu0 %v14216_v56  ;;  %v15694_v56 = vld [vmem:[#allocation16_spill] sm:$0xff] }
 0x547   : > { %9444 = vmatprep.mubr.f32.mxu0 %v14239_v45  ;;  %v15693_v45 = vld [vmem:[#allocation74_spill] sm:$0xff] }
 0x54a   : > { %9445 = vmatmul.mubr.f32.gmra.mrb[58].mxu0 %v14236_v7  ;;  %v15692_v7 = vld [vmem:[#allocation82_spill] sm:$0xff] }
 0x54b   : > { %9447 = vmatprep.mubr.f32.mxu0 %v14259_v38  ;;  %v15691_v38 = vld [vmem:[#allocation14_spill] sm:$0xff] }
 0x54e   : > { %9448 = vmatmul.mubr.f32.gmra.mrb[60].mxu0 %v14256_v42 }
 0x54f   : > { %9450 = vmatprep.mubr.f32.mxu0 %v14279_v52 }
 0x552   : > { %9451 = vmatmul.mubr.f32.gmra.mrb[62].mxu0 %v14276_v10  ;;  %v15689_v10 = vld [vmem:[#allocation72_spill] sm:$0xff] }
 0x553   : > { %9485 = vmatprep.mubr.f32.mxu0 %v13948_v43  ;;  %v15690_v52 = vand.u32 4294901760, %v15689_v10  ;;  %v15699_v10 = vld [vmem:[#allocation102_spill] sm:$0xff]  ;;  %v15714_v43 = vand.u32 4294901760, %v15669_v18 }
 0x555   : > { %v10285_v42 = vpack.c.bf16 %v15690_v52, %v15688_v59  ;;  %v15700_v52 = vld [vmem:[#allocation122_spill] sm:$0xff] }
 0x556   : > { %9486 = vmatmul.mubr.f32.vlgmr.msra.gmra.mrb[32].mxu0 %v13941_v15  ;;  %v15701_v59 = vld [vmem:[#allocation114_spill] sm:$0xff] }
 0x557   : > { %10256 = vmatpush3.bf16.msra.mxu0 %v13587_v0  ;;  %9488 = vmatprep.mubr.f32.mxu0 %v13976_v16 }
 0x558   : > { %10258 = vmatprep.subr.bf16.mxu0 %v13594_v3 }
 0x55a   : > { %9489 = vmatmul.mubr.f32.gmra.mrb[34].mxu0 %v15669_v18  ;;  %v15727_v18 = vand.u32 4294901760, %v15676_v33 }
 0x55b   : > { %9491 = vmatprep.mubr.f32.mxu0 %v15670_v23  ;;  %10260 = vmatpush3.bf16.msra.mxu0 %v13594_v3 }
 0x55c   : > { %10262 = vmatprep.subr.bf16.mxu0 %v15671_v27 }
 0x55e   : > { %9492 = vmatmul.mubr.f32.gmra.mrb[36].mxu0 %v15672_v28 }
 0x55f   : > { %9494 = vmatprep.mubr.f32.mxu0 %v15673_v48  ;;  %10264 = vmatpush3.bf16.msra.mxu0 %v15671_v27 }
 0x560   : > { %10266 = vmatprep.subr.bf16.mxu0 %v15674_v19 }
 0x562   : > { %9495 = vmatmul.mubr.f32.gmra.mrb[38].mxu0 %v15675_v46 }
 0x563   : > { %9497 = vmatprep.mubr.f32.mxu0 %v15676_v33  ;;  %10268 = vmatpush3.bf16.msra.mxu0 %v15674_v19 }
 0x564   : > { %10270 = vmatprep.subr.bf16.mxu0 %v15677_v9 }
 0x566   : > { %9498 = vmatmul.mubr.f32.gmra.mrb[40].mxu0 %v15678_v39 }
 0x567   : > { %9500 = vmatprep.mubr.f32.mxu0 %v15679_v6  ;;  %10272 = vmatpush3.bf16.msra.mxu0 %v15677_v9 }
 0x568   : > { %10274 = vmatprep.subr.bf16.mxu0 %v15680_v22 }
 0x56a   : > { %9501 = vmatmul.mubr.f32.gmra.mrb[42].mxu0 %v15681_v30 }
 0x56b   : > { %9503 = vmatprep.mubr.f32.mxu0 %v15682_v26  ;;  %10276 = vmatpush3.bf16.msra.mxu0 %v15680_v22 }
 0x56c   : > { %10278 = vmatprep.subr.bf16.mxu0 %v15683_v41 }
 0x56e   : > { %9504 = vmatmul.mubr.f32.gmra.mrb[44].mxu0 %v15684_v24 }
 0x56f   : > { %9506 = vmatprep.mubr.f32.mxu0 %v15685_v8  ;;  %10280 = vmatpush3.bf16.msra.mxu0 %v15683_v41  ;;  %v15711_v41 = vand.u32 4294901760, %v15710_v40  ;;  %v15721_v40 = vand.u32 4294901760, %v15673_v48 }
 0x570   : > { %10282 = vmatprep.subr.bf16.mxu0 %v15686_v32 }
 0x571   : > { %v10293_v22 = vpack.c.bf16 %v15713_v20, %v15711_v41  ;;  %v15723_v20 = vand.u32 4294901760, %v15722_v35  ;;  %v15730_v41 = vld [vmem:[#allocation77_spill] sm:$0xff]  ;;  %v15743_v35 = vand.u32 4294901760, %v15685_v8  ;;  %v15748_v8 = vand.u32 4294901760, %v15695_v25 }
 0x572   : > { %9507 = vmatmul.mubr.f32.gmra.mrb[46].mxu0 %v15691_v38  ;;  %v15731_v48 = vand.u32 4294901760, %v15730_v41  ;;  %v15780_v41 = vld [vmem:[#allocation121_spill] sm:$0xff] }
 0x573   : > { %9509 = vmatprep.mubr.f32.mxu0 %v15692_v7  ;;  %10284 = vmatpush3.bf16.msra.mxu0 %v15686_v32  ;;  %v15708_v32 = vand.u32 4294901760, %v13941_v15  ;;  %v15716_v15 = vld [vmem:[#allocation96_spill] sm:$0xff] }
 0x574   : > { %10286 = vmatprep.subr.bf16.mxu0 %v10285_v42  ;;  %v15717_v14 = vand.u32 4294901760, %v15716_v15 }
 0x576   : > { %9510 = vmatmul.mubr.f32.gmra.mrb[48].mxu0 %v15693_v45 }
 0x577   : > { %9512 = vmatprep.mubr.f32.mxu0 %v15694_v56 }
 0x57a   : > { %9513 = vmatmul.mubr.f32.gmra.mrb[50].mxu0 %v15695_v25  ;;  %v15755_v25 = vand.u32 4294901760, %v14252_v34 }
 0x57b   : > { %9515 = vmatprep.mubr.f32.mxu0 %v15696_v57 }
 0x57e   : > { %9516 = vmatmul.mubr.f32.gmra.mrb[52].mxu0 %v15697_v60 }
 0x57f   : > { %9518 = vmatprep.mubr.f32.mxu0 %v15698_v62 }
 0x582   : > { %9519 = vmatmul.mubr.f32.gmra.mrb[54].mxu0 %v15699_v10 }
 0x583   : > { %9521 = vmatprep.mubr.f32.mxu0 %v15700_v52 }
 0x586   : > { %9522 = vmatmul.mubr.f32.gmra.mrb[56].mxu0 %v15701_v59 }
 0x587   : > { %9524 = vmatprep.mubr.f32.mxu0 %v14252_v34  ;;  %v15765_v34 = vld [vmem:[#allocation37_spill] sm:$0xff] }
 0x58a   : > { %9525 = vmatmul.mubr.f32.gmra.mrb[58].mxu0 %v15702_v5 }
 0x58b   : > { %9527 = vmatprep.mubr.f32.mxu0 %v14272_v54 }
 0x58e   : > { %9528 = vmatmul.mubr.f32.gmra.mrb[60].mxu0 %v14265_v36 }
 0x58f   : > { %9530 = vmatprep.mubr.f32.mxu0 %v14291_v29 }
 0x592   : > { %9531 = vmatmul.mubr.f32.gmra.mrb[62].mxu0 %v14285_v1 }
 0x593   : > { %9565 = vmatprep.mubr.f32.mxu0 %v15703_v58  ;;  %v15715_v58 = vand.u32 4294901760, %v15670_v23  ;;  %v15728_v23 = vld [vmem:[#allocation80_spill] sm:$0xff] }
 0x596   : > { %9566 = vmatmul.mubr.f32.vlgmr.msra.gmra.mrb[32].mxu0 %v15708_v32  ;;  %v10301_v32 = vpack.c.bf16 %v15725_v53, %v15723_v20  ;;  %v15752_v20 = vand.u32 4294901760, %v15699_v10  ;;  %v15759_v10 = vand.u32 4294901760, %v14291_v29  ;;  %v15768_v29 = vld [vmem:[#allocation45_spill] sm:$0xff] }
 0x597   : > { %10288 = vmatpush3.bf16.msra.mxu0 %v10285_v42  ;;  %9568 = vmatprep.mubr.f32.mxu0 %v15709_v49  ;;  %v15718_v42 = vld [vmem:[#allocation103_spill] sm:$0xff]  ;;  %v15720_v49 = vand.u32 4294901760, %v15672_v28  ;;  %v15729_v28 = vand.u32 4294901760, %v15728_v23  ;;  %v15774_v53 = vld [vmem:[#allocation85_spill] sm:$0xff]  ;;  %v15778_v23 = vld [vmem:[#allocation108_spill] sm:$0xff] }
 0x598   : > { %10290 = vmatprep.subr.bf16.mxu0 %v10289_v13  ;;  %v15719_v63 = vand.u32 4294901760, %v15718_v42 }
 0x59a   : > { %9569 = vmatmul.mubr.f32.gmra.mrb[34].mxu0 %v15714_v43  ;;  %v10297_v16 = vpack.c.bf16 %v15719_v63, %v15717_v14  ;;  %v10305_v43 = vpack.c.bf16 %v15731_v48, %v15729_v28  ;;  %v15736_v14 = vld [vmem:[#allocation84_spill] sm:$0xff]  ;;  %v15738_v63 = vand.u32 4294901760, %v15681_v30  ;;  %v15744_v30 = vand.u32 4294901760, %v15691_v38  ;;  %v15781_v48 = vld [vmem:[#allocation131_spill] sm:$0xff] }
 0x59b   : > { %9571 = vmatprep.mubr.f32.mxu0 %v15715_v58  ;;  %10292 = vmatpush3.bf16.msra.mxu0 %v10289_v13  ;;  %v15726_v13 = vand.u32 4294901760, %v15675_v46  ;;  %v15733_v58 = vand.u32 4294901760, %v15679_v6  ;;  %v15734_v46 = vld [vmem:[#allocation86_spill] sm:$0xff]  ;;  %v15737_v33 = vand.u32 4294901760, %v15736_v14  ;;  %v15741_v6 = vand.u32 4294901760, %v13806_v31  ;;  %v15779_v28 = vld [vmem:[#allocation128_spill] sm:$0xff] }
 0x59c   : > { %10294 = vmatprep.subr.bf16.mxu0 %v10293_v22  ;;  %v15735_v15 = vand.u32 4294901760, %v15734_v46  ;;  %v15747_v31 = vand.u32 4294901760, %v15694_v56  ;;  %v15750_v38 = vand.u32 4294901760, %v15697_v60  ;;  %v15754_v56 = vand.u32 4294901760, %v15701_v59  ;;  %v15772_v59 = vld [vmem:[#allocation10_spill] sm:$0xff] }
 0x59d   : > { %v15757_v60 = vand.u32 4294901760, %v14272_v54  ;;  %v15766_v54 = vld [vmem:[#allocation12_spill] sm:$0xff] }
 0x59e   : > { %9572 = vmatmul.mubr.f32.gmra.mrb[36].mxu0 %v15720_v49  ;;  %v10309_v42 = vpack.c.bf16 %v15737_v33, %v15735_v15 }
 0x59f   : > { %9574 = vmatprep.mubr.f32.mxu0 %v15721_v40  ;;  %10296 = vmatpush3.bf16.msra.mxu0 %v10293_v22  ;;  %v15732_v22 = vand.u32 4294901760, %v15678_v39  ;;  %v15740_v39 = vand.u32 4294901760, %v13804_v17  ;;  %v15742_v40 = vand.u32 4294901760, %v15684_v24  ;;  %v15746_v17 = vand.u32 4294901760, %v15693_v45 }
 0x5a0   : > { %10298 = vmatprep.subr.bf16.mxu0 %v10297_v16  ;;  %v15749_v24 = vand.u32 4294901760, %v15696_v57  ;;  %v15753_v45 = vand.u32 4294901760, %v15700_v52  ;;  %v15756_v57 = vand.u32 4294901760, %v15702_v5  ;;  %v15760_v52 = vand.u32 4294901760, %v14285_v1  ;;  %v15763_v5 = vld [vmem:[#allocation34_spill] sm:$0xff]  ;;  %v15767_v1 = vld [vmem:[#allocation75_spill] sm:$0xff] }
 0x5a1   : > { %v10313_v49 = vpack.c.bf16 %v15741_v6, %v15740_v39 }
 0x5a2   : > { %9575 = vmatmul.mubr.f32.gmra.mrb[38].mxu0 %v15726_v13  ;;  %v15776_v13 = vld [vmem:[#allocation97_spill] sm:$0xff] }
 0x5a3   : > { %9577 = vmatprep.mubr.f32.mxu0 %v15727_v18  ;;  %10300 = vmatpush3.bf16.msra.mxu0 %v10297_v16  ;;  %v15739_v16 = vand.u32 4294901760, %v15682_v26  ;;  %v15745_v26 = vand.u32 4294901760, %v15692_v7  ;;  %v15751_v7 = vand.u32 4294901760, %v15698_v62  ;;  %v15758_v62 = vand.u32 4294901760, %v14265_v36  ;;  %v15764_v36 = vld [vmem:[#allocation68_spill] sm:$0xff] }
 0x5a4   : > { %10302 = vmatprep.subr.bf16.mxu0 %v10301_v32  ;;  %v15777_v18 = vld [vmem:[#allocation116_spill] sm:$0xff] }
 0x5a6   : > { %9578 = vmatmul.mubr.f32.gmra.mrb[40].mxu0 %v15732_v22  ;;  %v15783_v22 = vld [vmem:[#allocation15_spill] sm:$0xff] }
 0x5a7   : > { %9580 = vmatprep.mubr.f32.mxu0 %v15733_v58  ;;  %10304 = vmatpush3.bf16.msra.mxu0 %v10301_v32  ;;  %v15775_v32 = vld [vmem:[#allocation105_spill] sm:$0xff] }
 0x5a8   : > { %10306 = vmatprep.subr.bf16.mxu0 %v10305_v43  ;;  %v15784_v58 = vld [vmem:[#allocation17_spill] sm:$0xff] }
 0x5aa   : > { %9581 = vmatmul.mubr.f32.gmra.mrb[42].mxu0 %v15738_v63 }
 0x5ab   : > { %9583 = vmatprep.mubr.f32.mxu0 %v15739_v16  ;;  %10308 = vmatpush3.bf16.msra.mxu0 %v10305_v43  ;;  %v15782_v43 = vld [vmem:[#allocation132_spill] sm:$0xff]  ;;  %v14587_v16 = vld [vmem:[%s14810_s9] ss:$0 sm:$0xff] }
 0x5ac   : > { %10310 = vmatprep.subr.bf16.mxu0 %v10309_v42 }
 0x5ae   : > { %9584 = vmatmul.mubr.f32.gmra.mrb[44].mxu0 %v15742_v40 }
 0x5af   : > { %9586 = vmatprep.mubr.f32.mxu0 %v15743_v35  ;;  %10312 = vmatpush3.bf16.msra.mxu0 %v10309_v42  ;;  %v15786_v35 = vld [vmem:[#allocation47_spill] sm:$0xff] }
 0x5b0   : > { %10314 = vmatprep.subr.bf16.mxu0 %v10313_v49 }
 0x5b2   : > { %9587 = vmatmul.mubr.f32.gmra.mrb[46].mxu0 %v15744_v30 }
 0x5b3   : > { %9589 = vmatprep.mubr.f32.mxu0 %v15745_v26  ;;  %10316 = vmatpush3.bf16.msra.mxu0 %v10313_v49  ;;  %v15785_v49 = vld [vmem:[#allocation42_spill] sm:$0xff] }
 0x5b4   : > { %10318 = vmatprep.subr.bf16.mxu0 %v13587_v0 }
 0x5b6   : > { %9590 = vmatmul.mubr.f32.gmra.mrb[48].mxu0 %v15746_v17 }
 0x5b7   : > { %9592 = vmatprep.mubr.f32.mxu0 %v15747_v31 }
 0x5ba   : > { %9593 = vmatmul.mubr.f32.gmra.mrb[50].mxu0 %v15748_v8 }
 0x5bb   : > { %9595 = vmatprep.mubr.f32.mxu0 %v15749_v24 }
 0x5be   : > { %9596 = vmatmul.mubr.f32.gmra.mrb[52].mxu0 %v15750_v38 }
 0x5bf   : > { %9598 = vmatprep.mubr.f32.mxu0 %v15751_v7 }
 0x5c2   : > { %9599 = vmatmul.mubr.f32.gmra.mrb[54].mxu0 %v15752_v20 }
 0x5c3   : > { %9601 = vmatprep.mubr.f32.mxu0 %v15753_v45  ;;  %v15787_v45 = vld [vmem:[#allocation51_spill] sm:$0xff] }
 0x5c6   : > { %9602 = vmatmul.mubr.f32.gmra.mrb[56].mxu0 %v15754_v56 }
 0x5c7   : > { %9604 = vmatprep.mubr.f32.mxu0 %v15755_v25  ;;  %v15788_v25 = vld [vmem:[#allocation53_spill] sm:$0xff] }
 0x5ca   : > { %9605 = vmatmul.mubr.f32.gmra.mrb[58].mxu0 %v15756_v57 }
 0x5cb   : > { %9607 = vmatprep.mubr.f32.mxu0 %v15757_v60 }
 0x5ce   : > { %9608 = vmatmul.mubr.f32.gmra.mrb[60].mxu0 %v15758_v62 }
 0x5cf   : > { %9610 = vmatprep.mubr.f32.mxu0 %v15759_v10 }
 0x5d2   : > { %9611 = vmatmul.mubr.f32.gmra.mrb[62].mxu0 %v15760_v52 }
 0x5d3   : > { %9645 = vmatprep.mubr.f32.mxu0 %v13938_v4 }
 0x5d6   : > { %9646 = vmatmul.mubr.f32.vlgmr.msra.gmra.mrb[32].mxu0 %v13935_v47 }
 0x5d7   : > { %10320 = vmatpush3.bf16.msra.mxu0 %v13587_v0  ;;  %9648 = vmatprep.mubr.f32.mxu0 %v13960_v12  ;;  %v15761_v0 = vld [vmem:[#allocation7_spill] sm:$0xff] }
 0x5d8   : > { %10322 = vmatprep.subr.bf16.mxu0 %v13594_v3 }
 0x5da   : > { %9649 = vmatmul.mubr.f32.gmra.mrb[34].mxu0 %v13954_v61 }
 0x5db   : > { %9651 = vmatprep.mubr.f32.mxu0 %v13984_v55  ;;  %10324 = vmatpush3.bf16.msra.mxu0 %v13594_v3  ;;  %v15762_v3 = vld [vmem:[#allocation29_spill] sm:$0xff] }
 0x5dc   : > { %10326 = vmatprep.subr.bf16.mxu0 %v15671_v27 }
 0x5de   : > { %9652 = vmatmul.mubr.f32.gmra.mrb[36].mxu0 %v13980_v51 }
 0x5df   : > { %9654 = vmatprep.mubr.f32.mxu0 %v14007_v11  ;;  %10328 = vmatpush3.bf16.msra.mxu0 %v15671_v27  ;;  %v15769_v27 = vld [vmem:[#allocation9_spill] sm:$0xff] }
 0x5e0   : > { %10330 = vmatprep.subr.bf16.mxu0 %v15674_v19 }
 0x5e2   : > { %9655 = vmatmul.mubr.f32.gmra.mrb[38].mxu0 %v14002_v44 }
 0x5e3   : > { %9657 = vmatprep.mubr.f32.mxu0 %v14031_v21  ;;  %10332 = vmatpush3.bf16.msra.mxu0 %v15674_v19  ;;  %v15770_v19 = vld [vmem:[#allocation26_spill] sm:$0xff] }
 0x5e4   : > { %10334 = vmatprep.subr.bf16.mxu0 %v15677_v9 }
 0x5e6   : > { %9658 = vmatmul.mubr.f32.gmra.mrb[40].mxu0 %v14026_v50 }
 0x5e7   : > { %9660 = vmatprep.mubr.f32.mxu0 %v14055_v2  ;;  %10336 = vmatpush3.bf16.msra.mxu0 %v15677_v9  ;;  %v15771_v9 = vld [vmem:[#allocation79_spill] sm:$0xff] }
 0x5e8   : > { %10338 = vmatprep.subr.bf16.mxu0 %v15761_v0 }
 0x5ea   : > { %9661 = vmatmul.mubr.f32.gmra.mrb[42].mxu0 %v15762_v3 }
 0x5eb   : > { %9663 = vmatprep.mubr.f32.mxu0 %v15763_v5  ;;  %10340 = vmatpush3.bf16.msra.mxu0 %v15761_v0 }
 0x5ec   : > { %10342 = vmatprep.subr.bf16.mxu0 %v15764_v36 }
 0x5ee   : > { %9664 = vmatmul.mubr.f32.gmra.mrb[44].mxu0 %v15765_v34 }
 0x5ef   : > { %9666 = vmatprep.mubr.f32.mxu0 %v15766_v54  ;;  %10344 = vmatpush3.bf16.msra.mxu0 %v15764_v36 }
 0x5f0   : > { %10346 = vmatprep.subr.bf16.mxu0 %v15767_v1 }
 0x5f2   : > { %9667 = vmatmul.mubr.f32.gmra.mrb[46].mxu0 %v15768_v29 }
 0x5f3   : > { %9669 = vmatprep.mubr.f32.mxu0 %v15769_v27  ;;  %10348 = vmatpush3.bf16.msra.mxu0 %v15767_v1  ;;  %v15790_v1 = vld [vmem:[#allocation55_spill] sm:$0xff] }
 0x5f6   : > { %9670 = vmatmul.mubr.f32.gmra.mrb[48].mxu0 %v15770_v19 }
 0x5f7   : > { %9672 = vmatprep.mubr.f32.mxu0 %v15771_v9 }
 0x5fa   : > { %9673 = vmatmul.mubr.f32.gmra.mrb[50].mxu0 %v15772_v59 }
 0x5fb   : > { %9675 = vmatprep.mubr.f32.mxu0 %v15773_v37 }
 0x5fe   : > { %9676 = vmatmul.mubr.f32.gmra.mrb[52].mxu0 %v15774_v53 }
 0x5ff   : > { %9678 = vmatprep.mubr.f32.mxu0 %v15775_v32 }
 0x602   : > { %9679 = vmatmul.mubr.f32.gmra.mrb[54].mxu0 %v15776_v13 }
 0x603   : > { %9681 = vmatprep.mubr.f32.mxu0 %v15777_v18 }
 0x606   : > { %9682 = vmatmul.mubr.f32.gmra.mrb[56].mxu0 %v15778_v23 }
 0x607   : > { %9684 = vmatprep.mubr.f32.mxu0 %v15779_v28 }
 0x60a   : > { %9685 = vmatmul.mubr.f32.gmra.mrb[58].mxu0 %v15780_v41 }
 0x60b   : > { %9687 = vmatprep.mubr.f32.mxu0 %v15781_v48 }
 0x60e   : > { %9688 = vmatmul.mubr.f32.gmra.mrb[60].mxu0 %v15782_v43 }
 0x60f   : > { %9690 = vmatprep.mubr.f32.mxu0 %v15783_v22 }
 0x612   : > { %9691 = vmatmul.mubr.f32.gmra.mrb[62].mxu0 %v15784_v58 }
 0x613   : > { %9725 = vmatprep.mubr.f32.mxu0 %v13938_v4 }
 0x616   : > { %9726 = vmatmul.mubr.f32.vlgmr.msra.gmra.mrb[32].mxu0 %v13935_v47 }
 0x617   : > { %9728 = vmatprep.mubr.f32.mxu0 %v13960_v12 }
 0x61a   : > { %9729 = vmatmul.mubr.f32.gmra.mrb[34].mxu0 %v13954_v61 }
 0x61b   : > { %9731 = vmatprep.mubr.f32.mxu0 %v13984_v55 }
 0x61e   : > { %9732 = vmatmul.mubr.f32.gmra.mrb[36].mxu0 %v13980_v51 }
 0x61f   : > { %9734 = vmatprep.mubr.f32.mxu0 %v14007_v11  ;;  %v14575_v11 = vld [vmem:[%s14809_s8] ss:$0 sm:$0xff] }
 0x622   : > { %9735 = vmatmul.mubr.f32.gmra.mrb[38].mxu0 %v14002_v44 }
 0x623   : > { %9737 = vmatprep.mubr.f32.mxu0 %v14031_v21 }
 0x626   : > { %9738 = vmatmul.mubr.f32.gmra.mrb[40].mxu0 %v14026_v50 }
 0x627   : > { %9740 = vmatprep.mubr.f32.mxu0 %v14055_v2 }
 0x62a   : > { %9741 = vmatmul.mubr.f32.gmra.mrb[42].mxu0 %v15762_v3 }
 0x62b   : > { %9743 = vmatprep.mubr.f32.mxu0 %v15763_v5 }
 0x62e   : > { %9744 = vmatmul.mubr.f32.gmra.mrb[44].mxu0 %v15765_v34  ;;  %v15789_v34 = vld [vmem:[#allocation50_spill] sm:$0xff] }
 0x62f   : > { %9746 = vmatprep.mubr.f32.mxu0 %v15766_v54 }
 0x632   : > { %9747 = vmatmul.mubr.f32.gmra.mrb[46].mxu0 %v15768_v29 }
 0x633   : > { %9749 = vmatprep.mubr.f32.mxu0 %v15769_v27 }
 0x636   : > { %9750 = vmatmul.mubr.f32.gmra.mrb[48].mxu0 %v15770_v19 }
 0x637   : > { %9752 = vmatprep.mubr.f32.mxu0 %v15771_v9 }
 0x63a   : > { %9753 = vmatmul.mubr.f32.gmra.mrb[50].mxu0 %v15772_v59 }
 0x63b   : > { %9755 = vmatprep.mubr.f32.mxu0 %v15773_v37 }
 0x63e   : > { %9756 = vmatmul.mubr.f32.gmra.mrb[52].mxu0 %v15774_v53 }
 0x63f   : > { %9758 = vmatprep.mubr.f32.mxu0 %v15775_v32 }
 0x642   : > { %9759 = vmatmul.mubr.f32.gmra.mrb[54].mxu0 %v15776_v13 }
 0x643   : > { %9761 = vmatprep.mubr.f32.mxu0 %v15777_v18  ;;  %v15791_v18 = vld [vmem:[#allocation58_spill] sm:$0xff] }
 0x646   : > { %9762 = vmatmul.mubr.f32.gmra.mrb[56].mxu0 %v15778_v23 }
 0x647   : > { %9764 = vmatprep.mubr.f32.mxu0 %v15779_v28  ;;  %v15792_v28 = vld [vmem:[#allocation66_spill] sm:$0xff] }
 0x64a   : > { %9765 = vmatmul.mubr.f32.gmra.mrb[58].mxu0 %v15780_v41 }
 0x64b   : > { %9767 = vmatprep.mubr.f32.mxu0 %v15781_v48 }
 0x64e   : > { %9768 = vmatmul.mubr.f32.gmra.mrb[60].mxu0 %v15782_v43 }
 0x64f   : > { %9770 = vmatprep.mubr.f32.mxu0 %v15783_v22 }
 0x652   : > { %9771 = vmatmul.mubr.f32.gmra.mrb[62].mxu0 %v15784_v58 }
 0x6e9   : > { %v9727_v51 = vpop.f32.mrb[32].mxu0 }
 0x6ea   : > { %v10445_v50 = vadd.f32 %v9727_v51, %v14575_v11  ;;  %v6784_v44 = vpop.f32.mrb[33].mxu0 }
 0x6eb   : > { %v10446_v47 = vadd.f32 %v14575_v11, %v6784_v44 }
 0x6ec   : > { %11196 = vtanh.f32 %v10445_v50 }
 0x6ed   : > { %11198 = vtanh.f32 %v10446_v47  ;;  %v9730_v4 = vpop.f32.mrb[34].mxu0 }
 0x6ee   : > { %v10447_v61 = vadd.f32 %v9730_v4, %v14575_v11  ;;  %v6796_v55 = vpop.f32.mrb[35].mxu0  ;;  %v15793_v4 = vld [vmem:[#allocation67_spill] sm:$0xff] }
 0x6ef   : > { %v10448_v12 = vadd.f32 %v14575_v11, %v6796_v55  ;;  %v15794_v55 = vld [vmem:[#allocation69_spill] sm:$0xff] }
 0x6f0   : > { %11200 = vtanh.f32 %v10447_v61 }
 0x6f1   : > { %11202 = vtanh.f32 %v10448_v12  ;;  %v9733_v21 = vpop.f32.mrb[36].mxu0 }
 0x6f2   : > { %v10449_v2 = vadd.f32 %v9733_v21, %v14575_v11  ;;  %v6808_v46 = vpop.f32.mrb[37].mxu0 }
 0x6f3   : > { %v10450_v15 = vadd.f32 %v14575_v11, %v6808_v46 }
 0x6f4   : > { %11204 = vtanh.f32 %v10449_v2 }
 0x6f5   : > { %11206 = vtanh.f32 %v10450_v15  ;;  %v9736_v14 = vpop.f32.mrb[38].mxu0 }
 0x6f6   : > { %v11197_v33 = vpop.eup %11196  ;;  %v10451_v42 = vadd.f32 %v9736_v14, %v14575_v11  ;;  %v6820_v63 = vpop.f32.mrb[39].mxu0 }
 0x6f7   : > { %v11199_v39 = vpop.eup %11198  ;;  %v10452_v6 = vadd.f32 %v14575_v11, %v6820_v63  ;;  %v7007_v40 = vadd.f32 %v11197_v33, %v15785_v49  ;;  %v15796_v49 = vld [vmem:[#allocation73_spill] sm:$0xff] }
 0x6f8   : > { %11208 = vtanh.f32 %v10451_v42  ;;  %v7006_v30 = vadd.f32 %v11199_v39, %v15786_v35  ;;  %v15795_v39 = vld [vmem:[#allocation71_spill] sm:$0xff] }
 0x6f9   : > { %11210 = vtanh.f32 %v10452_v6  ;;  %v9739_v26 = vpop.f32.mrb[40].mxu0  ;;  %v7046_v17 = vmul.f32 %v14587_v16, %v7007_v40 }
 0x6fa   : > { %v11201_v31 = vpop.eup %11200  ;;  %v10453_v8 = vadd.f32 %v9739_v26, %v14575_v11  ;;  %v6832_v24 = vpop.f32.mrb[41].mxu0  ;;  %v7045_v38 = vmul.f32 %v14587_v16, %v7006_v30 }
 0x6fb   : > { %v11203_v7 = vpop.eup %11202  ;;  %v10454_v20 = vadd.f32 %v14575_v11, %v6832_v24  ;;  %7079 = vadd.xlane.f32.xlu0 %v7046_v17  ;;  %v7009_v56 = vadd.f32 %v11201_v31, %v15787_v45  ;;  %v15798_v45 = vld [vmem:[#allocation78_spill] sm:$0xff] }
 0x6fc   : > { %11212 = vtanh.f32 %v10453_v8  ;;  %7077 = vadd.xlane.f32.xlu1 %v7045_v38  ;;  %v7008_v57 = vadd.f32 %v11203_v7, %v15788_v25  ;;  %v15797_v7 = vld [vmem:[#allocation76_spill] sm:$0xff] }
 0x6fd   : > { %11214 = vtanh.f32 %v10454_v20  ;;  %v9742_v60 = vpop.f32.mrb[42].mxu0  ;;  %v7048_v62 = vmul.f32 %v14587_v16, %v7009_v56 }
 0x6fe   : > { %v11205_v10 = vpop.eup %11204  ;;  %v10455_v52 = vadd.f32 %v9742_v60, %v14575_v11  ;;  %v6844_v0 = vpop.f32.mrb[43].mxu0  ;;  %v7047_v3 = vmul.f32 %v14587_v16, %v7008_v57 }
 0x6ff   : > { %v11207_v5 = vpop.eup %11206  ;;  %v10456_v36 = vadd.f32 %v14575_v11, %v6844_v0  ;;  %v7011_v54 = vadd.f32 %v11205_v10, %v15789_v34  ;;  %v15800_v34 = vld [vmem:[#allocation83_spill] sm:$0xff] }
 0x700   : > { %11216 = vtanh.f32 %v10455_v52  ;;  %7081 = vadd.xlane.f32.xlu0 %v7047_v3  ;;  %7083 = vadd.xlane.f32.xlu1 %v7048_v62  ;;  %v7010_v29 = vadd.f32 %v11207_v5, %v15790_v1  ;;  %v15799_v5 = vld [vmem:[#allocation81_spill] sm:$0xff] }
 0x701   : > { %11218 = vtanh.f32 %v10456_v36  ;;  %v9745_v27 = vpop.f32.mrb[44].mxu0  ;;  %v7050_v19 = vmul.f32 %v14587_v16, %v7011_v54 }
 0x702   : > { %v11209_v9 = vpop.eup %11208  ;;  %v10457_v59 = vadd.f32 %v9745_v27, %v14575_v11  ;;  %v6856_v37 = vpop.f32.mrb[45].mxu0  ;;  %v7049_v53 = vmul.f32 %v14587_v16, %v7010_v29 }
 0x703   : > { %v11211_v32 = vpop.eup %11210  ;;  %v10458_v13 = vadd.f32 %v14575_v11, %v6856_v37  ;;  %v7013_v23 = vadd.f32 %v11209_v9, %v15791_v18  ;;  %v15802_v18 = vld [vmem:[#allocation89_spill] sm:$0xff] }
 0x704   : > { %11220 = vtanh.f32 %v10457_v59  ;;  %7085 = vadd.xlane.f32.xlu0 %v7049_v53  ;;  %7087 = vadd.xlane.f32.xlu1 %v7050_v19  ;;  %v7012_v41 = vadd.f32 %v11211_v32, %v15792_v28  ;;  %v15801_v32 = vld [vmem:[#allocation87_spill] sm:$0xff] }
 0x705   : > { %11222 = vtanh.f32 %v10458_v13  ;;  %v9748_v48 = vpop.f32.mrb[46].mxu0  ;;  %v7052_v43 = vmul.f32 %v14587_v16, %v7013_v23 }
 0x706   : > { %v11213_v22 = vpop.eup %11212  ;;  %v10459_v58 = vadd.f32 %v9748_v48, %v14575_v11  ;;  %v6868_v51 = vpop.f32.mrb[47].mxu0  ;;  %v7051_v50 = vmul.f32 %v14587_v16, %v7012_v41 }
 0x707   : > { %v11215_v44 = vpop.eup %11214  ;;  %v10460_v47 = vadd.f32 %v14575_v11, %v6868_v51  ;;  %v7015_v61 = vadd.f32 %v11213_v22, %v15793_v4  ;;  %v15804_v4 = vld [vmem:[#allocation95_spill] sm:$0xff] }
 0x708   : > { %11224 = vtanh.f32 %v10459_v58  ;;  %7089 = vadd.xlane.f32.xlu0 %v7051_v50  ;;  %7091 = vadd.xlane.f32.xlu1 %v7052_v43  ;;  %v7014_v12 = vadd.f32 %v11215_v44, %v15794_v55  ;;  %v15803_v44 = vld [vmem:[#allocation93_spill] sm:$0xff] }
 0x709   : > { %11226 = vtanh.f32 %v10460_v47  ;;  %v9751_v21 = vpop.f32.mrb[48].mxu0  ;;  %v7054_v2 = vmul.f32 %v14587_v16, %v7015_v61 }
 0x70a   : > { %v11217_v46 = vpop.eup %11216  ;;  %v10461_v15 = vadd.f32 %v9751_v21, %v14575_v11  ;;  %v6880_v14 = vpop.f32.mrb[49].mxu0  ;;  %v7053_v33 = vmul.f32 %v14587_v16, %v7014_v12 }
 0x70b   : > { %v11219_v42 = vpop.eup %11218  ;;  %v10462_v63 = vadd.f32 %v14575_v11, %v6880_v14  ;;  %v7017_v6 = vadd.f32 %v11217_v46, %v15795_v39  ;;  %v15806_v39 = vld [vmem:[#allocation100_spill] sm:$0xff] }
 0x70c   : > { %11228 = vtanh.f32 %v10461_v15  ;;  %7093 = vadd.xlane.f32.xlu0 %v7053_v33  ;;  %7095 = vadd.xlane.f32.xlu1 %v7054_v2  ;;  %v7016_v40 = vadd.f32 %v11219_v42, %v15796_v49  ;;  %v15805_v42 = vld [vmem:[#allocation98_spill] sm:$0xff] }
 0x70d   : > { %11230 = vtanh.f32 %v10462_v63  ;;  %v9754_v35 = vpop.f32.mrb[50].mxu0  ;;  %v7056_v30 = vmul.f32 %v14587_v16, %v7017_v6 }
 0x70e   : > { %v11221_v26 = vpop.eup %11220  ;;  %v10463_v17 = vadd.f32 %v9754_v35, %v14575_v11  ;;  %v6892_v31 = vpop.f32.mrb[51].mxu0  ;;  %v7055_v8 = vmul.f32 %v14587_v16, %v7016_v40 }
 0x70f   : > { %v11223_v24 = vpop.eup %11222  ;;  %v10464_v38 = vadd.f32 %v14575_v11, %v6892_v31  ;;  %v7019_v20 = vadd.f32 %v11221_v26, %v15797_v7  ;;  %v15808_v7 = vld [vmem:[#allocation106_spill] sm:$0xff] }
 0x710   : > { %11232 = vtanh.f32 %v10463_v17  ;;  %7097 = vadd.xlane.f32.xlu0 %v7055_v8  ;;  %7099 = vadd.xlane.f32.xlu1 %v7056_v30  ;;  %v7018_v56 = vadd.f32 %v11223_v24, %v15798_v45  ;;  %v15807_v24 = vld [vmem:[#allocation104_spill] sm:$0xff] }
 0x711   : > { %11234 = vtanh.f32 %v10464_v38  ;;  %v9757_v25 = vpop.f32.mrb[52].mxu0  ;;  %v7058_v57 = vmul.f32 %v14587_v16, %v7019_v20 }
 0x712   : > { %v11225_v60 = vpop.eup %11224  ;;  %v10465_v62 = vadd.f32 %v9757_v25, %v14575_v11  ;;  %v6904_v10 = vpop.f32.mrb[53].mxu0  ;;  %v7057_v52 = vmul.f32 %v14587_v16, %v7018_v56 }
 0x713   : > { %v11227_v0 = vpop.eup %11226  ;;  %v10466_v3 = vadd.f32 %v14575_v11, %v6904_v10  ;;  %v7021_v36 = vadd.f32 %v11225_v60, %v15799_v5  ;;  %v15810_v5 = vld [vmem:[#allocation112_spill] sm:$0xff] }
 0x714   : > { %11236 = vtanh.f32 %v10465_v62  ;;  %7101 = vadd.xlane.f32.xlu0 %v7057_v52  ;;  %7103 = vadd.xlane.f32.xlu1 %v7058_v57  ;;  %v7020_v54 = vadd.f32 %v11227_v0, %v15800_v34  ;;  %v15809_v0 = vld [vmem:[#allocation110_spill] sm:$0xff] }
 0x715   : > { %11238 = vtanh.f32 %v10466_v3  ;;  %v9760_v1 = vpop.f32.mrb[54].mxu0  ;;  %v7060_v29 = vmul.f32 %v14587_v16, %v7021_v36 }
 0x716   : > { %v11229_v27 = vpop.eup %11228  ;;  %v10467_v19 = vadd.f32 %v9760_v1, %v14575_v11  ;;  %v6916_v9 = vpop.f32.mrb[55].mxu0  ;;  %v7059_v59 = vmul.f32 %v14587_v16, %v7020_v54 }
 0x717   : > { %v11231_v37 = vpop.eup %11230  ;;  %v10468_v53 = vadd.f32 %v14575_v11, %v6916_v9  ;;  %v7023_v13 = vadd.f32 %v11229_v27, %v15801_v32  ;;  %v15811_v27 = vld [vmem:[#allocation118_spill] sm:$0xff]  ;;  %v15812_v9 = vld [vmem:[#allocation120_spill] sm:$0xff] }
 0x718   : > { %11240 = vtanh.f32 %v10467_v19  ;;  %7105 = vadd.xlane.f32.xlu0 %v7059_v59  ;;  %7107 = vadd.xlane.f32.xlu1 %v7060_v29  ;;  %v7022_v23 = vadd.f32 %v11231_v37, %v15802_v18 }
 0x719   : > { %11242 = vtanh.f32 %v10468_v53  ;;  %v9763_v28 = vpop.f32.mrb[56].mxu0  ;;  %v7062_v41 = vmul.f32 %v14587_v16, %v7023_v13  ;;  %v15813_v13 = vld [vmem:[#allocation124_spill] sm:$0xff] }
 0x71a   : > { %v11233_v48 = vpop.eup %11232  ;;  %v10469_v43 = vadd.f32 %v9763_v28, %v14575_v11  ;;  %v6928_v22 = vpop.f32.mrb[57].mxu0  ;;  %v7061_v58 = vmul.f32 %v14587_v16, %v7022_v23  ;;  %v15814_v23 = vld [vmem:[#allocation126_spill] sm:$0xff] }
 0x71b   : > { %v11235_v51 = vpop.eup %11234  ;;  %v10470_v50 = vadd.f32 %v14575_v11, %v6928_v22  ;;  %v7025_v47 = vadd.f32 %v11233_v48, %v15803_v44 }
 0x71c   : > { %11244 = vtanh.f32 %v10469_v43  ;;  %7109 = vadd.xlane.f32.xlu0 %v7061_v58  ;;  %7111 = vadd.xlane.f32.xlu1 %v7062_v41  ;;  %v7024_v61 = vadd.f32 %v11235_v51, %v15804_v4  ;;  %v15815_v58 = vld [vmem:[#allocation129_spill] sm:$0xff] }
 0x71d   : > { %11246 = vtanh.f32 %v10470_v50  ;;  %v9766_v55 = vpop.f32.mrb[58].mxu0  ;;  %v7064_v12 = vmul.f32 %v14587_v16, %v7025_v47  ;;  %v15816_v50 = vld [vmem:[#allocation130_spill] sm:$0xff] }
 0x71e   : > { %v11237_v21 = vpop.eup %11236  ;;  %v10471_v2 = vadd.f32 %v9766_v55, %v14575_v11  ;;  %v6940_v46 = vpop.f32.mrb[59].mxu0  ;;  %v7063_v15 = vmul.f32 %v14587_v16, %v7024_v61  ;;  %v14678_v61 = vld [vmem:[#allocation2] ss:$0 sm:$0xff] }
 0x71f   : > { %v11239_v14 = vpop.eup %11238  ;;  %v10472_v33 = vadd.f32 %v14575_v11, %v6940_v46  ;;  %v7027_v63 = vadd.f32 %v11237_v21, %v15805_v42 }
 0x720   : > { %11248 = vtanh.f32 %v10471_v2  ;;  %7113 = vadd.xlane.f32.xlu0 %v7063_v15  ;;  %7115 = vadd.xlane.f32.xlu1 %v7064_v12  ;;  %v7026_v6 = vadd.f32 %v11239_v14, %v15806_v39 }
 0x721   : > { %11250 = vtanh.f32 %v10472_v33  ;;  %v9769_v49 = vpop.f32.mrb[60].mxu0  ;;  %v7066_v40 = vmul.f32 %v14587_v16, %v7027_v63 }
 0x722   : > { %v11241_v35 = vpop.eup %11240  ;;  %v10473_v30 = vadd.f32 %v9769_v49, %v14575_v11  ;;  %v6952_v26 = vpop.f32.mrb[61].mxu0  ;;  %v7065_v17 = vmul.f32 %v14587_v16, %v7026_v6 }
 0x723   : > { %v11243_v31 = vpop.eup %11242  ;;  %v10474_v8 = vadd.f32 %v14575_v11, %v6952_v26  ;;  %v7029_v38 = vadd.f32 %v11241_v35, %v15807_v24 }
 0x724   : > { %11252 = vtanh.f32 %v10473_v30  ;;  %7117 = vadd.xlane.f32.xlu0 %v7065_v17  ;;  %7119 = vadd.xlane.f32.xlu1 %v7066_v40  ;;  %v7028_v20 = vadd.f32 %v11243_v31, %v15808_v7 }
 0x725   : > { %11254 = vtanh.f32 %v10474_v8  ;;  %v9772_v45 = vpop.f32.mrb[62].mxu0  ;;  %v7068_v56 = vmul.f32 %v14587_v16, %v7029_v38 }
 0x726   : > { %v11245_v25 = vpop.eup %11244  ;;  %v10475_v57 = vadd.f32 %v9772_v45, %v14575_v11  ;;  %v6964_v60 = vpop.f32.mrb[63].mxu0  ;;  %v7067_v62 = vmul.f32 %v14587_v16, %v7028_v20 }
 0x727   : > { %v11247_v10 = vpop.eup %11246  ;;  %v10476_v52 = vadd.f32 %v14575_v11, %v6964_v60  ;;  %v7031_v3 = vadd.f32 %v11245_v25, %v15809_v0 }
 0x728   : > { %11256 = vtanh.f32 %v10475_v57  ;;  %7121 = vadd.xlane.f32.xlu0 %v7067_v62  ;;  %7123 = vadd.xlane.f32.xlu1 %v7068_v56  ;;  %v7030_v36 = vadd.f32 %v11247_v10, %v15810_v5 }
 0x729   : > { %11258 = vtanh.f32 %v10476_v52  ;;  %v7070_v34 = vmul.f32 %v14587_v16, %v7031_v3 }
 0x72a   : > { %v11249_v54 = vpop.eup %11248  ;;  %v7069_v1 = vmul.f32 %v14587_v16, %v7030_v36 }
 0x72b   : > { %v11251_v29 = vpop.eup %11250  ;;  %v7033_v19 = vadd.f32 %v11249_v54, %v15811_v27 }
 0x72c   : > { %7125 = vadd.xlane.f32.xlu0 %v7069_v1  ;;  %7127 = vadd.xlane.f32.xlu1 %v7070_v34  ;;  %v7032_v11 = vadd.f32 %v11251_v29, %v15812_v9 }
 0x72d   : > { %v7072_v59 = vmul.f32 %v14587_v16, %v7033_v19 }
 0x72e   : > { %v11253_v37 = vpop.eup %11252  ;;  %v7071_v53 = vmul.f32 %v14587_v16, %v7032_v11 }
 0x72f   : > { %v11255_v32 = vpop.eup %11254  ;;  %v7035_v18 = vadd.f32 %v11253_v37, %v15813_v13 }
 0x730   : > { %7129 = vadd.xlane.f32.xlu0 %v7071_v53  ;;  %7131 = vadd.xlane.f32.xlu1 %v7072_v59  ;;  %v7034_v28 = vadd.f32 %v11255_v32, %v15814_v23 }
 0x731   : > { %v7074_v41 = vmul.f32 %v14587_v16, %v7035_v18 }
 0x732   : > { %v11257_v48 = vpop.eup %11256  ;;  %v7073_v43 = vmul.f32 %v14587_v16, %v7034_v28 }
 0x733   : > { %v11259_v22 = vpop.eup %11258  ;;  %v7037_v51 = vadd.f32 %v11257_v48, %v15815_v58 }
 0x734   : > { %7133 = vadd.xlane.f32.xlu0 %v7073_v43  ;;  %7135 = vadd.xlane.f32.xlu1 %v7074_v41  ;;  %v7036_v44 = vadd.f32 %v11259_v22, %v15816_v50 }
 0x735   : > { %v7076_v47 = vmul.f32 %v14587_v16, %v7037_v51 }
 0x736   : > { %v7075_v4 = vmul.f32 %v14587_v16, %v7036_v44 }
 0x738   : > { %7137 = vadd.xlane.f32.xlu0 %v7075_v4  ;;  %7139 = vadd.xlane.f32.xlu1 %v7076_v47 }
 0x788   : > { %v7080_v55 = vpop.xlane.xlu0 %7079 }
 0x789   : > { %v7149_v12 = vadd.f32 %v14678_v61, %v7080_v55  ;;  %v7078_v21 = vpop.xlane.xlu1 %7077 }
 0x78a   : > { %v7148_v2 = vadd.f32 %v14678_v61, %v7078_v21 }
 0x78b   : > { %7187 = vperm.xlu1 %11002, %v7149_v12  }
 0x78c   : > { %7182 = vperm.xlu0 %11003, %v7148_v2  }
 0x78d   : > { %v7082_v46 = vpop.xlane.xlu0 %7081  ;;  %v7084_v15 = vpop.xlane.xlu1 %7083 }
 0x78e   : > { %v7151_v14 = vadd.f32 %v14678_v61, %v7084_v15  ;;  %v7150_v16 = vadd.f32 %v14678_v61, %v7082_v46 }
 0x790   : > { %7197 = vperm.xlu1 %11002, %v7151_v14  }
 0x791   : > { %v7086_v33 = vpop.xlane.xlu0 %7085  ;;  %v7088_v42 = vpop.xlane.xlu1 %7087 }
 0x792   : > { %v7153_v6 = vadd.f32 %v14678_v61, %v7088_v42  ;;  %v7152_v35 = vadd.f32 %v14678_v61, %v7086_v33 }
 0x794   : > { %7192 = vperm.xlu1 %11002, %v7150_v16  }
 0x795   : > { %v7090_v63 = vpop.xlane.xlu0 %7089  ;;  %v7092_v39 = vpop.xlane.xlu1 %7091 }
 0x796   : > { %v7155_v31 = vadd.f32 %v14678_v61, %v7092_v39  ;;  %v7154_v7 = vadd.f32 %v14678_v61, %v7090_v63 }
 0x798   : > { %7207 = vperm.xlu1 %11002, %v7153_v6  }
 0x799   : > { %v7094_v49 = vpop.xlane.xlu0 %7093  ;;  %v7096_v40 = vpop.xlane.xlu1 %7095 }
 0x79a   : > { %v7157_v30 = vadd.f32 %v14678_v61, %v7096_v40  ;;  %v7156_v25 = vadd.f32 %v14678_v61, %v7094_v49 }
 0x79c   : > { %7202 = vperm.xlu1 %11002, %v7152_v35   ;;  %7227 = vperm.xlu0 %11003, %v7157_v30  }
 0x79d   : > { %v7098_v26 = vpop.xlane.xlu0 %7097  ;;  %v7100_v17 = vpop.xlane.xlu1 %7099 }
 0x79e   : > { %v7159_v8 = vadd.f32 %v14678_v61, %v7100_v17  ;;  %v7158_v10 = vadd.f32 %v14678_v61, %v7098_v26 }
 0x7a0   : > { %7217 = vperm.xlu1 %11002, %v7155_v31   ;;  %7237 = vperm.xlu0 %11003, %v7159_v8  }
 0x7a1   : > { %v7102_v24 = vpop.xlane.xlu0 %7101  ;;  %v7104_v38 = vpop.xlane.xlu1 %7103 }
 0x7a2   : > { %v7161_v20 = vadd.f32 %v14678_v61, %v7104_v38  ;;  %v7160_v5 = vadd.f32 %v14678_v61, %v7102_v24 }
 0x7a4   : > { %7212 = vperm.xlu1 %11002, %v7154_v7   ;;  %7247 = vperm.xlu0 %11003, %v7161_v20  }
 0x7a5   : > { %v7106_v45 = vpop.xlane.xlu0 %7105  ;;  %v7108_v56 = vpop.xlane.xlu1 %7107 }
 0x7a6   : > { %v7163_v57 = vadd.f32 %v14678_v61, %v7108_v56  ;;  %v7162_v1 = vadd.f32 %v14678_v61, %v7106_v45 }
 0x7a8   : > { %7222 = vperm.xlu1 %11002, %v7156_v25   ;;  %7257 = vperm.xlu0 %11003, %v7163_v57  }
 0x7a9   : > { %v7110_v60 = vpop.xlane.xlu0 %7109  ;;  %v7112_v62 = vpop.xlane.xlu1 %7111 }
 0x7aa   : > { %v7165_v52 = vadd.f32 %v14678_v61, %v7112_v62  ;;  %v7164_v19 = vadd.f32 %v14678_v61, %v7110_v60 }
 0x7ac   : > { %7232 = vperm.xlu1 %11002, %v7158_v10   ;;  %7267 = vperm.xlu0 %11003, %v7165_v52  }
 0x7ad   : > { %v7114_v0 = vpop.xlane.xlu0 %7113  ;;  %v7116_v3 = vpop.xlane.xlu1 %7115 }
 0x7ae   : > { %v7167_v36 = vadd.f32 %v14678_v61, %v7116_v3  ;;  %v7166_v37 = vadd.f32 %v14678_v61, %v7114_v0 }
 0x7b0   : > { %7242 = vperm.xlu1 %11002, %v7160_v5   ;;  %7277 = vperm.xlu0 %11003, %v7167_v36  }
 0x7b1   : > { %v7118_v34 = vpop.xlane.xlu0 %7117  ;;  %v7120_v54 = vpop.xlane.xlu1 %7119 }
 0x7b2   : > { %v7169_v29 = vadd.f32 %v14678_v61, %v7120_v54  ;;  %v7168_v18 = vadd.f32 %v14678_v61, %v7118_v34 }
 0x7b4   : > { %7252 = vperm.xlu1 %11002, %v7162_v1   ;;  %7287 = vperm.xlu0 %11003, %v7169_v29  }
 0x7b5   : > { %v7124_v27 = vpop.xlane.xlu1 %7123  ;;  %v7122_v11 = vpop.xlane.xlu0 %7121 }
 0x7b6   : > { %v7171_v9 = vadd.f32 %v14678_v61, %v7124_v27  ;;  %v7170_v41 = vadd.f32 %v14678_v61, %v7122_v11 }
 0x7b8   : > { %7262 = vperm.xlu1 %11002, %v7164_v19   ;;  %7297 = vperm.xlu0 %11003, %v7171_v9  }
 0x7b9   : > { %v7128_v59 = vpop.xlane.xlu1 %7127  ;;  %v7126_v32 = vpop.xlane.xlu0 %7125 }
 0x7ba   : > { %v7173_v53 = vadd.f32 %v14678_v61, %v7128_v59  ;;  %v7172_v58 = vadd.f32 %v14678_v61, %v7126_v32 }
 0x7bc   : > { %7272 = vperm.xlu1 %11002, %v7166_v37   ;;  %7307 = vperm.xlu0 %11003, %v7173_v53  }
 0x7bd   : > { %v7132_v13 = vpop.xlane.xlu1 %7131  ;;  %v7130_v43 = vpop.xlane.xlu0 %7129 }
 0x7be   : > { %v7175_v23 = vadd.f32 %v14678_v61, %v7132_v13  ;;  %v7174_v44 = vadd.f32 %v14678_v61, %v7130_v43 }
 0x7c0   : > { %7282 = vperm.xlu1 %11002, %v7168_v18   ;;  %7317 = vperm.xlu0 %11003, %v7175_v23  }
 0x7c1   : > { %v7136_v28 = vpop.xlane.xlu1 %7135  ;;  %v7134_v50 = vpop.xlane.xlu0 %7133 }
 0x7c2   : > { %v7177_v48 = vadd.f32 %v14678_v61, %v7136_v28  ;;  %v7176_v47 = vadd.f32 %v14678_v61, %v7134_v50 }
 0x7c4   : > { %7292 = vperm.xlu1 %11002, %v7170_v41   ;;  %7327 = vperm.xlu0 %11003, %v7177_v48  }
 0x7c5   : > { %v7140_v22 = vpop.xlane.xlu1 %7139  ;;  %v7138_v4 = vpop.xlane.xlu0 %7137 }
 0x7c6   : > { %v7179_v51 = vadd.f32 %v14678_v61, %v7140_v22  ;;  %v7178_v55 = vadd.f32 %v14678_v61, %v7138_v4 }
 0x7c8   : > { %7302 = vperm.xlu1 %11002, %v7172_v58   ;;  %7337 = vperm.xlu0 %11003, %v7179_v51  }
 0x7cc   : > { %7312 = vperm.xlu1 %11002, %v7174_v44  }
 0x7d0   : > { %7322 = vperm.xlu1 %11002, %v7176_v47  }
 0x7d4   : > { %7332 = vperm.xlu1 %11002, %v7178_v55  }
 0x80a   : > { %v7188_v12 = vpop.permute.xlu1 %7187 }
 0x80b   : > { %7341 = vst [vmem:[%s14715_s16 + $0x8] sm:$0xff] %v7188_v12  ;;  %v7183_v21 = vpop.permute.xlu0 %7182 }
 0x80c   : > { %7340 = vst [vmem:[%s14715_s16] sm:$0xff] %v7183_v21 }
 0x80f   : > { %v7198_v61 = vpop.permute.xlu1 %7197 }
 0x810   : > { %7343 = vst [vmem:[%s14715_s16 + $0x18] sm:$0xff] %v7198_v61 }
 0x813   : > { %v7193_v2 = vpop.permute.xlu1 %7192 }
 0x814   : > { %7342 = vst [vmem:[%s14715_s16 + $0x10] sm:$0xff] %v7193_v2 }
 0x817   : > { %v7208_v46 = vpop.permute.xlu1 %7207 }
 0x818   : > { %7345 = vst [vmem:[%s14715_s16 + $0x28] sm:$0xff] %v7208_v46 }
 0x81b   : > { %v7228_v15 = vpop.permute.xlu0 %7227  ;;  %v7203_v14 = vpop.permute.xlu1 %7202 }
 0x81c   : > { %7349 = vst [vmem:[%s14715_s16 + $0x48] sm:$0xff] %v7228_v15  ;;  %7344 = vst [vmem:[%s14715_s16 + $0x20] sm:$0xff] %v7203_v14 }
 0x81f   : > { %v7238_v33 = vpop.permute.xlu0 %7237  ;;  %v7218_v42 = vpop.permute.xlu1 %7217 }
 0x820   : > { %7351 = vst [vmem:[%s14715_s16 + $0x58] sm:$0xff] %v7238_v33  ;;  %7347 = vst [vmem:[%s14715_s16 + $0x38] sm:$0xff] %v7218_v42 }
 0x823   : > { %v7248_v16 = vpop.permute.xlu0 %7247  ;;  %v7213_v63 = vpop.permute.xlu1 %7212 }
 0x824   : > { %7353 = vst [vmem:[%s14715_s16 + $0x68] sm:$0xff] %v7248_v16  ;;  %7346 = vst [vmem:[%s14715_s16 + $0x30] sm:$0xff] %v7213_v63 }
 0x827   : > { %v7258_v39 = vpop.permute.xlu0 %7257  ;;  %v7223_v6 = vpop.permute.xlu1 %7222 }
 0x828   : > { %7355 = vst [vmem:[%s14715_s16 + $0x78] sm:$0xff] %v7258_v39  ;;  %7348 = vst [vmem:[%s14715_s16 + $0x40] sm:$0xff] %v7223_v6 }
 0x82b   : > { %v7268_v49 = vpop.permute.xlu0 %7267  ;;  %v7233_v40 = vpop.permute.xlu1 %7232 }
 0x82c   : > { %7357 = vst [vmem:[%s14715_s16 + $0x88] sm:$0xff] %v7268_v49  ;;  %7350 = vst [vmem:[%s14715_s16 + $0x50] sm:$0xff] %v7233_v40 }
 0x82f   : > { %v7278_v35 = vpop.permute.xlu0 %7277  ;;  %v7243_v30 = vpop.permute.xlu1 %7242 }
 0x830   : > { %7359 = vst [vmem:[%s14715_s16 + $0x98] sm:$0xff] %v7278_v35  ;;  %7352 = vst [vmem:[%s14715_s16 + $0x60] sm:$0xff] %v7243_v30 }
 0x833   : > { %v7288_v26 = vpop.permute.xlu0 %7287  ;;  %v7253_v17 = vpop.permute.xlu1 %7252 }
 0x834   : > { %7361 = vst [vmem:[%s14715_s16 + $0xa8] sm:$0xff] %v7288_v26  ;;  %7354 = vst [vmem:[%s14715_s16 + $0x70] sm:$0xff] %v7253_v17 }
 0x837   : > { %v7298_v31 = vpop.permute.xlu0 %7297  ;;  %v7263_v8 = vpop.permute.xlu1 %7262 }
 0x838   : > { %7363 = vst [vmem:[%s14715_s16 + $0xb8] sm:$0xff] %v7298_v31  ;;  %7356 = vst [vmem:[%s14715_s16 + $0x80] sm:$0xff] %v7263_v8 }
 0x83b   : > { %v7308_v24 = vpop.permute.xlu0 %7307  ;;  %v7273_v38 = vpop.permute.xlu1 %7272 }
 0x83c   : > { %7365 = vst [vmem:[%s14715_s16 + $0xc8] sm:$0xff] %v7308_v24  ;;  %7358 = vst [vmem:[%s14715_s16 + $0x90] sm:$0xff] %v7273_v38 }
 0x83f   : > { %v7318_v7 = vpop.permute.xlu0 %7317  ;;  %v7283_v20 = vpop.permute.xlu1 %7282 }
 0x840   : > { %7367 = vst [vmem:[%s14715_s16 + $0xd8] sm:$0xff] %v7318_v7  ;;  %7360 = vst [vmem:[%s14715_s16 + $0xa0] sm:$0xff] %v7283_v20 }
 0x843   : > { %v7328_v45 = vpop.permute.xlu0 %7327  ;;  %v7293_v56 = vpop.permute.xlu1 %7292 }
 0x844   : > { %7369 = vst [vmem:[%s14715_s16 + $0xe8] sm:$0xff] %v7328_v45  ;;  %7362 = vst [vmem:[%s14715_s16 + $0xb0] sm:$0xff] %v7293_v56 }
 0x847   : > { %v7338_v25 = vpop.permute.xlu0 %7337  ;;  %v7303_v57 = vpop.permute.xlu1 %7302 }
 0x848   : > { %7371 = vst [vmem:[%s14715_s16 + $0xf8] sm:$0xff] %v7338_v25  ;;  %7364 = vst [vmem:[%s14715_s16 + $0xc0] sm:$0xff] %v7303_v57 }
 0x84b   : > { %v7313_v60 = vpop.permute.xlu1 %7312 }
 0x84c   : > { %7366 = vst [vmem:[%s14715_s16 + $0xd0] sm:$0xff] %v7313_v60 }
 0x84f   : > { %v7323_v62 = vpop.permute.xlu1 %7322 }
 0x850   : > { %7368 = vst [vmem:[%s14715_s16 + $0xe0] sm:$0xff] %v7323_v62 }
 0x853   : > { %v7333_v10 = vpop.permute.xlu1 %7332 }
 0x854   : > { %7370 = vst [vmem:[%s14715_s16 + $0xf0] sm:$0xff] %v7333_v10 }
 0x855   : > { %11276 = shalt.err (!%p11273_p3)
}
 0x856   : > { %s11277_s13 = scalar_lea.hbm %s14753_s26, 4096  ;;  %s11281_s23 = scalar_lea.hbm %s14812_s11, 8192 }
 0x857   : > { %p11278_p4 = scmp.ne.s32.totalorder %s14753_s26, %s11277_s13  ;;  %p11282_p9 = scmp.lt.u32.totalorder %s14753_s26, %s14812_s11 }
 0x858   : > { %p11283_p10 = scmp.lt.u32.totalorder %s11281_s23, %s11277_s13  ;;  %p11285_p12 = scmp.lt.u32.totalorder %s11277_s13, %s14753_s26 }
 0x859   : > { %p11279_p7 = pnand %p11278_p4, %p11433_p5 }
 0x85a   : > { %p11284_p11 = por %p11283_p10, %p11282_p9 }
 0x85b   : > { %p11280_p8 = pneg %p11279_p7 }
 0x85c   : > { %p11286_p13 = por %p11285_p12, %p11284_p11 }
 0x85e   : > { %p11287_p0 = pnand %p11286_p13, %p11280_p8 }
 0x860   : > { %11290 = shalt.err (!%p11287_p0)
}
 0x861   : > { %s11330_s12 = smov 128   ;;  %s11331_s15 = smov 8  }
 0x862   : > { %10925 = dma.vmem_to_hbm [thread:$0]  (%p11433_p5), %s14755_s18, 4096, %s14753_s26, %s14760_s30, %s11330_s12, %s11330_s12, %s11331_s15  }
 0x863 PF: > { %p10931_p1 = scmp.ge.s32.totalorder %s11325_s22, 2  ;;  %s7401_s14 = sand.u32 1, %s11313_s19  }
 0x864   : > { %s7402_s13 = scalar_lea.sflag [#allocation4], %s7401_s14 }
 0x865   : > { %p10928_p2 = pnand %p10931_p1, %p11437_p6 }
 0x867   : > { %11308 = dma.done.wait (!%p10928_p2), %s7402_s13, 4096  }
 0x868   : > { %11310 = vsyncadd (!%p10928_p2), %s7402_s13, 4294963200  ;;  %p23_p3 = scmp.ge.s32.totalorder %s11420_s24, 4   ;;  %s15817_s19 = smov %s11317_s20 }
 0x869   : > { %s15818_s20 = smov %s11321_s21  ;;  %s15819_s21 = smov %s11431_s27 }
 0x86a   : > { %s15820_s22 = smov %s11420_s24  ;;  %25 = sbr.rel (!%p23_p3) target bundleno = 6 (0x6), region = 99 }
 0x871   :  { %7407 = vsyncpa [#allocation4], 1 }
 0x872   :  { %7409 = vsyncpa [#allocation4 + $0x1], 1 }

</bundles_post_ra>
